<compile_context>
chip_gen: v6e
topology: v6e:2x2x1
jax: 0.10.0
libtpu: 0.0.40
codegen_flags: <defaults>
</compile_context>

<pallas_src>
import numpy as np
import jax
import jax.numpy as jnp
from jax.experimental import pallas as pl
from jax.experimental.pallas import tpu as pltpu

# ----- small configuration consistent with the module -----
B = 2                      # real batch
BP = 8                     # padded batch per micro-batch (sublane tile)
N_NODES = 8                # num_nodes (input channel count)
T = 16                     # input_dim == sequence length (after transpose)
HIDDEN = 32                # hidden_dim (use_token_embed=True, linear embedding)
HEADS = 2                  # num_heads
HEAD_DIM = HIDDEN // HEADS
NUM_MODES = 4              # num_modes, mode_select_method='low'
HIDDEN_CONV = int(1.0 * HIDDEN)   # channel_multiplier = 1.0
NUM_LAYERS = 2
HEAD_HIDDEN = 32           # BasicMLP hidden width
N_CLASSES = 4
OUT_PAD = 128              # lane-dense padded logits width
DTYPE = jnp.float32        # activations / small weights / accumulation
WDTYPE = jnp.bfloat16      # MXU operand dtype for the big folded operator A

TH = T * HIDDEN            # 512  (lane-dense activation width)


# --------------------------------------------------------------------------
# Fused kernel: embed + NUM_LAYERS FEDformer layers + mean-pool + MLP head.
#   rows layout  : (T*BP, H)  with row index = t*BP + b   (per-timestep ops)
#   lanes layout : (BP, T*H)  with lane index = t*H + h   (time-mixing op A)
# Layout changes go through the rows_ref / lanes_ref VMEM scratch buffers
# using static slices only.
# --------------------------------------------------------------------------
def fedformer_fused_kernel(x_ref, wemb_ref, add_ref, wproj_ref, bproj_ref,
                           aop_ref, wc1_ref, wc2_ref, w1_ref, b1_ref,
                           w2_ref, b2_ref, o_ref, rows_ref, lanes_ref):
    f32 = jnp.float32
    bf16 = jnp.bfloat16

    # ---- token embedding (Linear N->H per timestep) + bias + PE, rows layout
    x = x_ref[0]                                               # (T*BP, N)
    a = jnp.dot(x, wemb_ref[...], preferred_element_type=f32) + add_ref[...]

    for l in range(NUM_LAYERS):
        # SingleMultiheadProjection: per-timestep Linear H->H (+ bias).
        q = jnp.dot(a, wproj_ref[l], preferred_element_type=f32) + bproj_ref[l]

        # rows -> lanes  (via VMEM scratch, static slices only)
        rows_ref[...] = q
        for t in range(T):
            lanes_ref[:, t * HIDDEN:(t + 1) * HIDDEN] = \
                rows_ref[t * BP:(t + 1) * BP, :]

        # FEBf: rfft -> per-mode complex head mixing -> irfft, folded exactly
        # into one dense real (T*H, T*H) operator A (the only bf16 operand).
        attn = jnp.dot(lanes_ref[...].astype(bf16), aop_ref[l],
                       preferred_element_type=f32)             # (BP, T*H)

        # lanes -> rows
        lanes_ref[...] = attn
        for t in range(T):
            rows_ref[t * BP:(t + 1) * BP, :] = \
                lanes_ref[:, t * HIDDEN:(t + 1) * HIDDEN]

        x1 = a + rows_ref[...]                                 # residual 1

        # 1x1-conv FFN (conv_1 -> ReLU -> conv_2, bias-free), rows layout.
        h1 = jnp.maximum(jnp.dot(x1, wc1_ref[l],
                                 preferred_element_type=f32), 0.0)
        y = jnp.dot(h1, wc2_ref[l], preferred_element_type=f32)
        a = x1 + y                                             # residual 2

    # ---- mean-pool over time + BasicMLP head (ReLU MLP), rows layout ----
    rows_ref[...] = a
    pooled = rows_ref[0:BP, :]
    for t in range(1, T):
        pooled = pooled + rows_ref[t * BP:(t + 1) * BP, :]
    pooled = pooled * (1.0 / T)                                # (BP, H)

    h = jnp.maximum(jnp.dot(pooled, w1_ref[...],
                            preferred_element_type=f32) + b1_ref[...], 0.0)
    logits = jnp.dot(h, w2_ref[...],
                     preferred_element_type=f32) + b2_ref[...]  # (BP, 128)
    o_ref[0] = logits.astype(o_ref.dtype)                      # lane-dense store


def _compiler_params():
    cp = getattr(pltpu, "CompilerParams", None)
    if cp is None:                                  # older JAX fallback
        cp = getattr(pltpu, "TPUCompilerParams", None)
    if cp is None:
        return None
    return cp(dimension_semantics=("parallel",))


def _const_spec(shape):
    nd = len(shape)
    return pl.BlockSpec(shape, lambda i, _nd=nd: (0,) * _nd)


def _build_call(nb):
    in_specs = [
        pl.BlockSpec((1, T * BP, N_NODES), lambda i: (i, 0, 0)),    # x rows
        _const_spec((N_NODES, HIDDEN)),                             # wemb
        _const_spec((T * BP, HIDDEN)),                              # PE + bias
        _const_spec((NUM_LAYERS, HIDDEN, HIDDEN)),                  # wproj
        _const_spec((NUM_LAYERS, 1, HIDDEN)),                       # bproj
        _const_spec((NUM_LAYERS, TH, TH)),                          # A (bf16)
        _const_spec((NUM_LAYERS, HIDDEN, HIDDEN_CONV)),             # wc1
        _const_spec((NUM_LAYERS, HIDDEN_CONV, HIDDEN)),             # wc2
        _const_spec((HIDDEN, HEAD_HIDDEN)),                         # w1
        _const_spec((1, HEAD_HIDDEN)),                              # b1
        _const_spec((HEAD_HIDDEN, OUT_PAD)),                        # w2 padded
        _const_spec((1, OUT_PAD)),                                  # b2 padded
    ]
    grid_spec = pltpu.PrefetchScalarGridSpec(
        num_scalar_prefetch=0,
        grid=(nb,),
        in_specs=in_specs,
        out_specs=pl.BlockSpec((1, BP, OUT_PAD), lambda i: (i, 0, 0)),
        scratch_shapes=[pltpu.VMEM((T * BP, HIDDEN), jnp.float32),
                        pltpu.VMEM((BP, TH), jnp.float32)],
    )
    return pl.pallas_call(
        fedformer_fused_kernel,
        out_shape=jax.ShapeDtypeStruct((nb, BP, OUT_PAD), DTYPE),
        grid_spec=grid_spec,
        compiler_params=_compiler_params(),
    )


# --------------------------------------------------------------------------
# Raw parameter construction (mirrors the PyTorch module's parameters).
# --------------------------------------------------------------------------
def init_params(key):
    ks = jax.random.split(key, 2 + 6 * NUM_LAYERS + 4)
    ki = iter(ks)

    def uniform(k, shape, fan_in):
        bound = 1.0 / np.sqrt(fan_in)
        return jax.random.uniform(k, shape, DTYPE, -bound, bound)

    wemb = uniform(next(ki), (N_NODES, HIDDEN), N_NODES)     # LinearTokenEmbedding
    bemb = uniform(next(ki), (HIDDEN,), N_NODES)

    # sinusoidal PositionalEmbedding
    position = np.arange(T, dtype=np.float32)[:, None]
    div_term = np.exp(np.arange(0, HIDDEN, 2, dtype=np.float32)
                      * -(np.log(10000.0) / HIDDEN))
    pe = np.zeros((T, HIDDEN), np.float32)
    pe[:, 0::2] = np.sin(position * div_term)
    pe[:, 1::2] = np.cos(position * div_term)
    add = jnp.asarray(pe) + bemb[None, :]                    # (T, HIDDEN)

    # Real DFT / inverse-DFT matrices for the NUM_MODES lowest frequencies.
    modes = np.arange(NUM_MODES)
    ang = 2.0 * np.pi * np.outer(modes, np.arange(T)) / T    # (M, T)
    cmat = np.cos(ang).astype(np.float32)                    # rfft real part
    smat = (-np.sin(ang)).astype(np.float32)                 # rfft imag part
    coef = np.where((modes == 0) | ((T % 2 == 0) & (modes == T // 2)),
                    1.0, 2.0).astype(np.float32)
    icmat = ((coef[None, :] / T) * np.cos(ang.T)).astype(np.float32)   # (T, M)
    ismat = (-(coef[None, :] / T) * np.sin(ang.T)).astype(np.float32)  # (T, M)

    scale = 1.0 / (HEAD_DIM * HEAD_DIM)

    def blockdiag(w):   # (HEADS, e, e, M) -> (M, H, H) block-diag over heads
        w = np.asarray(w)
        out = np.zeros((NUM_MODES, HIDDEN, HIDDEN), np.float32)
        for m in range(NUM_MODES):
            for h in range(HEADS):
                s = h * HEAD_DIM
                out[m, s:s + HEAD_DIM, s:s + HEAD_DIM] = w[h, :, :, m]
        return jnp.asarray(out)

    layers = []
    for _ in range(NUM_LAYERS):
        wproj = uniform(next(ki), (HIDDEN, HIDDEN), HIDDEN)
        bproj = uniform(next(ki), (1, HIDDEN), HIDDEN)
        wr_h = scale * jax.random.uniform(
            next(ki), (HEADS, HEAD_DIM, HEAD_DIM, NUM_MODES), DTYPE)
        wi_h = scale * jax.random.uniform(
            next(ki), (HEADS, HEAD_DIM, HEAD_DIM, NUM_MODES), DTYPE)
        wc1 = uniform(next(ki), (HIDDEN, HIDDEN_CONV), HIDDEN)       # conv_1
        wc2 = uniform(next(ki), (HIDDEN_CONV, HIDDEN), HIDDEN_CONV)  # conv_2
        layers.append(dict(wproj=wproj, bproj=bproj,
                           wr=blockdiag(wr_h), wi=blockdiag(wi_h),
                           wc1=wc1, wc2=wc2))

    w1 = uniform(next(ki), (HIDDEN, HEAD_HIDDEN), HIDDEN)
    b1 = uniform(next(ki), (1, HEAD_HIDDEN), HIDDEN)
    w2 = uniform(next(ki), (HEAD_HIDDEN, N_CLASSES), HEAD_HIDDEN)
    b2 = uniform(next(ki), (1, N_CLASSES), HEAD_HIDDEN)

    return dict(wemb=wemb, add=add,
                cmat=jnp.asarray(cmat), smat=jnp.asarray(smat),
                icmat=jnp.asarray(icmat), ismat=jnp.asarray(ismat),
                layers=layers, w1=w1, b1=b1, w2=w2, b2=b2)


# --------------------------------------------------------------------------
# Host-side packing of raw params into kernel operands (only A is folded).
# --------------------------------------------------------------------------
def pack_params(p):
    f64 = lambda a: np.asarray(a, np.float64)
    cmat, smat = f64(p['cmat']), f64(p['smat'])          # (M, T)
    icmat, ismat = f64(p['icmat']), f64(p['ismat'])      # (T, M)

    # PE + embedding bias in rows layout (row index = t*BP + b).
    add_rows = np.repeat(f64(p['add']), BP, axis=0)      # (T*BP, H)

    a_ops, wprojs, bprojs, wc1s, wc2s = [], [], [], [], []
    for lp in p['layers']:
        wr, wi = f64(lp['wr']), f64(lp['wi'])            # (M, H, H)
        # Exact FEBf operator: attn[u,k] = sum_{t,h} q[t,h] * A[(t,h),(u,k)]
        A = (np.einsum('mt,mhk,um->thuk', cmat, wr, icmat)
             - np.einsum('mt,mhk,um->thuk', smat, wi, icmat)
             + np.einsum('mt,mhk,um->thuk', cmat, wi, ismat)
             + np.einsum('mt,mhk,um->thuk', smat, wr, ismat)).reshape(TH, TH)
        a_ops.append(A)
        wprojs.append(np.asarray(lp['wproj'], np.float32))
        bprojs.append(np.asarray(lp['bproj'], np.float32).reshape(1, HIDDEN))
        wc1s.append(np.asarray(lp['wc1'], np.float32))
        wc2s.append(np.asarray(lp['wc2'], np.float32))

    w2p = np.zeros((HEAD_HIDDEN, OUT_PAD), np.float32)
    w2p[:, :N_CLASSES] = np.asarray(p['w2'], np.float32)
    b2p = np.zeros((1, OUT_PAD), np.float32)
    b2p[:, :N_CLASSES] = np.asarray(p['b2'], np.float32)

    return dict(
        wemb=jnp.asarray(p['wemb'], DTYPE),
        add=jnp.asarray(add_rows, DTYPE),
        wproj=jnp.asarray(np.stack(wprojs), DTYPE),
        bproj=jnp.asarray(np.stack(bprojs), DTYPE),
        a_op=jnp.asarray(np.stack(a_ops), WDTYPE),      # (L, T*H, T*H) bf16
        wc1=jnp.asarray(np.stack(wc1s), DTYPE),
        wc2=jnp.asarray(np.stack(wc2s), DTYPE),
        w1=jnp.asarray(p['w1'], DTYPE),
        b1=jnp.asarray(p['b1'], DTYPE).reshape(1, HEAD_HIDDEN),
        w2=jnp.asarray(w2p, DTYPE),
        b2=jnp.asarray(b2p, DTYPE),
    )


# --------------------------------------------------------------------------
# Full forward pass: layout glue in XLA + ONE pallas_call (grid over
# micro-batches of BP padded samples).
# --------------------------------------------------------------------------
@jax.jit
def fedformer_forward(x, fp):
    b_total = x.shape[0]
    nb = max(1, -(-b_total // BP))
    xb = jnp.zeros((nb * BP, N_NODES, T), DTYPE).at[:b_total].set(x.astype(DTYPE))
    # rows layout per micro-batch: row index = t*BP + b
    x_rows = (xb.reshape(nb, BP, N_NODES, T)
                .transpose(0, 3, 1, 2)                  # (nb, T, BP, N)
                .reshape(nb, T * BP, N_NODES))
    out = _build_call(nb)(x_rows, fp['wemb'], fp['add'],
                          fp['wproj'], fp['bproj'], fp['a_op'],
                          fp['wc1'], fp['wc2'],
                          fp['w1'], fp['b1'], fp['w2'], fp['b2'])
    return out.reshape(nb * BP, OUT_PAD)[:b_total, :N_CLASSES]


# Pure-JAX f32 reference with the ORIGINAL (unfolded) math — validates both
# the Pallas lowering and the host-side FEBf operator folding.
def reference_forward(x, p):
    out = jnp.transpose(x, (0, 2, 1)) @ p['wemb'] + p['add']
    for lp in p['layers']:
        q = out @ lp['wproj'] + lp['bproj']
        xr = jnp.einsum('mt,bth->bmh', p['cmat'], q)
        xi = jnp.einsum('mt,bth->bmh', p['smat'], q)
        yr = (jnp.einsum('bmh,mhk->bmk', xr, lp['wr'])
              - jnp.einsum('bmh,mhk->bmk', xi, lp['wi']))
        yi = (jnp.einsum('bmh,mhk->bmk', xr, lp['wi'])
              + jnp.einsum('bmh,mhk->bmk', xi, lp['wr']))
        attn = (jnp.einsum('tm,bmh->bth', p['icmat'], yr)
                + jnp.einsum('tm,bmh->bth', p['ismat'], yi))
        x1 = out + attn
        out = x1 + jax.nn.relu(x1 @ lp['wc1']) @ lp['wc2']
    pooled = jnp.mean(out, axis=1)
    h = jax.nn.relu(pooled @ p['w1'] + p['b1'])
    return h @ p['w2'] + p['b2']


if __name__ == "__main__":
    key = jax.random.PRNGKey(0)
    kx, kp = jax.random.split(key)
    x = jax.random.normal(kx, (B, N_NODES, T), DTYPE)   # batch[0]: (b, num_nodes, t)
    params = init_params(kp)
    fused_params = pack_params(params)

    out = jax.block_until_ready(fedformer_forward(x, fused_params))
    assert out.shape == (B, N_CLASSES)

    with jax.default_matmul_precision("float32"):
        ref = jax.block_until_ready(reference_forward(x, params))
    # tolerance accounts for the bf16 MXU operand of the folded FEBf operator
    np.testing.assert_allclose(np.asarray(out), np.asarray(ref),
                               rtol=2e-2, atol=2e-2)

    print("KERNEL_OK")
</pallas_src>

<mosaic_0001>
module attributes {stable_mosaic.version = 11 : i64} {
  func.func @fedformer_fused_kernel(%arg0: i32, %arg1: memref<1x128x8xf32, #tpu.memory_space<vmem>>, %arg2: memref<8x32xf32, #tpu.memory_space<vmem>>, %arg3: memref<128x32xf32, #tpu.memory_space<vmem>>, %arg4: memref<2x32x32xf32, #tpu.memory_space<vmem>>, %arg5: memref<2x1x32xf32, #tpu.memory_space<vmem>>, %arg6: memref<2x512x512xbf16, #tpu.memory_space<vmem>>, %arg7: memref<2x32x32xf32, #tpu.memory_space<vmem>>, %arg8: memref<2x32x32xf32, #tpu.memory_space<vmem>>, %arg9: memref<32x32xf32, #tpu.memory_space<vmem>>, %arg10: memref<1x32xf32, #tpu.memory_space<vmem>>, %arg11: memref<32x128xf32, #tpu.memory_space<vmem>>, %arg12: memref<1x128xf32, #tpu.memory_space<vmem>>, %arg13: memref<1x8x128xf32, #tpu.memory_space<vmem>>, %arg14: memref<128x32xf32, #tpu.memory_space<vmem>>, %arg15: memref<8x512xf32, #tpu.memory_space<vmem>>) attributes {dimension_semantics = [#tpu.dimension_semantics<parallel>], iteration_bounds = array<i64: 1>, scalar_prefetch = 0 : i64, scratch_operands = 2 : i64, tpu.core_type = #tpu.core_type<tc>, window_params = [{transform_indices = @transform_0, window_bounds = array<i64: 1, 128, 8>}, {pipeline_mode = #tpu.pipeline_mode<synchronous>, transform_indices = @transform_1, window_bounds = array<i64: 8, 32>}, {pipeline_mode = #tpu.pipeline_mode<synchronous>, transform_indices = @transform_2, window_bounds = array<i64: 128, 32>}, {pipeline_mode = #tpu.pipeline_mode<synchronous>, transform_indices = @transform_3, window_bounds = array<i64: 2, 32, 32>}, {pipeline_mode = #tpu.pipeline_mode<synchronous>, transform_indices = @transform_4, window_bounds = array<i64: 2, 1, 32>}, {pipeline_mode = #tpu.pipeline_mode<synchronous>, transform_indices = @transform_5, window_bounds = array<i64: 2, 512, 512>}, {pipeline_mode = #tpu.pipeline_mode<synchronous>, transform_indices = @transform_6, window_bounds = array<i64: 2, 32, 32>}, {pipeline_mode = #tpu.pipeline_mode<synchronous>, transform_indices = @transform_7, window_bounds = array<i64: 2, 32, 32>}, {pipeline_mode = #tpu.pipeline_mode<synchronous>, transform_indices = @transform_8, window_bounds = array<i64: 32, 32>}, {pipeline_mode = #tpu.pipeline_mode<synchronous>, transform_indices = @transform_9, window_bounds = array<i64: 1, 32>}, {pipeline_mode = #tpu.pipeline_mode<synchronous>, transform_indices = @transform_10, window_bounds = array<i64: 32, 128>}, {pipeline_mode = #tpu.pipeline_mode<synchronous>, transform_indices = @transform_11, window_bounds = array<i64: 1, 128>}, {transform_indices = @transform_12, window_bounds = array<i64: 1, 8, 128>}]} {
    %c0 = arith.constant 0 : index
    %c0_0 = arith.constant 0 : index
    %c0_1 = arith.constant 0 : index
    %0 = vector.load %arg1[%c0, %c0_0, %c0_1] : memref<1x128x8xf32, #tpu.memory_space<vmem>>, vector<1x128x8xf32>
    %1 = vector.shape_cast %0 : vector<1x128x8xf32> to vector<128x8xf32>
    %c0_2 = arith.constant 0 : index
    %c0_3 = arith.constant 0 : index
    %2 = vector.load %arg2[%c0_2, %c0_3] : memref<8x32xf32, #tpu.memory_space<vmem>>, vector<8x32xf32>
    %cst = arith.constant dense<0.000000e+00> : vector<128x32xf32>
    %3 = tpu.matmul %1, %2, %cst {dimension_numbers = #tpu.dot_dimension_numbers<[1], [0], [0], [1], [0, 0, 1, 1], [], []>} : vector<128x8xf32>, vector<8x32xf32>, vector<128x32xf32> -> vector<128x32xf32>
    %c0_4 = arith.constant 0 : index
    %c0_5 = arith.constant 0 : index
    %4 = vector.load %arg3[%c0_4, %c0_5] : memref<128x32xf32, #tpu.memory_space<vmem>>, vector<128x32xf32>
    %5 = arith.addf %3, %4 : vector<128x32xf32>
    %c0_6 = arith.constant 0 : index
    %c0_7 = arith.constant 0 : index
    %c0_8 = arith.constant 0 : index
    %6 = vector.load %arg4[%c0_6, %c0_7, %c0_8] : memref<2x32x32xf32, #tpu.memory_space<vmem>>, vector<1x32x32xf32>
    %7 = vector.shape_cast %6 : vector<1x32x32xf32> to vector<32x32xf32>
    %cst_9 = arith.constant dense<0.000000e+00> : vector<128x32xf32>
    %8 = tpu.matmul %5, %7, %cst_9 {dimension_numbers = #tpu.dot_dimension_numbers<[1], [0], [0], [1], [0, 0, 1, 1], [], []>} : vector<128x32xf32>, vector<32x32xf32>, vector<128x32xf32> -> vector<128x32xf32>
    %c0_10 = arith.constant 0 : index
    %c0_11 = arith.constant 0 : index
    %c0_12 = arith.constant 0 : index
    %9 = vector.load %arg5[%c0_10, %c0_11, %c0_12] : memref<2x1x32xf32, #tpu.memory_space<vmem>>, vector<1x1x32xf32>
    %10 = vector.shape_cast %9 : vector<1x1x32xf32> to vector<1x32xf32>
    %11 = vector.broadcast %10 : vector<1x32xf32> to vector<128x32xf32>
    %12 = arith.addf %8, %11 : vector<128x32xf32>
    %c0_13 = arith.constant 0 : index
    %c0_14 = arith.constant 0 : index
    %13 = vector.load %arg14[%c0_13, %c0_14] : memref<128x32xf32, #tpu.memory_space<vmem>>, vector<128x32xf32>
    tpu.vector_store %arg14[%c0_13, %c0_14], %12 {strides = array<i32>} : memref<128x32xf32, #tpu.memory_space<vmem>>, vector<128x32xf32>,
    %c0_15 = arith.constant 0 : index
    %c0_16 = arith.constant 0 : index
    %14 = vector.load %arg14[%c0_15, %c0_16] : memref<128x32xf32, #tpu.memory_space<vmem>>, vector<8x32xf32>
    %c0_17 = arith.constant 0 : index
    %c0_18 = arith.constant 0 : index
    %15 = vector.load %arg15[%c0_17, %c0_18] : memref<8x512xf32, #tpu.memory_space<vmem>>, vector<8x32xf32>
    tpu.vector_store %arg15[%c0_17, %c0_18], %14 {strides = array<i32>} : memref<8x512xf32, #tpu.memory_space<vmem>>, vector<8x32xf32>,
    %c8 = arith.constant 8 : index
    %c0_19 = arith.constant 0 : index
    %16 = vector.load %arg14[%c8, %c0_19] : memref<128x32xf32, #tpu.memory_space<vmem>>, vector<8x32xf32>
    %c0_20 = arith.constant 0 : index
    %c32 = arith.constant 32 : index
    %17 = vector.load %arg15[%c0_20, %c32] : memref<8x512xf32, #tpu.memory_space<vmem>>, vector<8x32xf32>
    tpu.vector_store %arg15[%c0_20, %c32], %16 {strides = array<i32>} : memref<8x512xf32, #tpu.memory_space<vmem>>, vector<8x32xf32>,
    %c16 = arith.constant 16 : index
    %c0_21 = arith.constant 0 : index
    %18 = vector.load %arg14[%c16, %c0_21] : memref<128x32xf32, #tpu.memory_space<vmem>>, vector<8x32xf32>
    %c0_22 = arith.constant 0 : index
    %c64 = arith.constant 64 : index
    %19 = vector.load %arg15[%c0_22, %c64] : memref<8x512xf32, #tpu.memory_space<vmem>>, vector<8x32xf32>
    tpu.vector_store %arg15[%c0_22, %c64], %18 {strides = array<i32>} : memref<8x512xf32, #tpu.memory_space<vmem>>, vector<8x32xf32>,
    %c24 = arith.constant 24 : index
    %c0_23 = arith.constant 0 : index
    %20 = vector.load %arg14[%c24, %c0_23] : memref<128x32xf32, #tpu.memory_space<vmem>>, vector<8x32xf32>
    %c0_24 = arith.constant 0 : index
    %c96 = arith.constant 96 : index
    %21 = vector.load %arg15[%c0_24, %c96] : memref<8x512xf32, #tpu.memory_space<vmem>>, vector<8x32xf32>
    tpu.vector_store %arg15[%c0_24, %c96], %20 {strides = array<i32>} : memref<8x512xf32, #tpu.memory_space<vmem>>, vector<8x32xf32>,
    %c32_25 = arith.constant 32 : index
    %c0_26 = arith.constant 0 : index
    %22 = vector.load %arg14[%c32_25, %c0_26] : memref<128x32xf32, #tpu.memory_space<vmem>>, vector<8x32xf32>
    %c0_27 = arith.constant 0 : index
    %c128 = arith.constant 128 : index
    %23 = vector.load %arg15[%c0_27, %c128] : memref<8x512xf32, #tpu.memory_space<vmem>>, vector<8x32xf32>
    tpu.vector_store %arg15[%c0_27, %c128], %22 {strides = array<i32>} : memref<8x512xf32, #tpu.memory_space<vmem>>, vector<8x32xf32>,
    %c40 = arith.constant 40 : index
    %c0_28 = arith.constant 0 : index
    %24 = vector.load %arg14[%c40, %c0_28] : memref<128x32xf32, #tpu.memory_space<vmem>>, vector<8x32xf32>
    %c0_29 = arith.constant 0 : index
    %c160 = arith.constant 160 : index
    %25 = vector.load %arg15[%c0_29, %c160] : memref<8x512xf32, #tpu.memory_space<vmem>>, vector<8x32xf32>
    tpu.vector_store %arg15[%c0_29, %c160], %24 {strides = array<i32>} : memref<8x512xf32, #tpu.memory_space<vmem>>, vector<8x32xf32>,
    %c48 = arith.constant 48 : index
    %c0_30 = arith.constant 0 : index
    %26 = vector.load %arg14[%c48, %c0_30] : memref<128x32xf32, #tpu.memory_space<vmem>>, vector<8x32xf32>
    %c0_31 = arith.constant 0 : index
    %c192 = arith.constant 192 : index
    %27 = vector.load %arg15[%c0_31, %c192] : memref<8x512xf32, #tpu.memory_space<vmem>>, vector<8x32xf32>
    tpu.vector_store %arg15[%c0_31, %c192], %26 {strides = array<i32>} : memref<8x512xf32, #tpu.memory_space<vmem>>, vector<8x32xf32>,
    %c56 = arith.constant 56 : index
    %c0_32 = arith.constant 0 : index
    %28 = vector.load %arg14[%c56, %c0_32] : memref<128x32xf32, #tpu.memory_space<vmem>>, vector<8x32xf32>
    %c0_33 = arith.constant 0 : index
    %c224 = arith.constant 224 : index
    %29 = vector.load %arg15[%c0_33, %c224] : memref<8x512xf32, #tpu.memory_space<vmem>>, vector<8x32xf32>
    tpu.vector_store %arg15[%c0_33, %c224], %28 {strides = array<i32>} : memref<8x512xf32, #tpu.memory_space<vmem>>, vector<8x32xf32>,
    %c64_34 = arith.constant 64 : index
    %c0_35 = arith.constant 0 : index
    %30 = vector.load %arg14[%c64_34, %c0_35] : memref<128x32xf32, #tpu.memory_space<vmem>>, vector<8x32xf32>
    %c0_36 = arith.constant 0 : index
    %c256 = arith.constant 256 : index
    %31 = vector.load %arg15[%c0_36, %c256] : memref<8x512xf32, #tpu.memory_space<vmem>>, vector<8x32xf32>
    tpu.vector_store %arg15[%c0_36, %c256], %30 {strides = array<i32>} : memref<8x512xf32, #tpu.memory_space<vmem>>, vector<8x32xf32>,
    %c72 = arith.constant 72 : index
    %c0_37 = arith.constant 0 : index
    %32 = vector.load %arg14[%c72, %c0_37] : memref<128x32xf32, #tpu.memory_space<vmem>>, vector<8x32xf32>
    %c0_38 = arith.constant 0 : index
    %c288 = arith.constant 288 : index
    %33 = vector.load %arg15[%c0_38, %c288] : memref<8x512xf32, #tpu.memory_space<vmem>>, vector<8x32xf32>
    tpu.vector_store %arg15[%c0_38, %c288], %32 {strides = array<i32>} : memref<8x512xf32, #tpu.memory_space<vmem>>, vector<8x32xf32>,
    %c80 = arith.constant 80 : index
    %c0_39 = arith.constant 0 : index
    %34 = vector.load %arg14[%c80, %c0_39] : memref<128x32xf32, #tpu.memory_space<vmem>>, vector<8x32xf32>
    %c0_40 = arith.constant 0 : index
    %c320 = arith.constant 320 : index
    %35 = vector.load %arg15[%c0_40, %c320] : memref<8x512xf32, #tpu.memory_space<vmem>>, vector<8x32xf32>
    tpu.vector_store %arg15[%c0_40, %c320], %34 {strides = array<i32>} : memref<8x512xf32, #tpu.memory_space<vmem>>, vector<8x32xf32>,
    %c88 = arith.constant 88 : index
    %c0_41 = arith.constant 0 : index
    %36 = vector.load %arg14[%c88, %c0_41] : memref<128x32xf32, #tpu.memory_space<vmem>>, vector<8x32xf32>
    %c0_42 = arith.constant 0 : index
    %c352 = arith.constant 352 : index
    %37 = vector.load %arg15[%c0_42, %c352] : memref<8x512xf32, #tpu.memory_space<vmem>>, vector<8x32xf32>
    tpu.vector_store %arg15[%c0_42, %c352], %36 {strides = array<i32>} : memref<8x512xf32, #tpu.memory_space<vmem>>, vector<8x32xf32>,
    %c96_43 = arith.constant 96 : index
    %c0_44 = arith.constant 0 : index
    %38 = vector.load %arg14[%c96_43, %c0_44] : memref<128x32xf32, #tpu.memory_space<vmem>>, vector<8x32xf32>
    %c0_45 = arith.constant 0 : index
    %c384 = arith.constant 384 : index
    %39 = vector.load %arg15[%c0_45, %c384] : memref<8x512xf32, #tpu.memory_space<vmem>>, vector<8x32xf32>
    tpu.vector_store %arg15[%c0_45, %c384], %38 {strides = array<i32>} : memref<8x512xf32, #tpu.memory_space<vmem>>, vector<8x32xf32>,
    %c104 = arith.constant 104 : index
    %c0_46 = arith.constant 0 : index
    %40 = vector.load %arg14[%c104, %c0_46] : memref<128x32xf32, #tpu.memory_space<vmem>>, vector<8x32xf32>
    %c0_47 = arith.constant 0 : index
    %c416 = arith.constant 416 : index
    %41 = vector.load %arg15[%c0_47, %c416] : memref<8x512xf32, #tpu.memory_space<vmem>>, vector<8x32xf32>
    tpu.vector_store %arg15[%c0_47, %c416], %40 {strides = array<i32>} : memref<8x512xf32, #tpu.memory_space<vmem>>, vector<8x32xf32>,
    %c112 = arith.constant 112 : index
    %c0_48 = arith.constant 0 : index
    %42 = vector.load %arg14[%c112, %c0_48] : memref<128x32xf32, #tpu.memory_space<vmem>>, vector<8x32xf32>
    %c0_49 = arith.constant 0 : index
    %c448 = arith.constant 448 : index
    %43 = vector.load %arg15[%c0_49, %c448] : memref<8x512xf32, #tpu.memory_space<vmem>>, vector<8x32xf32>
    tpu.vector_store %arg15[%c0_49, %c448], %42 {strides = array<i32>} : memref<8x512xf32, #tpu.memory_space<vmem>>, vector<8x32xf32>,
    %c120 = arith.constant 120 : index
    %c0_50 = arith.constant 0 : index
    %44 = vector.load %arg14[%c120, %c0_50] : memref<128x32xf32, #tpu.memory_space<vmem>>, vector<8x32xf32>
    %c0_51 = arith.constant 0 : index
    %c480 = arith.constant 480 : index
    %45 = vector.load %arg15[%c0_51, %c480] : memref<8x512xf32, #tpu.memory_space<vmem>>, vector<8x32xf32>
    tpu.vector_store %arg15[%c0_51, %c480], %44 {strides = array<i32>} : memref<8x512xf32, #tpu.memory_space<vmem>>, vector<8x32xf32>,
    %c0_52 = arith.constant 0 : index
    %c0_53 = arith.constant 0 : index
    %46 = vector.load %arg15[%c0_52, %c0_53] : memref<8x512xf32, #tpu.memory_space<vmem>>, vector<8x512xf32>
    %47 = arith.truncf %46 : vector<8x512xf32> to vector<8x512xbf16>
    %c0_54 = arith.constant 0 : index
    %c0_55 = arith.constant 0 : index
    %c0_56 = arith.constant 0 : index
    %48 = vector.load %arg6[%c0_54, %c0_55, %c0_56] : memref<2x512x512xbf16, #tpu.memory_space<vmem>>, vector<1x512x512xbf16>
    %49 = vector.shape_cast %48 : vector<1x512x512xbf16> to vector<512x512xbf16>
    %cst_57 = arith.constant dense<0.000000e+00> : vector<8x512xf32>
    %50 = tpu.matmul %47, %49, %cst_57 {dimension_numbers = #tpu.dot_dimension_numbers<[1], [0], [0], [1], [0, 0, 1, 1], [], []>} : vector<8x512xbf16>, vector<512x512xbf16>, vector<8x512xf32> -> vector<8x512xf32>
    %c0_58 = arith.constant 0 : index
    %c0_59 = arith.constant 0 : index
    %51 = vector.load %arg15[%c0_58, %c0_59] : memref<8x512xf32, #tpu.memory_space<vmem>>, vector<8x512xf32>
    tpu.vector_store %arg15[%c0_58, %c0_59], %50 {strides = array<i32>} : memref<8x512xf32, #tpu.memory_space<vmem>>, vector<8x512xf32>,
    %c0_60 = arith.constant 0 : index
    %c0_61 = arith.constant 0 : index
    %52 = vector.load %arg15[%c0_60, %c0_61] : memref<8x512xf32, #tpu.memory_space<vmem>>, vector<8x32xf32>
    %c0_62 = arith.constant 0 : index
    %c0_63 = arith.constant 0 : index
    %53 = vector.load %arg14[%c0_62, %c0_63] : memref<128x32xf32, #tpu.memory_space<vmem>>, vector<8x32xf32>
    tpu.vector_store %arg14[%c0_62, %c0_63], %52 {strides = array<i32>} : memref<128x32xf32, #tpu.memory_space<vmem>>, vector<8x32xf32>,
    %c0_64 = arith.constant 0 : index
    %c32_65 = arith.constant 32 : index
    %54 = vector.load %arg15[%c0_64, %c32_65] : memref<8x512xf32, #tpu.memory_space<vmem>>, vector<8x32xf32>
    %c8_66 = arith.constant 8 : index
    %c0_67 = arith.constant 0 : index
    %55 = vector.load %arg14[%c8_66, %c0_67] : memref<128x32xf32, #tpu.memory_space<vmem>>, vector<8x32xf32>
    tpu.vector_store %arg14[%c8_66, %c0_67], %54 {strides = array<i32>} : memref<128x32xf32, #tpu.memory_space<vmem>>, vector<8x32xf32>,
    %c0_68 = arith.constant 0 : index
    %c64_69 = arith.constant 64 : index
    %56 = vector.load %arg15[%c0_68, %c64_69] : memref<8x512xf32, #tpu.memory_space<vmem>>, vector<8x32xf32>
    %c16_70 = arith.constant 16 : index
    %c0_71 = arith.constant 0 : index
    %57 = vector.load %arg14[%c16_70, %c0_71] : memref<128x32xf32, #tpu.memory_space<vmem>>, vector<8x32xf32>
    tpu.vector_store %arg14[%c16_70, %c0_71], %56 {strides = array<i32>} : memref<128x32xf32, #tpu.memory_space<vmem>>, vector<8x32xf32>,
    %c0_72 = arith.constant 0 : index
    %c96_73 = arith.constant 96 : index
    %58 = vector.load %arg15[%c0_72, %c96_73] : memref<8x512xf32, #tpu.memory_space<vmem>>, vector<8x32xf32>
    %c24_74 = arith.constant 24 : index
    %c0_75 = arith.constant 0 : index
    %59 = vector.load %arg14[%c24_74, %c0_75] : memref<128x32xf32, #tpu.memory_space<vmem>>, vector<8x32xf32>
    tpu.vector_store %arg14[%c24_74, %c0_75], %58 {strides = array<i32>} : memref<128x32xf32, #tpu.memory_space<vmem>>, vector<8x32xf32>,
    %c0_76 = arith.constant 0 : index
    %c128_77 = arith.constant 128 : index
    %60 = vector.load %arg15[%c0_76, %c128_77] : memref<8x512xf32, #tpu.memory_space<vmem>>, vector<8x32xf32>
    %c32_78 = arith.constant 32 : index
    %c0_79 = arith.constant 0 : index
    %61 = vector.load %arg14[%c32_78, %c0_79] : memref<128x32xf32, #tpu.memory_space<vmem>>, vector<8x32xf32>
    tpu.vector_store %arg14[%c32_78, %c0_79], %60 {strides = array<i32>} : memref<128x32xf32, #tpu.memory_space<vmem>>, vector<8x32xf32>,
    %c0_80 = arith.constant 0 : index
    %c160_81 = arith.constant 160 : index
    %62 = vector.load %arg15[%c0_80, %c160_81] : memref<8x512xf32, #tpu.memory_space<vmem>>, vector<8x32xf32>
    %c40_82 = arith.constant 40 : index
    %c0_83 = arith.constant 0 : index
    %63 = vector.load %arg14[%c40_82, %c0_83] : memref<128x32xf32, #tpu.memory_space<vmem>>, vector<8x32xf32>
    tpu.vector_store %arg14[%c40_82, %c0_83], %62 {strides = array<i32>} : memref<128x32xf32, #tpu.memory_space<vmem>>, vector<8x32xf32>,
    %c0_84 = arith.constant 0 : index
    %c192_85 = arith.constant 192 : index
    %64 = vector.load %arg15[%c0_84, %c192_85] : memref<8x512xf32, #tpu.memory_space<vmem>>, vector<8x32xf32>
    %c48_86 = arith.constant 48 : index
    %c0_87 = arith.constant 0 : index
    %65 = vector.load %arg14[%c48_86, %c0_87] : memref<128x32xf32, #tpu.memory_space<vmem>>, vector<8x32xf32>
    tpu.vector_store %arg14[%c48_86, %c0_87], %64 {strides = array<i32>} : memref<128x32xf32, #tpu.memory_space<vmem>>, vector<8x32xf32>,
    %c0_88 = arith.constant 0 : index
    %c224_89 = arith.constant 224 : index
    %66 = vector.load %arg15[%c0_88, %c224_89] : memref<8x512xf32, #tpu.memory_space<vmem>>, vector<8x32xf32>
    %c56_90 = arith.constant 56 : index
    %c0_91 = arith.constant 0 : index
    %67 = vector.load %arg14[%c56_90, %c0_91] : memref<128x32xf32, #tpu.memory_space<vmem>>, vector<8x32xf32>
    tpu.vector_store %arg14[%c56_90, %c0_91], %66 {strides = array<i32>} : memref<128x32xf32, #tpu.memory_space<vmem>>, vector<8x32xf32>,
    %c0_92 = arith.constant 0 : index
    %c256_93 = arith.constant 256 : index
    %68 = vector.load %arg15[%c0_92, %c256_93] : memref<8x512xf32, #tpu.memory_space<vmem>>, vector<8x32xf32>
    %c64_94 = arith.constant 64 : index
    %c0_95 = arith.constant 0 : index
    %69 = vector.load %arg14[%c64_94, %c0_95] : memref<128x32xf32, #tpu.memory_space<vmem>>, vector<8x32xf32>
    tpu.vector_store %arg14[%c64_94, %c0_95], %68 {strides = array<i32>} : memref<128x32xf32, #tpu.memory_space<vmem>>, vector<8x32xf32>,
    %c0_96 = arith.constant 0 : index
    %c288_97 = arith.constant 288 : index
    %70 = vector.load %arg15[%c0_96, %c288_97] : memref<8x512xf32, #tpu.memory_space<vmem>>, vector<8x32xf32>
    %c72_98 = arith.constant 72 : index
    %c0_99 = arith.constant 0 : index
    %71 = vector.load %arg14[%c72_98, %c0_99] : memref<128x32xf32, #tpu.memory_space<vmem>>, vector<8x32xf32>
    tpu.vector_store %arg14[%c72_98, %c0_99], %70 {strides = array<i32>} : memref<128x32xf32, #tpu.memory_space<vmem>>, vector<8x32xf32>,
    %c0_100 = arith.constant 0 : index
    %c320_101 = arith.constant 320 : index
    %72 = vector.load %arg15[%c0_100, %c320_101] : memref<8x512xf32, #tpu.memory_space<vmem>>, vector<8x32xf32>
    %c80_102 = arith.constant 80 : index
    %c0_103 = arith.constant 0 : index
    %73 = vector.load %arg14[%c80_102, %c0_103] : memref<128x32xf32, #tpu.memory_space<vmem>>, vector<8x32xf32>
    tpu.vector_store %arg14[%c80_102, %c0_103], %72 {strides = array<i32>} : memref<128x32xf32, #tpu.memory_space<vmem>>, vector<8x32xf32>,
    %c0_104 = arith.constant 0 : index
    %c352_105 = arith.constant 352 : index
    %74 = vector.load %arg15[%c0_104, %c352_105] : memref<8x512xf32, #tpu.memory_space<vmem>>, vector<8x32xf32>
    %c88_106 = arith.constant 88 : index
    %c0_107 = arith.constant 0 : index
    %75 = vector.load %arg14[%c88_106, %c0_107] : memref<128x32xf32, #tpu.memory_space<vmem>>, vector<8x32xf32>
    tpu.vector_store %arg14[%c88_106, %c0_107], %74 {strides = array<i32>} : memref<128x32xf32, #tpu.memory_space<vmem>>, vector<8x32xf32>,
    %c0_108 = arith.constant 0 : index
    %c384_109 = arith.constant 384 : index
    %76 = vector.load %arg15[%c0_108, %c384_109] : memref<8x512xf32, #tpu.memory_space<vmem>>, vector<8x32xf32>
    %c96_110 = arith.constant 96 : index
    %c0_111 = arith.constant 0 : index
    %77 = vector.load %arg14[%c96_110, %c0_111] : memref<128x32xf32, #tpu.memory_space<vmem>>, vector<8x32xf32>
    tpu.vector_store %arg14[%c96_110, %c0_111], %76 {strides = array<i32>} : memref<128x32xf32, #tpu.memory_space<vmem>>, vector<8x32xf32>,
    %c0_112 = arith.constant 0 : index
    %c416_113 = arith.constant 416 : index
    %78 = vector.load %arg15[%c0_112, %c416_113] : memref<8x512xf32, #tpu.memory_space<vmem>>, vector<8x32xf32>
    %c104_114 = arith.constant 104 : index
    %c0_115 = arith.constant 0 : index
    %79 = vector.load %arg14[%c104_114, %c0_115] : memref<128x32xf32, #tpu.memory_space<vmem>>, vector<8x32xf32>
    tpu.vector_store %arg14[%c104_114, %c0_115], %78 {strides = array<i32>} : memref<128x32xf32, #tpu.memory_space<vmem>>, vector<8x32xf32>,
    %c0_116 = arith.constant 0 : index
    %c448_117 = arith.constant 448 : index
    %80 = vector.load %arg15[%c0_116, %c448_117] : memref<8x512xf32, #tpu.memory_space<vmem>>, vector<8x32xf32>
    %c112_118 = arith.constant 112 : index
    %c0_119 = arith.constant 0 : index
    %81 = vector.load %arg14[%c112_118, %c0_119] : memref<128x32xf32, #tpu.memory_space<vmem>>, vector<8x32xf32>
    tpu.vector_store %arg14[%c112_118, %c0_119], %80 {strides = array<i32>} : memref<128x32xf32, #tpu.memory_space<vmem>>, vector<8x32xf32>,
    %c0_120 = arith.constant 0 : index
    %c480_121 = arith.constant 480 : index
    %82 = vector.load %arg15[%c0_120, %c480_121] : memref<8x512xf32, #tpu.memory_space<vmem>>, vector<8x32xf32>
    %c120_122 = arith.constant 120 : index
    %c0_123 = arith.constant 0 : index
    %83 = vector.load %arg14[%c120_122, %c0_123] : memref<128x32xf32, #tpu.memory_space<vmem>>, vector<8x32xf32>
    tpu.vector_store %arg14[%c120_122, %c0_123], %82 {strides = array<i32>} : memref<128x32xf32, #tpu.memory_space<vmem>>, vector<8x32xf32>,
    %c0_124 = arith.constant 0 : index
    %c0_125 = arith.constant 0 : index
    %84 = vector.load %arg14[%c0_124, %c0_125] : memref<128x32xf32, #tpu.memory_space<vmem>>, vector<128x32xf32>
    %85 = arith.addf %5, %84 : vector<128x32xf32>
    %c0_126 = arith.constant 0 : index
    %c0_127 = arith.constant 0 : index
    %c0_128 = arith.constant 0 : index
    %86 = vector.load %arg7[%c0_126, %c0_127, %c0_128] : memref<2x32x32xf32, #tpu.memory_space<vmem>>, vector<1x32x32xf32>
    %87 = vector.shape_cast %86 : vector<1x32x32xf32> to vector<32x32xf32>
    %cst_129 = arith.constant dense<0.000000e+00> : vector<128x32xf32>
    %88 = tpu.matmul %85, %87, %cst_129 {dimension_numbers = #tpu.dot_dimension_numbers<[1], [0], [0], [1], [0, 0, 1, 1], [], []>} : vector<128x32xf32>, vector<32x32xf32>, vector<128x32xf32> -> vector<128x32xf32>
    %cst_130 = arith.constant 0.000000e+00 : f32
    %89 = vector.broadcast %cst_130 : f32 to vector<128x32xf32>
    %90 = arith.maximumf %88, %89 : vector<128x32xf32>
    %c0_131 = arith.constant 0 : index
    %c0_132 = arith.constant 0 : index
    %c0_133 = arith.constant 0 : index
    %91 = vector.load %arg8[%c0_131, %c0_132, %c0_133] : memref<2x32x32xf32, #tpu.memory_space<vmem>>, vector<1x32x32xf32>
    %92 = vector.shape_cast %91 : vector<1x32x32xf32> to vector<32x32xf32>
    %cst_134 = arith.constant dense<0.000000e+00> : vector<128x32xf32>
    %93 = tpu.matmul %90, %92, %cst_134 {dimension_numbers = #tpu.dot_dimension_numbers<[1], [0], [0], [1], [0, 0, 1, 1], [], []>} : vector<128x32xf32>, vector<32x32xf32>, vector<128x32xf32> -> vector<128x32xf32>
    %94 = arith.addf %85, %93 : vector<128x32xf32>
    %c1 = arith.constant 1 : index
    %c0_135 = arith.constant 0 : index
    %c0_136 = arith.constant 0 : index
    %95 = vector.load %arg4[%c1, %c0_135, %c0_136] : memref<2x32x32xf32, #tpu.memory_space<vmem>>, vector<1x32x32xf32>
    %96 = vector.shape_cast %95 : vector<1x32x32xf32> to vector<32x32xf32>
    %cst_137 = arith.constant dense<0.000000e+00> : vector<128x32xf32>
    %97 = tpu.matmul %94, %96, %cst_137 {dimension_numbers = #tpu.dot_dimension_numbers<[1], [0], [0], [1], [0, 0, 1, 1], [], []>} : vector<128x32xf32>, vector<32x32xf32>, vector<128x32xf32> -> vector<128x32xf32>
    %c1_138 = arith.constant 1 : index
    %c0_139 = arith.constant 0 : index
    %c0_140 = arith.constant 0 : index
    %98 = vector.load %arg5[%c1_138, %c0_139, %c0_140] : memref<2x1x32xf32, #tpu.memory_space<vmem>>, vector<1x1x32xf32>
    %99 = vector.shape_cast %98 : vector<1x1x32xf32> to vector<1x32xf32>
    %100 = vector.broadcast %99 : vector<1x32xf32> to vector<128x32xf32>
    %101 = arith.addf %97, %100 : vector<128x32xf32>
    %c0_141 = arith.constant 0 : index
    %c0_142 = arith.constant 0 : index
    %102 = vector.load %arg14[%c0_141, %c0_142] : memref<128x32xf32, #tpu.memory_space<vmem>>, vector<128x32xf32>
    tpu.vector_store %arg14[%c0_141, %c0_142], %101 {strides = array<i32>} : memref<128x32xf32, #tpu.memory_space<vmem>>, vector<128x32xf32>,
    %c0_143 = arith.constant 0 : index
    %c0_144 = arith.constant 0 : index
    %103 = vector.load %arg14[%c0_143, %c0_144] : memref<128x32xf32, #tpu.memory_space<vmem>>, vector<8x32xf32>
    %c0_145 = arith.constant 0 : index
    %c0_146 = arith.constant 0 : index
    %104 = vector.load %arg15[%c0_145, %c0_146] : memref<8x512xf32, #tpu.memory_space<vmem>>, vector<8x32xf32>
    tpu.vector_store %arg15[%c0_145, %c0_146], %103 {strides = array<i32>} : memref<8x512xf32, #tpu.memory_space<vmem>>, vector<8x32xf32>,
    %c8_147 = arith.constant 8 : index
    %c0_148 = arith.constant 0 : index
    %105 = vector.load %arg14[%c8_147, %c0_148] : memref<128x32xf32, #tpu.memory_space<vmem>>, vector<8x32xf32>
    %c0_149 = arith.constant 0 : index
    %c32_150 = arith.constant 32 : index
    %106 = vector.load %arg15[%c0_149, %c32_150] : memref<8x512xf32, #tpu.memory_space<vmem>>, vector<8x32xf32>
    tpu.vector_store %arg15[%c0_149, %c32_150], %105 {strides = array<i32>} : memref<8x512xf32, #tpu.memory_space<vmem>>, vector<8x32xf32>,
    %c16_151 = arith.constant 16 : index
    %c0_152 = arith.constant 0 : index
    %107 = vector.load %arg14[%c16_151, %c0_152] : memref<128x32xf32, #tpu.memory_space<vmem>>, vector<8x32xf32>
    %c0_153 = arith.constant 0 : index
    %c64_154 = arith.constant 64 : index
    %108 = vector.load %arg15[%c0_153, %c64_154] : memref<8x512xf32, #tpu.memory_space<vmem>>, vector<8x32xf32>
    tpu.vector_store %arg15[%c0_153, %c64_154], %107 {strides = array<i32>} : memref<8x512xf32, #tpu.memory_space<vmem>>, vector<8x32xf32>,
    %c24_155 = arith.constant 24 : index
    %c0_156 = arith.constant 0 : index
    %109 = vector.load %arg14[%c24_155, %c0_156] : memref<128x32xf32, #tpu.memory_space<vmem>>, vector<8x32xf32>
    %c0_157 = arith.constant 0 : index
    %c96_158 = arith.constant 96 : index
    %110 = vector.load %arg15[%c0_157, %c96_158] : memref<8x512xf32, #tpu.memory_space<vmem>>, vector<8x32xf32>
    tpu.vector_store %arg15[%c0_157, %c96_158], %109 {strides = array<i32>} : memref<8x512xf32, #tpu.memory_space<vmem>>, vector<8x32xf32>,
    %c32_159 = arith.constant 32 : index
    %c0_160 = arith.constant 0 : index
    %111 = vector.load %arg14[%c32_159, %c0_160] : memref<128x32xf32, #tpu.memory_space<vmem>>, vector<8x32xf32>
    %c0_161 = arith.constant 0 : index
    %c128_162 = arith.constant 128 : index
    %112 = vector.load %arg15[%c0_161, %c128_162] : memref<8x512xf32, #tpu.memory_space<vmem>>, vector<8x32xf32>
    tpu.vector_store %arg15[%c0_161, %c128_162], %111 {strides = array<i32>} : memref<8x512xf32, #tpu.memory_space<vmem>>, vector<8x32xf32>,
    %c40_163 = arith.constant 40 : index
    %c0_164 = arith.constant 0 : index
    %113 = vector.load %arg14[%c40_163, %c0_164] : memref<128x32xf32, #tpu.memory_space<vmem>>, vector<8x32xf32>
    %c0_165 = arith.constant 0 : index
    %c160_166 = arith.constant 160 : index
    %114 = vector.load %arg15[%c0_165, %c160_166] : memref<8x512xf32, #tpu.memory_space<vmem>>, vector<8x32xf32>
    tpu.vector_store %arg15[%c0_165, %c160_166], %113 {strides = array<i32>} : memref<8x512xf32, #tpu.memory_space<vmem>>, vector<8x32xf32>,
    %c48_167 = arith.constant 48 : index
    %c0_168 = arith.constant 0 : index
    %115 = vector.load %arg14[%c48_167, %c0_168] : memref<128x32xf32, #tpu.memory_space<vmem>>, vector<8x32xf32>
    %c0_169 = arith.constant 0 : index
    %c192_170 = arith.constant 192 : index
    %116 = vector.load %arg15[%c0_169, %c192_170] : memref<8x512xf32, #tpu.memory_space<vmem>>, vector<8x32xf32>
    tpu.vector_store %arg15[%c0_169, %c192_170], %115 {strides = array<i32>} : memref<8x512xf32, #tpu.memory_space<vmem>>, vector<8x32xf32>,
    %c56_171 = arith.constant 56 : index
    %c0_172 = arith.constant 0 : index
    %117 = vector.load %arg14[%c56_171, %c0_172] : memref<128x32xf32, #tpu.memory_space<vmem>>, vector<8x32xf32>
    %c0_173 = arith.constant 0 : index
    %c224_174 = arith.constant 224 : index
    %118 = vector.load %arg15[%c0_173, %c224_174] : memref<8x512xf32, #tpu.memory_space<vmem>>, vector<8x32xf32>
    tpu.vector_store %arg15[%c0_173, %c224_174], %117 {strides = array<i32>} : memref<8x512xf32, #tpu.memory_space<vmem>>, vector<8x32xf32>,
    %c64_175 = arith.constant 64 : index
    %c0_176 = arith.constant 0 : index
    %119 = vector.load %arg14[%c64_175, %c0_176] : memref<128x32xf32, #tpu.memory_space<vmem>>, vector<8x32xf32>
    %c0_177 = arith.constant 0 : index
    %c256_178 = arith.constant 256 : index
    %120 = vector.load %arg15[%c0_177, %c256_178] : memref<8x512xf32, #tpu.memory_space<vmem>>, vector<8x32xf32>
    tpu.vector_store %arg15[%c0_177, %c256_178], %119 {strides = array<i32>} : memref<8x512xf32, #tpu.memory_space<vmem>>, vector<8x32xf32>,
    %c72_179 = arith.constant 72 : index
    %c0_180 = arith.constant 0 : index
    %121 = vector.load %arg14[%c72_179, %c0_180] : memref<128x32xf32, #tpu.memory_space<vmem>>, vector<8x32xf32>
    %c0_181 = arith.constant 0 : index
    %c288_182 = arith.constant 288 : index
    %122 = vector.load %arg15[%c0_181, %c288_182] : memref<8x512xf32, #tpu.memory_space<vmem>>, vector<8x32xf32>
    tpu.vector_store %arg15[%c0_181, %c288_182], %121 {strides = array<i32>} : memref<8x512xf32, #tpu.memory_space<vmem>>, vector<8x32xf32>,
    %c80_183 = arith.constant 80 : index
    %c0_184 = arith.constant 0 : index
    %123 = vector.load %arg14[%c80_183, %c0_184] : memref<128x32xf32, #tpu.memory_space<vmem>>, vector<8x32xf32>
    %c0_185 = arith.constant 0 : index
    %c320_186 = arith.constant 320 : index
    %124 = vector.load %arg15[%c0_185, %c320_186] : memref<8x512xf32, #tpu.memory_space<vmem>>, vector<8x32xf32>
    tpu.vector_store %arg15[%c0_185, %c320_186], %123 {strides = array<i32>} : memref<8x512xf32, #tpu.memory_space<vmem>>, vector<8x32xf32>,
    %c88_187 = arith.constant 88 : index
    %c0_188 = arith.constant 0 : index
    %125 = vector.load %arg14[%c88_187, %c0_188] : memref<128x32xf32, #tpu.memory_space<vmem>>, vector<8x32xf32>
    %c0_189 = arith.constant 0 : index
    %c352_190 = arith.constant 352 : index
    %126 = vector.load %arg15[%c0_189, %c352_190] : memref<8x512xf32, #tpu.memory_space<vmem>>, vector<8x32xf32>
    tpu.vector_store %arg15[%c0_189, %c352_190], %125 {strides = array<i32>} : memref<8x512xf32, #tpu.memory_space<vmem>>, vector<8x32xf32>,
    %c96_191 = arith.constant 96 : index
    %c0_192 = arith.constant 0 : index
    %127 = vector.load %arg14[%c96_191, %c0_192] : memref<128x32xf32, #tpu.memory_space<vmem>>, vector<8x32xf32>
    %c0_193 = arith.constant 0 : index
    %c384_194 = arith.constant 384 : index
    %128 = vector.load %arg15[%c0_193, %c384_194] : memref<8x512xf32, #tpu.memory_space<vmem>>, vector<8x32xf32>
    tpu.vector_store %arg15[%c0_193, %c384_194], %127 {strides = array<i32>} : memref<8x512xf32, #tpu.memory_space<vmem>>, vector<8x32xf32>,
    %c104_195 = arith.constant 104 : index
    %c0_196 = arith.constant 0 : index
    %129 = vector.load %arg14[%c104_195, %c0_196] : memref<128x32xf32, #tpu.memory_space<vmem>>, vector<8x32xf32>
    %c0_197 = arith.constant 0 : index
    %c416_198 = arith.constant 416 : index
    %130 = vector.load %arg15[%c0_197, %c416_198] : memref<8x512xf32, #tpu.memory_space<vmem>>, vector<8x32xf32>
    tpu.vector_store %arg15[%c0_197, %c416_198], %129 {strides = array<i32>} : memref<8x512xf32, #tpu.memory_space<vmem>>, vector<8x32xf32>,
    %c112_199 = arith.constant 112 : index
    %c0_200 = arith.constant 0 : index
    %131 = vector.load %arg14[%c112_199, %c0_200] : memref<128x32xf32, #tpu.memory_space<vmem>>, vector<8x32xf32>
    %c0_201 = arith.constant 0 : index
    %c448_202 = arith.constant 448 : index
    %132 = vector.load %arg15[%c0_201, %c448_202] : memref<8x512xf32, #tpu.memory_space<vmem>>, vector<8x32xf32>
    tpu.vector_store %arg15[%c0_201, %c448_202], %131 {strides = array<i32>} : memref<8x512xf32, #tpu.memory_space<vmem>>, vector<8x32xf32>,
    %c120_203 = arith.constant 120 : index
    %c0_204 = arith.constant 0 : index
    %133 = vector.load %arg14[%c120_203, %c0_204] : memref<128x32xf32, #tpu.memory_space<vmem>>, vector<8x32xf32>
    %c0_205 = arith.constant 0 : index
    %c480_206 = arith.constant 480 : index
    %134 = vector.load %arg15[%c0_205, %c480_206] : memref<8x512xf32, #tpu.memory_space<vmem>>, vector<8x32xf32>
    tpu.vector_store %arg15[%c0_205, %c480_206], %133 {strides = array<i32>} : memref<8x512xf32, #tpu.memory_space<vmem>>, vector<8x32xf32>,
    %c0_207 = arith.constant 0 : index
    %c0_208 = arith.constant 0 : index
    %135 = vector.load %arg15[%c0_207, %c0_208] : memref<8x512xf32, #tpu.memory_space<vmem>>, vector<8x512xf32>
    %136 = arith.truncf %135 : vector<8x512xf32> to vector<8x512xbf16>
    %c1_209 = arith.constant 1 : index
    %c0_210 = arith.constant 0 : index
    %c0_211 = arith.constant 0 : index
    %137 = vector.load %arg6[%c1_209, %c0_210, %c0_211] : memref<2x512x512xbf16, #tpu.memory_space<vmem>>, vector<1x512x512xbf16>
    %138 = vector.shape_cast %137 : vector<1x512x512xbf16> to vector<512x512xbf16>
    %cst_212 = arith.constant dense<0.000000e+00> : vector<8x512xf32>
    %139 = tpu.matmul %136, %138, %cst_212 {dimension_numbers = #tpu.dot_dimension_numbers<[1], [0], [0], [1], [0, 0, 1, 1], [], []>} : vector<8x512xbf16>, vector<512x512xbf16>, vector<8x512xf32> -> vector<8x512xf32>
    %c0_213 = arith.constant 0 : index
    %c0_214 = arith.constant 0 : index
    %140 = vector.load %arg15[%c0_213, %c0_214] : memref<8x512xf32, #tpu.memory_space<vmem>>, vector<8x512xf32>
    tpu.vector_store %arg15[%c0_213, %c0_214], %139 {strides = array<i32>} : memref<8x512xf32, #tpu.memory_space<vmem>>, vector<8x512xf32>,
    %c0_215 = arith.constant 0 : index
    %c0_216 = arith.constant 0 : index
    %141 = vector.load %arg15[%c0_215, %c0_216] : memref<8x512xf32, #tpu.memory_space<vmem>>, vector<8x32xf32>
    %c0_217 = arith.constant 0 : index
    %c0_218 = arith.constant 0 : index
    %142 = vector.load %arg14[%c0_217, %c0_218] : memref<128x32xf32, #tpu.memory_space<vmem>>, vector<8x32xf32>
    tpu.vector_store %arg14[%c0_217, %c0_218], %141 {strides = array<i32>} : memref<128x32xf32, #tpu.memory_space<vmem>>, vector<8x32xf32>,
    %c0_219 = arith.constant 0 : index
    %c32_220 = arith.constant 32 : index
    %143 = vector.load %arg15[%c0_219, %c32_220] : memref<8x512xf32, #tpu.memory_space<vmem>>, vector<8x32xf32>
    %c8_221 = arith.constant 8 : index
    %c0_222 = arith.constant 0 : index
    %144 = vector.load %arg14[%c8_221, %c0_222] : memref<128x32xf32, #tpu.memory_space<vmem>>, vector<8x32xf32>
    tpu.vector_store %arg14[%c8_221, %c0_222], %143 {strides = array<i32>} : memref<128x32xf32, #tpu.memory_space<vmem>>, vector<8x32xf32>,
    %c0_223 = arith.constant 0 : index
    %c64_224 = arith.constant 64 : index
    %145 = vector.load %arg15[%c0_223, %c64_224] : memref<8x512xf32, #tpu.memory_space<vmem>>, vector<8x32xf32>
    %c16_225 = arith.constant 16 : index
    %c0_226 = arith.constant 0 : index
    %146 = vector.load %arg14[%c16_225, %c0_226] : memref<128x32xf32, #tpu.memory_space<vmem>>, vector<8x32xf32>
    tpu.vector_store %arg14[%c16_225, %c0_226], %145 {strides = array<i32>} : memref<128x32xf32, #tpu.memory_space<vmem>>, vector<8x32xf32>,
    %c0_227 = arith.constant 0 : index
    %c96_228 = arith.constant 96 : index
    %147 = vector.load %arg15[%c0_227, %c96_228] : memref<8x512xf32, #tpu.memory_space<vmem>>, vector<8x32xf32>
    %c24_229 = arith.constant 24 : index
    %c0_230 = arith.constant 0 : index
    %148 = vector.load %arg14[%c24_229, %c0_230] : memref<128x32xf32, #tpu.memory_space<vmem>>, vector<8x32xf32>
    tpu.vector_store %arg14[%c24_229, %c0_230], %147 {strides = array<i32>} : memref<128x32xf32, #tpu.memory_space<vmem>>, vector<8x32xf32>,
    %c0_231 = arith.constant 0 : index
    %c128_232 = arith.constant 128 : index
    %149 = vector.load %arg15[%c0_231, %c128_232] : memref<8x512xf32, #tpu.memory_space<vmem>>, vector<8x32xf32>
    %c32_233 = arith.constant 32 : index
    %c0_234 = arith.constant 0 : index
    %150 = vector.load %arg14[%c32_233, %c0_234] : memref<128x32xf32, #tpu.memory_space<vmem>>, vector<8x32xf32>
    tpu.vector_store %arg14[%c32_233, %c0_234], %149 {strides = array<i32>} : memref<128x32xf32, #tpu.memory_space<vmem>>, vector<8x32xf32>,
    %c0_235 = arith.constant 0 : index
    %c160_236 = arith.constant 160 : index
    %151 = vector.load %arg15[%c0_235, %c160_236] : memref<8x512xf32, #tpu.memory_space<vmem>>, vector<8x32xf32>
    %c40_237 = arith.constant 40 : index
    %c0_238 = arith.constant 0 : index
    %152 = vector.load %arg14[%c40_237, %c0_238] : memref<128x32xf32, #tpu.memory_space<vmem>>, vector<8x32xf32>
    tpu.vector_store %arg14[%c40_237, %c0_238], %151 {strides = array<i32>} : memref<128x32xf32, #tpu.memory_space<vmem>>, vector<8x32xf32>,
    %c0_239 = arith.constant 0 : index
    %c192_240 = arith.constant 192 : index
    %153 = vector.load %arg15[%c0_239, %c192_240] : memref<8x512xf32, #tpu.memory_space<vmem>>, vector<8x32xf32>
    %c48_241 = arith.constant 48 : index
    %c0_242 = arith.constant 0 : index
    %154 = vector.load %arg14[%c48_241, %c0_242] : memref<128x32xf32, #tpu.memory_space<vmem>>, vector<8x32xf32>
    tpu.vector_store %arg14[%c48_241, %c0_242], %153 {strides = array<i32>} : memref<128x32xf32, #tpu.memory_space<vmem>>, vector<8x32xf32>,
    %c0_243 = arith.constant 0 : index
    %c224_244 = arith.constant 224 : index
    %155 = vector.load %arg15[%c0_243, %c224_244] : memref<8x512xf32, #tpu.memory_space<vmem>>, vector<8x32xf32>
    %c56_245 = arith.constant 56 : index
    %c0_246 = arith.constant 0 : index
    %156 = vector.load %arg14[%c56_245, %c0_246] : memref<128x32xf32, #tpu.memory_space<vmem>>, vector<8x32xf32>
    tpu.vector_store %arg14[%c56_245, %c0_246], %155 {strides = array<i32>} : memref<128x32xf32, #tpu.memory_space<vmem>>, vector<8x32xf32>,
    %c0_247 = arith.constant 0 : index
    %c256_248 = arith.constant 256 : index
    %157 = vector.load %arg15[%c0_247, %c256_248] : memref<8x512xf32, #tpu.memory_space<vmem>>, vector<8x32xf32>
    %c64_249 = arith.constant 64 : index
    %c0_250 = arith.constant 0 : index
    %158 = vector.load %arg14[%c64_249, %c0_250] : memref<128x32xf32, #tpu.memory_space<vmem>>, vector<8x32xf32>
    tpu.vector_store %arg14[%c64_249, %c0_250], %157 {strides = array<i32>} : memref<128x32xf32, #tpu.memory_space<vmem>>, vector<8x32xf32>,
    %c0_251 = arith.constant 0 : index
    %c288_252 = arith.constant 288 : index
    %159 = vector.load %arg15[%c0_251, %c288_252] : memref<8x512xf32, #tpu.memory_space<vmem>>, vector<8x32xf32>
    %c72_253 = arith.constant 72 : index
    %c0_254 = arith.constant 0 : index
    %160 = vector.load %arg14[%c72_253, %c0_254] : memref<128x32xf32, #tpu.memory_space<vmem>>, vector<8x32xf32>
    tpu.vector_store %arg14[%c72_253, %c0_254], %159 {strides = array<i32>} : memref<128x32xf32, #tpu.memory_space<vmem>>, vector<8x32xf32>,
    %c0_255 = arith.constant 0 : index
    %c320_256 = arith.constant 320 : index
    %161 = vector.load %arg15[%c0_255, %c320_256] : memref<8x512xf32, #tpu.memory_space<vmem>>, vector<8x32xf32>
    %c80_257 = arith.constant 80 : index
    %c0_258 = arith.constant 0 : index
    %162 = vector.load %arg14[%c80_257, %c0_258] : memref<128x32xf32, #tpu.memory_space<vmem>>, vector<8x32xf32>
    tpu.vector_store %arg14[%c80_257, %c0_258], %161 {strides = array<i32>} : memref<128x32xf32, #tpu.memory_space<vmem>>, vector<8x32xf32>,
    %c0_259 = arith.constant 0 : index
    %c352_260 = arith.constant 352 : index
    %163 = vector.load %arg15[%c0_259, %c352_260] : memref<8x512xf32, #tpu.memory_space<vmem>>, vector<8x32xf32>
    %c88_261 = arith.constant 88 : index
    %c0_262 = arith.constant 0 : index
    %164 = vector.load %arg14[%c88_261, %c0_262] : memref<128x32xf32, #tpu.memory_space<vmem>>, vector<8x32xf32>
    tpu.vector_store %arg14[%c88_261, %c0_262], %163 {strides = array<i32>} : memref<128x32xf32, #tpu.memory_space<vmem>>, vector<8x32xf32>,
    %c0_263 = arith.constant 0 : index
    %c384_264 = arith.constant 384 : index
    %165 = vector.load %arg15[%c0_263, %c384_264] : memref<8x512xf32, #tpu.memory_space<vmem>>, vector<8x32xf32>
    %c96_265 = arith.constant 96 : index
    %c0_266 = arith.constant 0 : index
    %166 = vector.load %arg14[%c96_265, %c0_266] : memref<128x32xf32, #tpu.memory_space<vmem>>, vector<8x32xf32>
    tpu.vector_store %arg14[%c96_265, %c0_266], %165 {strides = array<i32>} : memref<128x32xf32, #tpu.memory_space<vmem>>, vector<8x32xf32>,
    %c0_267 = arith.constant 0 : index
    %c416_268 = arith.constant 416 : index
    %167 = vector.load %arg15[%c0_267, %c416_268] : memref<8x512xf32, #tpu.memory_space<vmem>>, vector<8x32xf32>
    %c104_269 = arith.constant 104 : index
    %c0_270 = arith.constant 0 : index
    %168 = vector.load %arg14[%c104_269, %c0_270] : memref<128x32xf32, #tpu.memory_space<vmem>>, vector<8x32xf32>
    tpu.vector_store %arg14[%c104_269, %c0_270], %167 {strides = array<i32>} : memref<128x32xf32, #tpu.memory_space<vmem>>, vector<8x32xf32>,
    %c0_271 = arith.constant 0 : index
    %c448_272 = arith.constant 448 : index
    %169 = vector.load %arg15[%c0_271, %c448_272] : memref<8x512xf32, #tpu.memory_space<vmem>>, vector<8x32xf32>
    %c112_273 = arith.constant 112 : index
    %c0_274 = arith.constant 0 : index
    %170 = vector.load %arg14[%c112_273, %c0_274] : memref<128x32xf32, #tpu.memory_space<vmem>>, vector<8x32xf32>
    tpu.vector_store %arg14[%c112_273, %c0_274], %169 {strides = array<i32>} : memref<128x32xf32, #tpu.memory_space<vmem>>, vector<8x32xf32>,
    %c0_275 = arith.constant 0 : index
    %c480_276 = arith.constant 480 : index
    %171 = vector.load %arg15[%c0_275, %c480_276] : memref<8x512xf32, #tpu.memory_space<vmem>>, vector<8x32xf32>
    %c120_277 = arith.constant 120 : index
    %c0_278 = arith.constant 0 : index
    %172 = vector.load %arg14[%c120_277, %c0_278] : memref<128x32xf32, #tpu.memory_space<vmem>>, vector<8x32xf32>
    tpu.vector_store %arg14[%c120_277, %c0_278], %171 {strides = array<i32>} : memref<128x32xf32, #tpu.memory_space<vmem>>, vector<8x32xf32>,
    %c0_279 = arith.constant 0 : index
    %c0_280 = arith.constant 0 : index
    %173 = vector.load %arg14[%c0_279, %c0_280] : memref<128x32xf32, #tpu.memory_space<vmem>>, vector<128x32xf32>
    %174 = arith.addf %94, %173 : vector<128x32xf32>
    %c1_281 = arith.constant 1 : index
    %c0_282 = arith.constant 0 : index
    %c0_283 = arith.constant 0 : index
    %175 = vector.load %arg7[%c1_281, %c0_282, %c0_283] : memref<2x32x32xf32, #tpu.memory_space<vmem>>, vector<1x32x32xf32>
    %176 = vector.shape_cast %175 : vector<1x32x32xf32> to vector<32x32xf32>
    %cst_284 = arith.constant dense<0.000000e+00> : vector<128x32xf32>
    %177 = tpu.matmul %174, %176, %cst_284 {dimension_numbers = #tpu.dot_dimension_numbers<[1], [0], [0], [1], [0, 0, 1, 1], [], []>} : vector<128x32xf32>, vector<32x32xf32>, vector<128x32xf32> -> vector<128x32xf32>
    %cst_285 = arith.constant 0.000000e+00 : f32
    %178 = vector.broadcast %cst_285 : f32 to vector<128x32xf32>
    %179 = arith.maximumf %177, %178 : vector<128x32xf32>
    %c1_286 = arith.constant 1 : index
    %c0_287 = arith.constant 0 : index
    %c0_288 = arith.constant 0 : index
    %180 = vector.load %arg8[%c1_286, %c0_287, %c0_288] : memref<2x32x32xf32, #tpu.memory_space<vmem>>, vector<1x32x32xf32>
    %181 = vector.shape_cast %180 : vector<1x32x32xf32> to vector<32x32xf32>
    %cst_289 = arith.constant dense<0.000000e+00> : vector<128x32xf32>
    %182 = tpu.matmul %179, %181, %cst_289 {dimension_numbers = #tpu.dot_dimension_numbers<[1], [0], [0], [1], [0, 0, 1, 1], [], []>} : vector<128x32xf32>, vector<32x32xf32>, vector<128x32xf32> -> vector<128x32xf32>
    %183 = arith.addf %174, %182 : vector<128x32xf32>
    %c0_290 = arith.constant 0 : index
    %c0_291 = arith.constant 0 : index
    %184 = vector.load %arg14[%c0_290, %c0_291] : memref<128x32xf32, #tpu.memory_space<vmem>>, vector<128x32xf32>
    tpu.vector_store %arg14[%c0_290, %c0_291], %183 {strides = array<i32>} : memref<128x32xf32, #tpu.memory_space<vmem>>, vector<128x32xf32>,
    %c0_292 = arith.constant 0 : index
    %c0_293 = arith.constant 0 : index
    %185 = vector.load %arg14[%c0_292, %c0_293] : memref<128x32xf32, #tpu.memory_space<vmem>>, vector<8x32xf32>
    %c8_294 = arith.constant 8 : index
    %c0_295 = arith.constant 0 : index
    %186 = vector.load %arg14[%c8_294, %c0_295] : memref<128x32xf32, #tpu.memory_space<vmem>>, vector<8x32xf32>
    %187 = arith.addf %185, %186 : vector<8x32xf32>
    %c16_296 = arith.constant 16 : index
    %c0_297 = arith.constant 0 : index
    %188 = vector.load %arg14[%c16_296, %c0_297] : memref<128x32xf32, #tpu.memory_space<vmem>>, vector<8x32xf32>
    %189 = arith.addf %187, %188 : vector<8x32xf32>
    %c24_298 = arith.constant 24 : index
    %c0_299 = arith.constant 0 : index
    %190 = vector.load %arg14[%c24_298, %c0_299] : memref<128x32xf32, #tpu.memory_space<vmem>>, vector<8x32xf32>
    %191 = arith.addf %189, %190 : vector<8x32xf32>
    %c32_300 = arith.constant 32 : index
    %c0_301 = arith.constant 0 : index
    %192 = vector.load %arg14[%c32_300, %c0_301] : memref<128x32xf32, #tpu.memory_space<vmem>>, vector<8x32xf32>
    %193 = arith.addf %191, %192 : vector<8x32xf32>
    %c40_302 = arith.constant 40 : index
    %c0_303 = arith.constant 0 : index
    %194 = vector.load %arg14[%c40_302, %c0_303] : memref<128x32xf32, #tpu.memory_space<vmem>>, vector<8x32xf32>
    %195 = arith.addf %193, %194 : vector<8x32xf32>
    %c48_304 = arith.constant 48 : index
    %c0_305 = arith.constant 0 : index
    %196 = vector.load %arg14[%c48_304, %c0_305] : memref<128x32xf32, #tpu.memory_space<vmem>>, vector<8x32xf32>
    %197 = arith.addf %195, %196 : vector<8x32xf32>
    %c56_306 = arith.constant 56 : index
    %c0_307 = arith.constant 0 : index
    %198 = vector.load %arg14[%c56_306, %c0_307] : memref<128x32xf32, #tpu.memory_space<vmem>>, vector<8x32xf32>
    %199 = arith.addf %197, %198 : vector<8x32xf32>
    %c64_308 = arith.constant 64 : index
    %c0_309 = arith.constant 0 : index
    %200 = vector.load %arg14[%c64_308, %c0_309] : memref<128x32xf32, #tpu.memory_space<vmem>>, vector<8x32xf32>
    %201 = arith.addf %199, %200 : vector<8x32xf32>
    %c72_310 = arith.constant 72 : index
    %c0_311 = arith.constant 0 : index
    %202 = vector.load %arg14[%c72_310, %c0_311] : memref<128x32xf32, #tpu.memory_space<vmem>>, vector<8x32xf32>
    %203 = arith.addf %201, %202 : vector<8x32xf32>
    %c80_312 = arith.constant 80 : index
    %c0_313 = arith.constant 0 : index
    %204 = vector.load %arg14[%c80_312, %c0_313] : memref<128x32xf32, #tpu.memory_space<vmem>>, vector<8x32xf32>
    %205 = arith.addf %203, %204 : vector<8x32xf32>
    %c88_314 = arith.constant 88 : index
    %c0_315 = arith.constant 0 : index
    %206 = vector.load %arg14[%c88_314, %c0_315] : memref<128x32xf32, #tpu.memory_space<vmem>>, vector<8x32xf32>
    %207 = arith.addf %205, %206 : vector<8x32xf32>
    %c96_316 = arith.constant 96 : index
    %c0_317 = arith.constant 0 : index
    %208 = vector.load %arg14[%c96_316, %c0_317] : memref<128x32xf32, #tpu.memory_space<vmem>>, vector<8x32xf32>
    %209 = arith.addf %207, %208 : vector<8x32xf32>
    %c104_318 = arith.constant 104 : index
    %c0_319 = arith.constant 0 : index
    %210 = vector.load %arg14[%c104_318, %c0_319] : memref<128x32xf32, #tpu.memory_space<vmem>>, vector<8x32xf32>
    %211 = arith.addf %209, %210 : vector<8x32xf32>
    %c112_320 = arith.constant 112 : index
    %c0_321 = arith.constant 0 : index
    %212 = vector.load %arg14[%c112_320, %c0_321] : memref<128x32xf32, #tpu.memory_space<vmem>>, vector<8x32xf32>
    %213 = arith.addf %211, %212 : vector<8x32xf32>
    %c120_322 = arith.constant 120 : index
    %c0_323 = arith.constant 0 : index
    %214 = vector.load %arg14[%c120_322, %c0_323] : memref<128x32xf32, #tpu.memory_space<vmem>>, vector<8x32xf32>
    %215 = arith.addf %213, %214 : vector<8x32xf32>
    %cst_324 = arith.constant 6.250000e-02 : f32
    %216 = vector.broadcast %cst_324 : f32 to vector<8x32xf32>
    %217 = arith.mulf %215, %216 : vector<8x32xf32>
    %c0_325 = arith.constant 0 : index
    %c0_326 = arith.constant 0 : index
    %218 = vector.load %arg9[%c0_325, %c0_326] : memref<32x32xf32, #tpu.memory_space<vmem>>, vector<32x32xf32>
    %cst_327 = arith.constant dense<0.000000e+00> : vector<8x32xf32>
    %219 = tpu.matmul %217, %218, %cst_327 {dimension_numbers = #tpu.dot_dimension_numbers<[1], [0], [0], [1], [0, 0, 1, 1], [], []>} : vector<8x32xf32>, vector<32x32xf32>, vector<8x32xf32> -> vector<8x32xf32>
    %c0_328 = arith.constant 0 : index
    %c0_329 = arith.constant 0 : index
    %220 = vector.load %arg10[%c0_328, %c0_329] : memref<1x32xf32, #tpu.memory_space<vmem>>, vector<1x32xf32>
    %221 = vector.broadcast %220 : vector<1x32xf32> to vector<8x32xf32>
    %222 = arith.addf %219, %221 : vector<8x32xf32>
    %cst_330 = arith.constant 0.000000e+00 : f32
    %223 = vector.broadcast %cst_330 : f32 to vector<8x32xf32>
    %224 = arith.maximumf %222, %223 : vector<8x32xf32>
    %c0_331 = arith.constant 0 : index
    %c0_332 = arith.constant 0 : index
    %225 = vector.load %arg11[%c0_331, %c0_332] : memref<32x128xf32, #tpu.memory_space<vmem>>, vector<32x128xf32>
    %cst_333 = arith.constant dense<0.000000e+00> : vector<8x128xf32>
    %226 = tpu.matmul %224, %225, %cst_333 {dimension_numbers = #tpu.dot_dimension_numbers<[1], [0], [0], [1], [0, 0, 1, 1], [], []>} : vector<8x32xf32>, vector<32x128xf32>, vector<8x128xf32> -> vector<8x128xf32>
    %c0_334 = arith.constant 0 : index
    %c0_335 = arith.constant 0 : index
    %227 = vector.load %arg12[%c0_334, %c0_335] : memref<1x128xf32, #tpu.memory_space<vmem>>, vector<1x128xf32>
    %228 = vector.broadcast %227 : vector<1x128xf32> to vector<8x128xf32>
    %229 = arith.addf %226, %228 : vector<8x128xf32>
    %c0_336 = arith.constant 0 : index
    %c0_337 = arith.constant 0 : index
    %c0_338 = arith.constant 0 : index
    %230 = vector.load %arg13[%c0_336, %c0_337, %c0_338] : memref<1x8x128xf32, #tpu.memory_space<vmem>>, vector<1x8x128xf32>
    %231 = vector.shape_cast %230 : vector<1x8x128xf32> to vector<8x128xf32>
    %232 = vector.shape_cast %229 : vector<8x128xf32> to vector<1x8x128xf32>
    tpu.vector_store %arg13[%c0_336, %c0_337, %c0_338], %232 {strides = array<i32>} : memref<1x8x128xf32, #tpu.memory_space<vmem>>, vector<1x8x128xf32>,
    return
  }
  func.func @transform_0(%arg0: i32) -> (i32, i32, i32) {
    %c0_i32 = arith.constant 0 : i32
    %c0_i32_0 = arith.constant 0 : i32
    %c0_i32_1 = arith.constant 0 : i32
    return %arg0, %c0_i32, %c0_i32_0 : i32, i32, i32
  }
  func.func @transform_1(%arg0: i32) -> (i32, i32) {
    %c0_i32 = arith.constant 0 : i32
    %c0_i32_0 = arith.constant 0 : i32
    %c0_i32_1 = arith.constant 0 : i32
    return %c0_i32, %c0_i32_0 : i32, i32
  }
  func.func @transform_2(%arg0: i32) -> (i32, i32) {
    %c0_i32 = arith.constant 0 : i32
    %c0_i32_0 = arith.constant 0 : i32
    %c0_i32_1 = arith.constant 0 : i32
    return %c0_i32, %c0_i32_0 : i32, i32
  }
  func.func @transform_3(%arg0: i32) -> (i32, i32, i32) {
    %c0_i32 = arith.constant 0 : i32
    %c0_i32_0 = arith.constant 0 : i32
    %c0_i32_1 = arith.constant 0 : i32
    %c0_i32_2 = arith.constant 0 : i32
    return %c0_i32, %c0_i32_0, %c0_i32_1 : i32, i32, i32
  }
  func.func @transform_4(%arg0: i32) -> (i32, i32, i32) {
    %c0_i32 = arith.constant 0 : i32
    %c0_i32_0 = arith.constant 0 : i32
    %c0_i32_1 = arith.constant 0 : i32
    %c0_i32_2 = arith.constant 0 : i32
    return %c0_i32, %c0_i32_0, %c0_i32_1 : i32, i32, i32
  }
  func.func @transform_5(%arg0: i32) -> (i32, i32, i32) {
    %c0_i32 = arith.constant 0 : i32
    %c0_i32_0 = arith.constant 0 : i32
    %c0_i32_1 = arith.constant 0 : i32
    %c0_i32_2 = arith.constant 0 : i32
    return %c0_i32, %c0_i32_0, %c0_i32_1 : i32, i32, i32
  }
  func.func @transform_6(%arg0: i32) -> (i32, i32, i32) {
    %c0_i32 = arith.constant 0 : i32
    %c0_i32_0 = arith.constant 0 : i32
    %c0_i32_1 = arith.constant 0 : i32
    %c0_i32_2 = arith.constant 0 : i32
    return %c0_i32, %c0_i32_0, %c0_i32_1 : i32, i32, i32
  }
  func.func @transform_7(%arg0: i32) -> (i32, i32, i32) {
    %c0_i32 = arith.constant 0 : i32
    %c0_i32_0 = arith.constant 0 : i32
    %c0_i32_1 = arith.constant 0 : i32
    %c0_i32_2 = arith.constant 0 : i32
    return %c0_i32, %c0_i32_0, %c0_i32_1 : i32, i32, i32
  }
  func.func @transform_8(%arg0: i32) -> (i32, i32) {
    %c0_i32 = arith.constant 0 : i32
    %c0_i32_0 = arith.constant 0 : i32
    %c0_i32_1 = arith.constant 0 : i32
    return %c0_i32, %c0_i32_0 : i32, i32
  }
  func.func @transform_9(%arg0: i32) -> (i32, i32) {
    %c0_i32 = arith.constant 0 : i32
    %c0_i32_0 = arith.constant 0 : i32
    %c0_i32_1 = arith.constant 0 : i32
    return %c0_i32, %c0_i32_0 : i32, i32
  }
  func.func @transform_10(%arg0: i32) -> (i32, i32) {
    %c0_i32 = arith.constant 0 : i32
    %c0_i32_0 = arith.constant 0 : i32
    %c0_i32_1 = arith.constant 0 : i32
    return %c0_i32, %c0_i32_0 : i32, i32
  }
  func.func @transform_11(%arg0: i32) -> (i32, i32) {
    %c0_i32 = arith.constant 0 : i32
    %c0_i32_0 = arith.constant 0 : i32
    %c0_i32_1 = arith.constant 0 : i32
    return %c0_i32, %c0_i32_0 : i32, i32
  }
  func.func @transform_12(%arg0: i32) -> (i32, i32, i32) {
    %c0_i32 = arith.constant 0 : i32
    %c0_i32_0 = arith.constant 0 : i32
    %c0_i32_1 = arith.constant 0 : i32
    return %arg0, %c0_i32, %c0_i32_0 : i32, i32, i32
  }
}

</mosaic_0001>

<bundles_post_ra>
// kernel: fedformer_forward.1
= control target key start
LH: loop header
LB: loop body
LE: loop exit
PB: predicated region body
PF: predicated region fallthrough
CT: control target
= control target key end

     0   :  { %17 = vsyncpa [#allocation5], 0  ;;  %s5266_s21 = smov [#allocation4]   ;;  %s6146_s0 = inlined_call_operand.vmem [shape: f32[1,128,8], index: 0, kind: input, shape index: {}]   ;;  %s6147_s1 = inlined_call_operand.vmem [shape: f32[8,32], index: 1, kind: input, shape index: {}]   ;;  %s6148_s2 = inlined_call_operand.vmem [shape: f32[128,32], index: 2, kind: input, shape index: {}]   ;;  %s6149_s3 = inlined_call_operand.vmem [shape: f32[2,32,32], index: 3, kind: input, shape index: {}]   ;;  %s6150_s4 = inlined_call_operand.vmem [shape: f32[2,1,32], index: 4, kind: input, shape index: {}]   ;;  %s6151_s5 = inlined_call_operand.hbm [shape: bf16[2,512,512], index: 5, kind: input, shape index: {}]   ;;  %s6152_s6 = inlined_call_operand.vmem [shape: f32[2,32,32], index: 6, kind: input, shape index: {}]   ;;  %s6153_s7 = inlined_call_operand.vmem [shape: f32[2,32,32], index: 7, kind: input, shape index: {}]   ;;  %s6154_s8 = inlined_call_operand.vmem [shape: f32[32,32], index: 8, kind: input, shape index: {}]   ;;  %s6155_s9 = inlined_call_operand.vmem [shape: f32[1,32], index: 9, kind: input, shape index: {}]   ;;  %s6156_s10 = inlined_call_operand.vmem [shape: f32[32,128], index: 10, kind: input, shape index: {}]   ;;  %s6157_s11 = inlined_call_operand.vmem [shape: f32[1,128], index: 11, kind: input, shape index: {}]   ;;  %s6158_s12 = inlined_call_operand.vmem [shape: f32[1,8,128], index: 12, kind: output, shape index: {}]  }
   0x1   :  { %s33_s22 = sshll.u32 %s5266_s21, 4  ;;  %s34_s22 = int_to_ptr.vmem [resolvable:$true] %s33_s22 }
   0x2   :  { %s5252_s23 = scalar_lea.vmem %s34_s22, 32768  ;;  %p5257_p1 = scmp.lt.s32.totalorder %s34_s22, %s34_s22 }
   0x3   :  { %p5253_p0 = scmp.ne.s32.totalorder %s34_s22, %s5252_s23  ;;  %p5258_p2 = scmp.lt.s32.totalorder %s5252_s23, %s5252_s23 }
   0x5   :  { %p5259_p3 = por %p5258_p2, %p5257_p1 }
   0x7   :  { %p5260_p4 = pnand %p5259_p3, %p5253_p0 }
   0x9   :  { %5263 = shalt.err (!%p5260_p4)
}
   0xa   :  { %s5267_s24 = smov 256   ;;  %s5268_s25 = smov 16  }
   0xb   :  { %39 = dma.hbm_to_vmem [thread:$0]  %s6151_s5, 32768, %s34_s22, [#allocation5], %s5267_s24, %s5267_s24, %s5268_s25  }
   0xc   :  { %5264 = dma.done.wait [#allocation5], 32768  }
   0xd   :  { %5265 = vsyncadd [#allocation5], 4294934528  ;;  %vm88_vm0 = vcmask 64512   ;;  %v71_v0 = vld [vmem:[%s6147_s1] sm:$0xff]  ;;  %v56_v2 = vld [vmem:[%s6146_s0 + $0x8] sm:$0xff]  ;;  %vm293_vm1 = vcmask 261120  }
   0xe   :  { %v55_v1 = vld [vmem:[%s6146_s0] sm:$0xff]  ;;  %4612 = vmatprep.subr.mxu0 %v71_v0  ;;  %v57_v3 = vld [vmem:[%s6146_s0 + $0x10] sm:$0xff]  ;;  %v58_v4 = vld [vmem:[%s6146_s0 + $0x18] sm:$0xff]  ;;  %s5269_s21 = smov 32   ;;  %s5270_s22 = smov 64   ;;  %vm510_vm2 = vcmask 523520  }
   0xf   :  { %4614 = vmatprep.mubr.msk.f32.mxu0 %vm88_vm0, %v55_v1  ;;  %4613 = vmatpush3.msra.mxu0 %v71_v0  ;;  %v59_v5 = vld [vmem:[%s6146_s0 + $0x20] sm:$0xff]  ;;  %v285_v6 = vld [vmem:[%s6149_s3 + $0x18] sm:$0xff]  ;;  %v60_v7 = vld [vmem:[%s6146_s0 + $0x28] sm:$0xff]  ;;  %s5271_s23 = smov 96   ;;  %vm517_vm3 = vcmask 785920   ;;  %vm524_vm4 = vcmask 1048320  }
  0x10   :  { %4615 = vmatmul.mubr.msk.f32.vlgmr.msra.gmra.mxu0 %vm88_vm0, %v56_v2  ;;  %4638 = vmatprep.subr.mxu1 %v285_v6  ;;  %v61_v8 = vld [vmem:[%s6146_s0 + $0x30] sm:$0xff]  ;;  %v62_v9 = vld [vmem:[%s6146_s0 + $0x38] sm:$0xff]  ;;  %v63_v10 = vld [vmem:[%s6146_s0 + $0x40] sm:$0xff]  ;;  %vm5273_vm5 = vmmov 0  }
  0x11   :  { %4617 = vmatprep.mubr.msk.f32.mxu0 %vm88_vm0, %v57_v3  ;;  %4639 = vmatpush3.msra.mxu1 %v285_v6  ;;  %v64_v11 = vld [vmem:[%s6146_s0 + $0x48] sm:$0xff]  ;;  %v65_v12 = vld [vmem:[%s6146_s0 + $0x50] sm:$0xff]  ;;  %v66_v13 = vld [vmem:[%s6146_s0 + $0x58] sm:$0xff] }
  0x12   :  { %v67_v14 = vld [vmem:[%s6146_s0 + $0x60] sm:$0xff]  ;;  %v68_v15 = vld [vmem:[%s6146_s0 + $0x68] sm:$0xff]  ;;  %v69_v16 = vld [vmem:[%s6146_s0 + $0x70] sm:$0xff] }
  0x13   :  { %v70_v17 = vld [vmem:[%s6146_s0 + $0x78] sm:$0xff]  ;;  %v284_v18 = vld [vmem:[%s6149_s3 + $0x10] sm:$0xff]  ;;  %v283_v19 = vld [vmem:[%s6149_s3 + $0x8] sm:$0xff] }
  0x14   :  { %4618 = vmatmul.mubr.msk.f32.gmra.mxu0 %vm88_vm0, %v58_v4  ;;  %4640 = vmatprep.subr.mxu1 %v284_v18  ;;  %v282_v20 = vld [vmem:[%s6149_s3] sm:$0xff]  ;;  %v73_v23 = vld [vmem:[%s6148_s2 + $0x8] sm:$0xff]  ;;  %v74_v28 = vld [vmem:[%s6148_s2 + $0x10] sm:$0xff] }
  0x15   :  { %4620 = vmatprep.mubr.msk.f32.mxu0 %vm88_vm0, %v59_v5  ;;  %4641 = vmatpush3.msra.mxu1 %v284_v18  ;;  %v72_v22 = vld [vmem:[%s6148_s2] sm:$0xff]  ;;  %v75_v29 = vld [vmem:[%s6148_s2 + $0x18] sm:$0xff]  ;;  %v77_v35 = vld [vmem:[%s6148_s2 + $0x28] sm:$0xff] }
  0x16   :  { %4642 = vmatprep.subr.mxu1 %v283_v19  ;;  %v76_v34 = vld [vmem:[%s6148_s2 + $0x20] sm:$0xff]  ;;  %v78_v40 = vld [vmem:[%s6148_s2 + $0x30] sm:$0xff]  ;;  %v79_v41 = vld [vmem:[%s6148_s2 + $0x38] sm:$0xff] }
  0x17   :  { %4643 = vmatpush3.msra.mxu1 %v283_v19  ;;  %v80_v46 = vld [vmem:[%s6148_s2 + $0x40] sm:$0xff]  ;;  %v81_v47 = vld [vmem:[%s6148_s2 + $0x48] sm:$0xff]  ;;  %v82_v52 = vld [vmem:[%s6148_s2 + $0x50] sm:$0xff] }
  0x18   :  { %4621 = vmatmul.mubr.msk.f32.gmra.mxu0 %vm88_vm0, %v60_v7  ;;  %4644 = vmatprep.subr.mxu1 %v282_v20  ;;  %v83_v53 = vld [vmem:[%s6148_s2 + $0x58] sm:$0xff]  ;;  %v84_v58 = vld [vmem:[%s6148_s2 + $0x60] sm:$0xff]  ;;  %v85_v59 = vld [vmem:[%s6148_s2 + $0x68] sm:$0xff] }
  0x19   :  { %4623 = vmatprep.mubr.msk.f32.mxu0 %vm88_vm0, %v61_v8  ;;  %4645 = vmatpush3.msra.mxu1 %v282_v20  ;;  %v86_v0 = vld [vmem:[%s6148_s2 + $0x70] sm:$0xff]  ;;  %v87_v1 = vld [vmem:[%s6148_s2 + $0x78] sm:$0xff] }
  0x1a   :  { %v4860_v5 = vld [vmem:[#allocation4 + $0xe0] ss:$16 sps:$4 sm:$0xff]   ;;  %v4862_v6 = vld [vmem:[#allocation4 + $0xe4] ss:$16 sps:$4 sm:$0xff]  }
  0x1b   :  { %v4865_v7 = vld [vmem:[#allocation4 + $0xc4] ss:$16 sps:$4 sm:$0xff]   ;;  %v4866_v8 = vld [vmem:[#allocation4 + $0x2e0] ss:$16 sps:$4 sm:$0xff]   ;;  %1362 = vmatprep.subr.bf16.mxu0 %v4862_v6 }
  0x1c   :  { %4624 = vmatmul.mubr.msk.f32.gmra.mxu0 %vm88_vm0, %v62_v9  ;;  %v4868_v9 = vld [vmem:[#allocation4 + $0x2e4] ss:$16 sps:$4 sm:$0xff]   ;;  %v4875_v19 = vld [vmem:[#allocation4 + $0x80] ss:$16 sps:$4 sm:$0xff]  }
  0x1d   :  { %4626 = vmatprep.mubr.msk.f32.mxu0 %vm88_vm0, %v63_v10  ;;  %1363 = vmatpush1.bf16.msra.mxu0 %v4860_v5  ;;  %v4863_v10 = vld [vmem:[#allocation4 + $0xc0] ss:$16 sps:$4 sm:$0xff]   ;;  %v4886_v18 = vld [vmem:[#allocation4 + $0x284] ss:$16 sps:$4 sm:$0xff]  }
  0x1e   :  { %1403 = vmatprep.subr.bf16.mxu1 %v4868_v9  ;;  %1364 = vmatprep.subr.bf16.mxu0 %v4865_v7  ;;  %v4883_v20 = vld [vmem:[#allocation4 + $0x64] ss:$16 sps:$4 sm:$0xff]  }
  0x1f   :  { %v4916_v5 = vld [vmem:[#allocation4 + $0x3e4] ss:$16 sps:$4 sm:$0xff]  }
  0x20   :  { %4627 = vmatmul.mubr.msk.f32.gmra.mxu0 %vm88_vm0, %v64_v11  ;;  %v4874_v11 = vld [vmem:[#allocation4 + $0x2c4] ss:$16 sps:$4 sm:$0xff]  }
  0x21   :  { %4629 = vmatprep.mubr.msk.f32.mxu0 %vm88_vm0, %v65_v12  ;;  %v4871_v12 = vld [vmem:[#allocation4 + $0xa4] ss:$16 sps:$4 sm:$0xff]   ;;  %1365 = vmatpush1.bf16.msra.mxu0 %v4863_v10 }
  0x22   :  { %1366 = vmatprep.subr.bf16.mxu0 %v4871_v12  ;;  %v4919_v9 = vld [vmem:[#allocation4 + $0x1a4] ss:$16 sps:$4 sm:$0xff]  }
  0x24   :  { %4630 = vmatmul.mubr.msk.f32.gmra.mxu0 %vm88_vm0, %v66_v13  ;;  %v4872_v13 = vld [vmem:[#allocation4 + $0x2c0] ss:$16 sps:$4 sm:$0xff]  }
  0x25   :  { %4632 = vmatprep.mubr.msk.f32.mxu0 %vm88_vm0, %v67_v14  ;;  %v4880_v14 = vld [vmem:[#allocation4 + $0x2a4] ss:$16 sps:$4 sm:$0xff]  }
  0x28   :  { %4633 = vmatmul.mubr.msk.f32.gmra.mxu0 %vm88_vm0, %v68_v15  ;;  %v4869_v15 = vld [vmem:[#allocation4 + $0xa0] ss:$16 sps:$4 sm:$0xff]  }
  0x29   :  { %4635 = vmatprep.mubr.msk.f32.mxu0 %vm88_vm0, %v69_v16  ;;  %v4877_v16 = vld [vmem:[#allocation4 + $0x84] ss:$16 sps:$4 sm:$0xff]   ;;  %1367 = vmatpush1.bf16.msra.mxu0 %v4869_v15 }
  0x2a   :  { %1368 = vmatprep.subr.bf16.mxu0 %v4877_v16  ;;  %v4920_v16 = vld [vmem:[#allocation4 + $0x3c0] ss:$16 sps:$4 sm:$0xff]  }
  0x2c   :  { %4636 = vmatmul.mubr.msk.f32.gmra.mxu0 %vm88_vm0, %v70_v17  ;;  %v4878_v17 = vld [vmem:[#allocation4 + $0x2a0] ss:$16 sps:$4 sm:$0xff]  }
  0x2d   :  { %1369 = vmatpush1.bf16.msra.mxu0 %v4875_v19  ;;  %v4925_v19 = vld [vmem:[#allocation4 + $0x184] ss:$16 sps:$4 sm:$0xff]  }
  0x2e   :  { %1370 = vmatprep.subr.bf16.mxu0 %v4883_v20 }
  0xd0   :  { %v4616_v21 = vpop.f32.mrf.mxu0 }
  0xd1   :  { %v5429_v26 = vadd.f32 %v4616_v21, %v73_v23  ;;  %v4884_v21 = vld [vmem:[#allocation4 + $0x280] ss:$16 sps:$4 sm:$0xff]  }
  0xd2   :  { %v203_v24 = vpop.f32.mrf.mxu0  ;;  %v4881_v23 = vld [vmem:[#allocation4 + $0x60] ss:$16 sps:$4 sm:$0xff]  }
  0xd3   :  { %v5427_v25 = vadd.f32 %v203_v24, %v72_v22  ;;  %v4892_v22 = vld [vmem:[#allocation4 + $0x264] ss:$16 sps:$4 sm:$0xff]   ;;  %1371 = vmatpush1.bf16.msra.mxu0 %v4881_v23 }
  0xd4   :  { %v4619_v27 = vpop.f32.mrf.mxu0  ;;  %v4889_v24 = vld [vmem:[#allocation4 + $0x44] ss:$16 sps:$4 sm:$0xff]  }
  0xd5   :  { %4646 = vmatprep.mubr.msk.f32.mxu1 %vm293_vm1, %v5427_v25  ;;  %v5443_v32 = vadd.f32 %v4619_v27, %v75_v29  ;;  %v4890_v27 = vld [vmem:[#allocation4 + $0x260] ss:$16 sps:$4 sm:$0xff]   ;;  %1372 = vmatprep.subr.bf16.mxu0 %v4889_v24  ;;  %v4895_v29 = vld [vmem:[#allocation4 + $0x24] ss:$16 sps:$4 sm:$0xff]  }
  0xd6   :  { %v213_v30 = vpop.f32.mrf.mxu0  ;;  %4647 = vmatmul.mubr.msk.f32.vlgmr.msra.gmra.mxu1 %vm293_vm1, %v5429_v26  ;;  %v4928_v23 = vld [vmem:[#allocation4 + $0x3a4] ss:$16 sps:$4 sm:$0xff]  }
  0xd7   :  { %v5441_v31 = vadd.f32 %v213_v30, %v74_v28  ;;  %1404 = vmatpush1.bf16.msra.mxu1 %v4866_v8  ;;  %v4887_v28 = vld [vmem:[#allocation4 + $0x40] ss:$16 sps:$4 sm:$0xff]  }
  0xd8   :  { %v4622_v33 = vpop.f32.mrf.mxu0  ;;  %1405 = vmatprep.subr.bf16.mxu1 %v4874_v11  ;;  %1373 = vmatpush1.bf16.msra.mxu0 %v4887_v28  ;;  %v4893_v30 = vld [vmem:[#allocation4 + $0x20] ss:$16 sps:$4 sm:$0xff]  }
  0xd9   :  { %4649 = vmatprep.mubr.msk.f32.mxu1 %vm293_vm1, %v5441_v31  ;;  %v5457_v38 = vadd.f32 %v4622_v33, %v77_v35  ;;  %1374 = vmatprep.subr.bf16.mxu0 %v4895_v29  ;;  %v5536_v33 = vld [vmem:[%s6150_s4] ss:$0 sm:$0xff] }
  0xda   :  { %v223_v36 = vpop.f32.mrf.mxu0  ;;  %4650 = vmatmul.mubr.msk.f32.gmra.mxu1 %vm293_vm1, %v5443_v32  ;;  %v4896_v35 = vld [vmem:[#allocation4 + $0x240] ss:$16 sps:$4 sm:$0xff]  }
  0xdb   :  { %v5455_v37 = vadd.f32 %v223_v36, %v76_v34  ;;  %1406 = vmatpush1.bf16.msra.mxu1 %v4872_v13  ;;  %v4898_v34 = vld [vmem:[#allocation4 + $0x244] ss:$16 sps:$4 sm:$0xff]   ;;  %v4899_v36 = vld [vmem:[#allocation4] ss:$16 sps:$4 sm:$0xff]  }
  0xdc   :  { %v4625_v39 = vpop.f32.mrf.mxu0  ;;  %1407 = vmatprep.subr.bf16.mxu1 %v4880_v14  ;;  %1375 = vmatpush1.bf16.msra.mxu0 %v4893_v30  ;;  %v4917_v8 = vld [vmem:[#allocation4 + $0x1a0] ss:$16 sps:$4 sm:$0xff]   ;;  %v4922_v14 = vld [vmem:[#allocation4 + $0x3c4] ss:$16 sps:$4 sm:$0xff]  }
  0xdd   :  { %4652 = vmatprep.mubr.msk.f32.mxu1 %vm293_vm1, %v5455_v37  ;;  %v5471_v44 = vadd.f32 %v4625_v39, %v79_v41  ;;  %v4901_v39 = vld [vmem:[#allocation4 + $0x4] ss:$16 sps:$4 sm:$0xff]  }
  0xde   :  { %v233_v42 = vpop.f32.mrf.mxu0  ;;  %4653 = vmatmul.mubr.msk.f32.gmra.mxu1 %vm293_vm1, %v5457_v38  ;;  %1376 = vmatprep.subr.bf16.mxu0 %v4901_v39  ;;  %v4931_v30 = vld [vmem:[#allocation4 + $0x164] ss:$16 sps:$4 sm:$0xff]   ;;  %v4932_v39 = vld [vmem:[#allocation4 + $0x380] ss:$16 sps:$4 sm:$0xff]  }
  0xdf   :  { %v5469_v43 = vadd.f32 %v233_v42, %v78_v40  ;;  %1408 = vmatpush1.bf16.msra.mxu1 %v4878_v17  ;;  %v4904_v40 = vld [vmem:[#allocation4 + $0x224] ss:$16 sps:$4 sm:$0xff]   ;;  %v4902_v42 = vld [vmem:[#allocation4 + $0x220] ss:$16 sps:$4 sm:$0xff]  }
  0xe0   :  { %v4628_v45 = vpop.f32.mrf.mxu0  ;;  %1409 = vmatprep.subr.bf16.mxu1 %v4886_v18  ;;  %1377 = vmatpush1.bf16.msra.mxu0 %v4899_v36  ;;  %v4923_v18 = vld [vmem:[#allocation4 + $0x180] ss:$16 sps:$4 sm:$0xff]  }
  0xe1   :  { %4655 = vmatprep.mubr.msk.f32.mxu1 %vm293_vm1, %v5469_v43  ;;  %v5485_v50 = vadd.f32 %v4628_v45, %v81_v47  ;;  %v4929_v36 = vld [vmem:[#allocation4 + $0x160] ss:$16 sps:$4 sm:$0xff]  }
  0xe2   :  { %v243_v48 = vpop.f32.mrf.mxu0  ;;  %4656 = vmatmul.mubr.msk.f32.gmra.mxu1 %vm293_vm1, %v5471_v44 }
  0xe3   :  { %v5483_v49 = vadd.f32 %v243_v48, %v80_v46  ;;  %1410 = vmatpush1.bf16.msra.mxu1 %v4884_v21  ;;  %v4907_v48 = vld [vmem:[#allocation4 + $0x1e4] ss:$16 sps:$4 sm:$0xff]  }
  0xe4   :  { %v4631_v51 = vpop.f32.mrf.mxu0  ;;  %1411 = vmatprep.subr.bf16.mxu1 %v4892_v22  ;;  %1378 = vmatprep.subr.bf16.mxu0 %v4907_v48  ;;  %v4926_v22 = vld [vmem:[#allocation4 + $0x3a0] ss:$16 sps:$4 sm:$0xff]  }
  0xe5   :  { %4658 = vmatprep.mubr.msk.f32.mxu1 %vm293_vm1, %v5483_v49  ;;  %v5499_v56 = vadd.f32 %v4631_v51, %v83_v53  ;;  %v4908_v53 = vld [vmem:[#allocation4 + $0x200] ss:$16 sps:$4 sm:$0xff]  }
  0xe6   :  { %v253_v54 = vpop.f32.mrf.mxu0  ;;  %4659 = vmatmul.mubr.msk.f32.gmra.mxu1 %vm293_vm1, %v5485_v50 }
  0xe7   :  { %v5497_v55 = vadd.f32 %v253_v54, %v82_v52  ;;  %1412 = vmatpush1.bf16.msra.mxu1 %v4890_v27  ;;  %v4905_v52 = vld [vmem:[#allocation4 + $0x1e0] ss:$16 sps:$4 sm:$0xff]   ;;  %v4910_v54 = vld [vmem:[#allocation4 + $0x204] ss:$16 sps:$4 sm:$0xff]  }
  0xe8   :  { %v4634_v57 = vpop.f32.mrf.mxu0  ;;  %1413 = vmatprep.subr.bf16.mxu1 %v4898_v34  ;;  %1379 = vmatpush2.bf16.msra.mxu0 %v4905_v52 }
  0xe9   :  { %4661 = vmatprep.mubr.msk.f32.mxu1 %vm293_vm1, %v5497_v55  ;;  %v5513_v62 = vadd.f32 %v4634_v57, %v85_v59 }
  0xea   :  { %v263_v60 = vpop.f32.mrf.mxu0  ;;  %4662 = vmatmul.mubr.msk.f32.gmra.mxu1 %vm293_vm1, %v5499_v56 }
  0xeb   :  { %v5511_v61 = vadd.f32 %v263_v60, %v84_v58  ;;  %1414 = vmatpush1.bf16.msra.mxu1 %v4896_v35  ;;  %v4913_v60 = vld [vmem:[#allocation4 + $0x1c4] ss:$16 sps:$4 sm:$0xff]  }
  0xec   :  { %v4637_v63 = vpop.f32.mrf.mxu0  ;;  %1415 = vmatprep.subr.bf16.mxu1 %v4904_v40  ;;  %1380 = vmatprep.subr.bf16.mxu0 %v4913_v60 }
  0xed   :  { %4664 = vmatprep.mubr.msk.f32.mxu1 %vm293_vm1, %v5511_v61  ;;  %v5527_v4 = vadd.f32 %v4637_v63, %v87_v1 }
  0xee   :  { %v273_v2 = vpop.f32.mrf.mxu0  ;;  %4665 = vmatmul.mubr.msk.f32.gmra.mxu1 %vm293_vm1, %v5513_v62 }
  0xef   :  { %v5525_v3 = vadd.f32 %v273_v2, %v86_v0  ;;  %1416 = vmatpush1.bf16.msra.mxu1 %v4902_v42  ;;  %v4911_v0 = vld [vmem:[#allocation4 + $0x1c0] ss:$16 sps:$4 sm:$0xff]  }
  0xf0   :  { %1417 = vmatprep.subr.bf16.mxu1 %v4910_v54  ;;  %v4914_v2 = vld [vmem:[#allocation4 + $0x3e0] ss:$16 sps:$4 sm:$0xff]   ;;  %1381 = vmatpush2.bf16.msra.mxu0 %v4911_v0  ;;  %v4940_v54 = vld [vmem:[#allocation4 + $0x364] ss:$16 sps:$4 sm:$0xff]  }
  0xf1   :  { %4667 = vmatprep.mubr.msk.f32.mxu1 %vm293_vm1, %v5525_v3  ;;  %1382 = vmatprep.subr.bf16.mxu0 %v4919_v9 }
  0xf2   :  { %4668 = vmatmul.mubr.msk.f32.gmra.mxu1 %vm293_vm1, %v5527_v4 }
  0xf3   :  { %1418 = vmatpush1.bf16.msra.mxu1 %v4908_v53  ;;  %v4938_v53 = vld [vmem:[#allocation4 + $0x360] ss:$16 sps:$4 sm:$0xff]  }
  0xf4   :  { %1419 = vmatprep.subr.bf16.mxu1 %v4916_v5  ;;  %1383 = vmatpush2.bf16.msra.mxu0 %v4917_v8  ;;  %v4944_v8 = vld [vmem:[#allocation4 + $0x340] ss:$16 sps:$4 sm:$0xff]  }
  0xf5   :  { %1384 = vmatprep.subr.bf16.mxu0 %v4925_v19  ;;  %v4956_v19 = vld [vmem:[#allocation4 + $0x300] ss:$16 sps:$4 sm:$0xff]  }
  0xf7   :  { %1420 = vmatpush2.bf16.msra.mxu1 %v4914_v2  ;;  %v4941_v2 = vld [vmem:[#allocation4 + $0x120] ss:$16 sps:$4 sm:$0xff]  }
  0xf8   :  { %1421 = vmatprep.subr.bf16.mxu1 %v4922_v14  ;;  %1385 = vmatpush2.bf16.msra.mxu0 %v4923_v18  ;;  %v4950_v14 = vld [vmem:[#allocation4 + $0x320] ss:$16 sps:$4 sm:$0xff]   ;;  %v4958_v18 = vld [vmem:[#allocation4 + $0x304] ss:$16 sps:$4 sm:$0xff]  }
  0xf9   :  { %1386 = vmatprep.subr.bf16.mxu0 %v4931_v30 }
  0xfb   :  { %1422 = vmatpush2.bf16.msra.mxu1 %v4920_v16 }
  0xfc   :  { %1423 = vmatprep.subr.bf16.mxu1 %v4928_v23  ;;  %1387 = vmatpush2.bf16.msra.mxu0 %v4929_v36 }
  0xff   :  { %1424 = vmatpush2.bf16.msra.mxu1 %v4926_v22  ;;  %v4964_v22 = vld [vmem:[#allocation4 + $0x2ec] ss:$16 sps:$4 sm:$0xff]  }
 0x196   :  { %v4648_v41 = vpop.f32.mrf.mxu1 }
 0x197   :  { %v414_v45 = vadd.f32 %v4648_v41, %v5536_v33  ;;  %v4934_v41 = vld [vmem:[#allocation4 + $0x384] ss:$16 sps:$4 sm:$0xff]  }
 0x198   :  { %v408_v46 = vpop.f32.mrf.mxu1  ;;  %1425 = vmatprep.subr.bf16.mxu1 %v4934_v41 }
 0x199   :  { %488 = vst.msk [vmem:[#allocation2 + $0x8] sm:$0xff] %vm293_vm1, %v414_v45  ;;  %v409_v47 = vadd.f32 %v5536_v33, %v408_v46  ;;  %1426 = vmatpush2.bf16.msra.mxu1 %v4932_v39 }
 0x19a   :  { %v4651_v51 = vpop.f32.mrf.mxu1  ;;  %1427 = vmatprep.subr.bf16.mxu1 %v4940_v54 }
 0x19b   :  { %487 = vst.msk [vmem:[#allocation2] sm:$0xff] %vm293_vm1, %v409_v47  ;;  %v424_v57 = vadd.f32 %v4651_v51, %v5536_v33  ;;  %v4937_v47 = vld [vmem:[#allocation4 + $0x144] ss:$16 sps:$4 sm:$0xff]   ;;  %v4935_v51 = vld [vmem:[#allocation4 + $0x140] ss:$16 sps:$4 sm:$0xff]  }
 0x19c   :  { %v418_v58 = vpop.f32.mrf.mxu1  ;;  %1388 = vmatprep.subr.bf16.mxu0 %v4937_v47  ;;  %v4953_v47 = vld [vmem:[#allocation4 + $0xe8] ss:$16 sps:$4 sm:$0xff]  }
 0x19d   :  { %490 = vst.msk [vmem:[#allocation2 + $0x18] sm:$0xff] %vm293_vm1, %v424_v57  ;;  %v419_v59 = vadd.f32 %v5536_v33, %v418_v58  ;;  %1389 = vmatpush2.bf16.msra.mxu0 %v4935_v51  ;;  %1428 = vmatpush2.bf16.msra.mxu1 %v4938_v53 }
 0x19e   :  { %v4654_v63 = vpop.f32.mrf.mxu1 }
 0x19f   :  { %489 = vst.msk [vmem:[#allocation2 + $0x10] sm:$0xff] %vm293_vm1, %v419_v59  ;;  %v434_v1 = vadd.f32 %v4654_v63, %v5536_v33  ;;  %v4943_v63 = vld [vmem:[#allocation4 + $0x124] ss:$16 sps:$4 sm:$0xff]  }
 0x1a0   :  { %v428_v6 = vpop.f32.mrf.mxu1  ;;  %v505_v7 = vld [vmem:[#allocation2 + $0x8] sm:$0xff]  ;;  %1390 = vmatprep.subr.bf16.mxu0 %v4943_v63 }
 0x1a1   :  { %492 = vst.msk [vmem:[#allocation2 + $0x28] sm:$0xff] %vm293_vm1, %v434_v1  ;;  %v429_v10 = vadd.f32 %v5536_v33, %v428_v6  ;;  %507 = vrot.lane.b32.xlu1 %v505_v7, %s5269_s21  ;;  %v4946_v6 = vld [vmem:[#allocation4 + $0x344] ss:$16 sps:$4 sm:$0xff]   ;;  %1391 = vmatpush2.bf16.msra.mxu0 %v4941_v2  ;;  %v4973_v2 = vld [vmem:[#allocation4 + $0x8c] ss:$16 sps:$4 sm:$0xff]  }
 0x1a2   :  { %v4657_v11 = vpop.f32.mrf.mxu1  ;;  %v503_v12 = vld [vmem:[#allocation2] sm:$0xff]  ;;  %1429 = vmatprep.subr.bf16.mxu1 %v4946_v6  ;;  %v4976_v6 = vld [vmem:[#allocation4 + $0x2ac] ss:$16 sps:$4 sm:$0xff]  }
 0x1a3   :  { %491 = vst.msk [vmem:[#allocation2 + $0x20] sm:$0xff] %vm293_vm1, %v429_v10  ;;  %v444_v13 = vadd.f32 %v4657_v11, %v5536_v33  ;;  %504 = vst.msk [vmem:[#allocation3] sm:$0xff] %vm293_vm1, %v503_v12  ;;  %v4947_v10 = vld [vmem:[#allocation4 + $0x100] ss:$16 sps:$4 sm:$0xff]   ;;  %v4949_v11 = vld [vmem:[#allocation4 + $0x104] ss:$16 sps:$4 sm:$0xff]   ;;  %1430 = vmatpush2.bf16.msra.mxu1 %v4944_v8 }
 0x1a4   :  { %v438_v15 = vpop.f32.mrf.mxu1  ;;  %1392 = vmatprep.subr.bf16.mxu0 %v4949_v11  ;;  %v4979_v8 = vld [vmem:[#allocation4 + $0x6c] ss:$16 sps:$4 sm:$0xff]   ;;  %v4977_v11 = vld [vmem:[#allocation4 + $0x68] ss:$16 sps:$4 sm:$0xff]  }
 0x1a5   :  { %494 = vst.msk [vmem:[#allocation2 + $0x38] sm:$0xff] %vm293_vm1, %v444_v13  ;;  %v439_v17 = vadd.f32 %v5536_v33, %v438_v15  ;;  %v4952_v13 = vld [vmem:[#allocation4 + $0x324] ss:$16 sps:$4 sm:$0xff]   ;;  %1393 = vmatpush2.bf16.msra.mxu0 %v4947_v10  ;;  %v4955_v15 = vld [vmem:[#allocation4 + $0xec] ss:$16 sps:$4 sm:$0xff]  }
 0x1a6   :  { %v4660_v20 = vpop.f32.mrf.mxu1  ;;  %v512_v21 = vld [vmem:[#allocation2 + $0x10] sm:$0xff]  ;;  %1431 = vmatprep.subr.bf16.mxu1 %v4952_v13  ;;  %1444 = vmatprep.subr.bf16.mxu0 %v4955_v15  ;;  %v4982_v10 = vld [vmem:[#allocation4 + $0x28c] ss:$16 sps:$4 sm:$0xff]   ;;  %v4980_v13 = vld [vmem:[#allocation4 + $0x288] ss:$16 sps:$4 sm:$0xff]  }
 0x1a7   :  { %493 = vst.msk [vmem:[#allocation2 + $0x30] sm:$0xff] %vm293_vm1, %v439_v17  ;;  %v454_v24 = vadd.f32 %v4660_v20, %v5536_v33  ;;  %514 = vrot.lane.b32.xlu0 %v512_v21, %s5270_s22  ;;  %1432 = vmatpush2.bf16.msra.mxu1 %v4950_v14  ;;  %v519_v20 = vld [vmem:[#allocation2 + $0x18] sm:$0xff] }
 0x1a8   :  { %v448_v27 = vpop.f32.mrf.mxu1  ;;  %v528_v29 = vld [vmem:[#allocation2 + $0x28] sm:$0xff]  ;;  %1433 = vmatprep.subr.bf16.mxu1 %v4958_v18 }
 0x1a9   :  { %496 = vst.msk [vmem:[#allocation2 + $0x48] sm:$0xff] %vm293_vm1, %v454_v24  ;;  %v449_v28 = vadd.f32 %v5536_v33, %v448_v27  ;;  %v4988_v14 = vld [vmem:[#allocation4 + $0x26c] ss:$16 sps:$4 sm:$0xff]   ;;  %v4983_v15 = vld [vmem:[#allocation4 + $0x48] ss:$16 sps:$4 sm:$0xff]  }
 0x1aa   :  { %v4663_v34 = vpop.f32.mrf.mxu1  ;;  %v526_v35 = vld [vmem:[#allocation2 + $0x20] sm:$0xff]  ;;  %v4989_v18 = vld [vmem:[#allocation4 + $0x28] ss:$16 sps:$4 sm:$0xff]  }
 0x1ab   :  { %495 = vst.msk [vmem:[#allocation2 + $0x40] sm:$0xff] %vm293_vm1, %v449_v28  ;;  %v464_v40 = vadd.f32 %v4663_v34, %v5536_v33  ;;  %530 = vrot.lane.b32.xlu0 %v528_v29, %s5269_s21  ;;  %527 = vst.msk [vmem:[#allocation3 + $0x8] sm:$0xff] %vm293_vm1, %v526_v35  ;;  %1434 = vmatpush2.bf16.msra.mxu1 %v4956_v19  ;;  %v4997_v19 = vld [vmem:[#allocation4 + $0xc] ss:$16 sps:$4 sm:$0xff]  }
 0x1ac   :  { %v458_v42 = vpop.f32.mrf.mxu1  ;;  %v540_v45 = vld [vmem:[#allocation2 + $0x38] sm:$0xff]  ;;  %1485 = vmatprep.subr.bf16.mxu1 %v4964_v22 }
 0x1ad   :  { %498 = vst.msk [vmem:[#allocation2 + $0x58] sm:$0xff] %vm293_vm1, %v464_v40  ;;  %v459_v46 = vadd.f32 %v5536_v33, %v458_v42  ;;  %542 = vrot.lane.b32.xlu1 %v540_v45, %s5271_s23  ;;  %v4995_v22 = vld [vmem:[#allocation4 + $0x8] ss:$16 sps:$4 sm:$0xff]  }
 0x1ae   :  { %v4666_v48 = vpop.f32.mrf.mxu1  ;;  %v534_v58 = vld [vmem:[#allocation2 + $0x30] sm:$0xff] }
 0x1af   :  { %497 = vst.msk [vmem:[#allocation2 + $0x50] sm:$0xff] %vm293_vm1, %v459_v46  ;;  %v474_v52 = vadd.f32 %v4666_v48, %v5536_v33 }
 0x1b0   :  { %v468_v57 = vpop.f32.mrf.mxu1  ;;  %v548_v59 = vld [vmem:[#allocation2 + $0x48] sm:$0xff] }
 0x1b1   :  { %500 = vst.msk [vmem:[#allocation2 + $0x68] sm:$0xff] %vm293_vm1, %v474_v52  ;;  %v469_v60 = vadd.f32 %v5536_v33, %v468_v57  ;;  %536 = vrot.lane.b32.xlu1 %v534_v58, %s5270_s22  ;;  %550 = vrot.lane.b32.xlu0 %v548_v59, %s5269_s21  ;;  %v4961_v52 = vld [vmem:[#allocation4 + $0xcc] ss:$16 sps:$4 sm:$0xff]   ;;  %v4959_v57 = vld [vmem:[#allocation4 + $0xc8] ss:$16 sps:$4 sm:$0xff]  }
 0x1b2   :  { %v4669_v0 = vpop.f32.mrf.mxu1  ;;  %v546_v1 = vld [vmem:[#allocation2 + $0x40] sm:$0xff]  ;;  %v4967_v58 = vld [vmem:[#allocation4 + $0xac] ss:$16 sps:$4 sm:$0xff]   ;;  %v4962_v59 = vld [vmem:[#allocation4 + $0x2e8] ss:$16 sps:$4 sm:$0xff]  }
 0x1b3   :  { %499 = vst.msk [vmem:[#allocation2 + $0x60] sm:$0xff] %vm293_vm1, %v469_v60  ;;  %v484_v5 = vadd.f32 %v4669_v0, %v5536_v33  ;;  %547 = vst.msk [vmem:[#allocation3 + $0x10] sm:$0xff] %vm293_vm1, %v546_v1  ;;  %v4970_v0 = vld [vmem:[#allocation4 + $0x2cc] ss:$16 sps:$4 sm:$0xff]   ;;  %v4965_v1 = vld [vmem:[#allocation4 + $0xa8] ss:$16 sps:$4 sm:$0xff]  }
 0x1b4   :  { %v478_v7 = vpop.f32.mrf.mxu1  ;;  %v560_v23 = vld [vmem:[#allocation2 + $0x58] sm:$0xff] }
 0x1b5   :  { %502 = vst.msk [vmem:[#allocation2 + $0x78] sm:$0xff] %vm293_vm1, %v484_v5  ;;  %v479_v9 = vadd.f32 %v5536_v33, %v478_v7  ;;  %v4968_v5 = vld [vmem:[#allocation4 + $0x2c8] ss:$16 sps:$4 sm:$0xff]  }
 0x1b6   :  { %v554_v12 = vld [vmem:[#allocation2 + $0x50] sm:$0xff]  ;;  %v4971_v7 = vld [vmem:[#allocation4 + $0x88] ss:$16 sps:$4 sm:$0xff]  }
 0x1b7   :  { %501 = vst.msk [vmem:[#allocation2 + $0x70] sm:$0xff] %vm293_vm1, %v479_v9  ;;  %556 = vrot.lane.b32.xlu0 %v554_v12, %s5270_s22  ;;  %v4974_v9 = vld [vmem:[#allocation4 + $0x2a8] ss:$16 sps:$4 sm:$0xff]   ;;  %v4985_v12 = vld [vmem:[#allocation4 + $0x4c] ss:$16 sps:$4 sm:$0xff]  }
 0x1b8   :  { %v568_v16 = vld [vmem:[#allocation2 + $0x68] sm:$0xff] }
 0x1ba   :  { %v566_v17 = vld [vmem:[#allocation2 + $0x60] sm:$0xff] }
 0x1bb   :  { %570 = vrot.lane.b32.xlu0 %v568_v16, %s5269_s21  ;;  %567 = vst.msk [vmem:[#allocation3 + $0x18] sm:$0xff] %vm293_vm1, %v566_v17  ;;  %v4991_v16 = vld [vmem:[#allocation4 + $0x2c] ss:$16 sps:$4 sm:$0xff]   ;;  %v4986_v17 = vld [vmem:[#allocation4 + $0x268] ss:$16 sps:$4 sm:$0xff]  }
 0x1bc   :  { %v580_v33 = vld [vmem:[#allocation2 + $0x78] sm:$0xff] }
 0x1bd   :  { %582 = vrot.lane.b32.xlu1 %v580_v33, %s5271_s23  ;;  %v4994_v33 = vld [vmem:[#allocation4 + $0x24c] ss:$16 sps:$4 sm:$0xff]  }
 0x1be   :  { %v574_v21 = vld [vmem:[#allocation2 + $0x70] sm:$0xff] }
 0x1bf   :  { %521 = vrot.lane.b32.xlu0 %v519_v20, %s5271_s23  ;;  %v4992_v20 = vld [vmem:[#allocation4 + $0x248] ss:$16 sps:$4 sm:$0xff]  }
 0x1c1   :  { %576 = vrot.lane.b32.xlu1 %v574_v21, %s5270_s22  ;;  %v5000_v21 = vld [vmem:[#allocation4 + $0x22c] ss:$16 sps:$4 sm:$0xff]  }
 0x1c5   :  { %562 = vrot.lane.b32.xlu1 %v560_v23, %s5271_s23  ;;  %v5003_v23 = vld [vmem:[#allocation4 + $0x1ec] ss:$16 sps:$4 sm:$0xff]  }
 0x213   :  { %v508_v24 = vpop.permute.xlu1 %507 }
 0x214   :  { %511 = vst.msk [vmem:[#allocation3] sm:$0xff] %vm510_vm2, %v508_v24  ;;  %v4998_v24 = vld [vmem:[#allocation4 + $0x228] ss:$16 sps:$4 sm:$0xff]  }
 0x219   :  { %v515_v27 = vpop.permute.xlu0 %514 }
 0x21a   :  { %518 = vst.msk [vmem:[#allocation3] sm:$0xff] %vm517_vm3, %v515_v27  ;;  %v5006_v27 = vld [vmem:[#allocation4 + $0x20c] ss:$16 sps:$4 sm:$0xff]  }
 0x21d   :  { %v531_v28 = vpop.permute.xlu0 %530 }
 0x21e   :  { %533 = vst.msk [vmem:[#allocation3 + $0x8] sm:$0xff] %vm510_vm2, %v531_v28  ;;  %v5001_v28 = vld [vmem:[#allocation4 + $0x1e8] ss:$16 sps:$4 sm:$0xff]  }
 0x21f   :  { %v543_v29 = vpop.permute.xlu1 %542 }
 0x223   :  { %v537_v30 = vpop.permute.xlu1 %536  ;;  %v551_v34 = vpop.permute.xlu0 %550 }
 0x224   :  { %539 = vst.msk [vmem:[#allocation3 + $0x8] sm:$0xff] %vm517_vm3, %v537_v30  ;;  %v5004_v30 = vld [vmem:[#allocation4 + $0x208] ss:$16 sps:$4 sm:$0xff]  }
 0x225   :  { %553 = vst.msk [vmem:[#allocation3 + $0x10] sm:$0xff] %vm510_vm2, %v551_v34  ;;  %v5012_v34 = vld [vmem:[#allocation4 + $0x3ec] ss:$16 sps:$4 sm:$0xff]  }
 0x226   :  { %545 = vst.msk [vmem:[#allocation3 + $0x8] sm:$0xff] %vm524_vm4, %v543_v29  ;;  %v5009_v29 = vld [vmem:[#allocation4 + $0x1cc] ss:$16 sps:$4 sm:$0xff]  }
 0x229   :  { %v557_v35 = vpop.permute.xlu0 %556 }
 0x22a   :  { %559 = vst.msk [vmem:[#allocation3 + $0x10] sm:$0xff] %vm517_vm3, %v557_v35  ;;  %v5007_v35 = vld [vmem:[#allocation4 + $0x1c8] ss:$16 sps:$4 sm:$0xff]  }
 0x22d   :  { %v587_v36 = vld [vmem:[#allocation3 + $0x8] sm:$0xff]  ;;  %v571_v39 = vpop.permute.xlu0 %570 }
 0x22e   :  { %v591_v40 = vpack.c.bf16 %v587_v36, %v587_v36  ;;  %573 = vst.msk [vmem:[#allocation3 + $0x18] sm:$0xff] %vm510_vm2, %v571_v39  ;;  %v5015_v36 = vld [vmem:[#allocation4 + $0x1ac] ss:$16 sps:$4 sm:$0xff]   ;;  %v5010_v39 = vld [vmem:[#allocation4 + $0x3e8] ss:$16 sps:$4 sm:$0xff]  }
 0x22f   :  { %v583_v41 = vpop.permute.xlu1 %582 }
 0x230   :  { %1394 = vmatprep.mubr.bf16.mxu0 %v591_v40 }
 0x231   :  { %v522_v42 = vpop.permute.xlu0 %521 }
 0x232   :  { %525 = vst.msk [vmem:[#allocation3] sm:$0xff] %vm524_vm4, %v522_v42  ;;  %v5021_v42 = vld [vmem:[#allocation4 + $0x18c] ss:$16 sps:$4 sm:$0xff]  }
 0x233   :  { %v577_v45 = vpop.permute.xlu1 %576 }
 0x234   :  { %579 = vst.msk [vmem:[#allocation3 + $0x18] sm:$0xff] %vm517_vm3, %v577_v45  ;;  %v5016_v45 = vld [vmem:[#allocation4 + $0x3c8] ss:$16 sps:$4 sm:$0xff]  }
 0x235   :  { %585 = vst.msk [vmem:[#allocation3 + $0x18] sm:$0xff] %vm524_vm4, %v583_v41  ;;  %v5013_v41 = vld [vmem:[#allocation4 + $0x1a8] ss:$16 sps:$4 sm:$0xff]  }
 0x237   :  { %v563_v46 = vpop.permute.xlu1 %562 }
 0x238   :  { %565 = vst.msk [vmem:[#allocation3 + $0x10] sm:$0xff] %vm524_vm4, %v563_v46  ;;  %v5024_v46 = vld [vmem:[#allocation4 + $0x3ac] ss:$16 sps:$4 sm:$0xff]  }
 0x239   :  { %v586_v48 = vld [vmem:[#allocation3] sm:$0xff] }
 0x23a   :  { %v5598_v51 = vpack.c.bf16 %v586_v48, %v586_v48  ;;  %v5027_v48 = vld [vmem:[#allocation4 + $0x16c] ss:$16 sps:$4 sm:$0xff]  }
 0x23c   :  { %1395 = vmatmul.mubr.bf16.vlgmr.msra.gmra.mxu0 %v5598_v51  ;;  %v589_v53 = vld [vmem:[#allocation3 + $0x18] sm:$0xff] }
 0x23d   :  { %1445 = vmatpush1.bf16.msra.mxu0 %v4953_v47  ;;  %1476 = vmatprep.mubr.bf16.mxu0 %v591_v40  ;;  %v593_v54 = vpack.c.bf16 %v589_v53, %v589_v53  ;;  %v5018_v40 = vld [vmem:[#allocation4 + $0x3cc] ss:$16 sps:$4 sm:$0xff]   ;;  %v5019_v47 = vld [vmem:[#allocation4 + $0x188] ss:$16 sps:$4 sm:$0xff]  }
 0x23e   :  { %1446 = vmatprep.subr.bf16.mxu0 %v4961_v52  ;;  %v5022_v52 = vld [vmem:[#allocation4 + $0x3a8] ss:$16 sps:$4 sm:$0xff]   ;;  %v5030_v53 = vld [vmem:[#allocation4 + $0x38c] ss:$16 sps:$4 sm:$0xff]  }
 0x23f   :  { %1435 = vmatprep.mubr.bf16.mxu1 %v593_v54  ;;  %v588_v60 = vld [vmem:[#allocation3 + $0x10] sm:$0xff] }
 0x240   :  { %v5601_v63 = vpack.c.bf16 %v588_v60, %v588_v60  ;;  %v5031_v60 = vld [vmem:[#allocation4 + $0x148] ss:$16 sps:$4 sm:$0xff]  }
 0x241   :  { %1447 = vmatpush1.bf16.msra.mxu0 %v4959_v57  ;;  %v5033_v57 = vld [vmem:[#allocation4 + $0x14c] ss:$16 sps:$4 sm:$0xff]  }
 0x242   :  { %1436 = vmatmul.mubr.bf16.vlgmr.msra.gmra.mxu1 %v5601_v63  ;;  %1448 = vmatprep.subr.bf16.mxu0 %v4967_v58  ;;  %v5028_v58 = vld [vmem:[#allocation4 + $0x388] ss:$16 sps:$4 sm:$0xff]  }
 0x243   :  { %1486 = vmatpush1.bf16.msra.mxu1 %v4962_v59  ;;  %1517 = vmatprep.mubr.bf16.mxu1 %v593_v54  ;;  %v5025_v54 = vld [vmem:[#allocation4 + $0x168] ss:$16 sps:$4 sm:$0xff]   ;;  %v5036_v59 = vld [vmem:[#allocation4 + $0x36c] ss:$16 sps:$4 sm:$0xff]  }
 0x244   :  { %1487 = vmatprep.subr.bf16.mxu1 %v4970_v0  ;;  %v5039_v0 = vld [vmem:[#allocation4 + $0x12c] ss:$16 sps:$4 sm:$0xff]  }
 0x245   :  { %1449 = vmatpush1.bf16.msra.mxu0 %v4965_v1  ;;  %v5034_v1 = vld [vmem:[#allocation4 + $0x368] ss:$16 sps:$4 sm:$0xff]  }
 0x246   :  { %1450 = vmatprep.subr.bf16.mxu0 %v4973_v2  ;;  %v5042_v2 = vld [vmem:[#allocation4 + $0x34c] ss:$16 sps:$4 sm:$0xff]  }
 0x247   :  { %1488 = vmatpush1.bf16.msra.mxu1 %v4968_v5  ;;  %v5037_v5 = vld [vmem:[#allocation4 + $0x128] ss:$16 sps:$4 sm:$0xff]  }
 0x248   :  { %1489 = vmatprep.subr.bf16.mxu1 %v4976_v6  ;;  %v5045_v6 = vld [vmem:[#allocation4 + $0x10c] ss:$16 sps:$4 sm:$0xff]  }
 0x249   :  { %1451 = vmatpush1.bf16.msra.mxu0 %v4971_v7  ;;  %v5040_v7 = vld [vmem:[#allocation4 + $0x348] ss:$16 sps:$4 sm:$0xff]  }
 0x24a   :  { %1452 = vmatprep.subr.bf16.mxu0 %v4979_v8  ;;  %v5048_v8 = vld [vmem:[#allocation4 + $0x32c] ss:$16 sps:$4 sm:$0xff]  }
 0x24b   :  { %1490 = vmatpush1.bf16.msra.mxu1 %v4974_v9  ;;  %v5043_v9 = vld [vmem:[#allocation4 + $0x108] ss:$16 sps:$4 sm:$0xff]  }
 0x24c   :  { %1491 = vmatprep.subr.bf16.mxu1 %v4982_v10  ;;  %v5046_v10 = vld [vmem:[#allocation4 + $0x328] ss:$16 sps:$4 sm:$0xff]  }
 0x24d   :  { %1453 = vmatpush1.bf16.msra.mxu0 %v4977_v11  ;;  %v5051_v11 = vld [vmem:[#allocation4 + $0x30c] ss:$16 sps:$4 sm:$0xff]  }
 0x24e   :  { %1454 = vmatprep.subr.bf16.mxu0 %v4985_v12  ;;  %v5049_v12 = vld [vmem:[#allocation4 + $0x308] ss:$16 sps:$4 sm:$0xff]  }
 0x24f   :  { %1492 = vmatpush1.bf16.msra.mxu1 %v4980_v13  ;;  %v1645_v13 = vld [vmem:[%s6152_s6 + $0x18] sm:$0xff] }
 0x250   :  { %1493 = vmatprep.subr.bf16.mxu1 %v4988_v14 }
 0x251   :  { %1455 = vmatpush1.bf16.msra.mxu0 %v4983_v15  ;;  %v1644_v15 = vld [vmem:[%s6152_s6 + $0x10] sm:$0xff] }
 0x252   :  { %1456 = vmatprep.subr.bf16.mxu0 %v4991_v16  ;;  %v1643_v16 = vld [vmem:[%s6152_s6 + $0x8] sm:$0xff] }
 0x253   :  { %1494 = vmatpush1.bf16.msra.mxu1 %v4986_v17  ;;  %v1642_v17 = vld [vmem:[%s6152_s6] sm:$0xff] }
 0x254   :  { %1495 = vmatprep.subr.bf16.mxu1 %v4994_v33 }
 0x255   :  { %1457 = vmatpush1.bf16.msra.mxu0 %v4989_v18 }
 0x256   :  { %1458 = vmatprep.subr.bf16.mxu0 %v4997_v19 }
 0x257   :  { %1496 = vmatpush1.bf16.msra.mxu1 %v4992_v20 }
 0x258   :  { %1497 = vmatprep.subr.bf16.mxu1 %v5000_v21 }
 0x259   :  { %1459 = vmatpush1.bf16.msra.mxu0 %v4995_v22 }
 0x25a   :  { %1460 = vmatprep.subr.bf16.mxu0 %v5003_v23 }
 0x25b   :  { %1498 = vmatpush1.bf16.msra.mxu1 %v4998_v24 }
 0x25c   :  { %1499 = vmatprep.subr.bf16.mxu1 %v5006_v27 }
 0x25d   :  { %1461 = vmatpush2.bf16.msra.mxu0 %v5001_v28 }
 0x25e   :  { %1462 = vmatprep.subr.bf16.mxu0 %v5009_v29 }
 0x25f   :  { %1500 = vmatpush1.bf16.msra.mxu1 %v5004_v30 }
 0x260   :  { %1501 = vmatprep.subr.bf16.mxu1 %v5012_v34 }
 0x261   :  { %1463 = vmatpush2.bf16.msra.mxu0 %v5007_v35 }
 0x262   :  { %1464 = vmatprep.subr.bf16.mxu0 %v5015_v36 }
 0x263   :  { %1502 = vmatpush2.bf16.msra.mxu1 %v5010_v39 }
 0x264   :  { %1503 = vmatprep.subr.bf16.mxu1 %v5018_v40 }
 0x265   :  { %1465 = vmatpush2.bf16.msra.mxu0 %v5013_v41 }
 0x266   :  { %1466 = vmatprep.subr.bf16.mxu0 %v5021_v42  ;;  %v1858_v42 = vld [vmem:[%s6153_s7 + $0x18] sm:$0xff] }
 0x267   :  { %1504 = vmatpush2.bf16.msra.mxu1 %v5016_v45 }
 0x268   :  { %1505 = vmatprep.subr.bf16.mxu1 %v5024_v46 }
 0x269   :  { %1467 = vmatpush2.bf16.msra.mxu0 %v5019_v47 }
 0x26a   :  { %1468 = vmatprep.subr.bf16.mxu0 %v5027_v48 }
 0x26b   :  { %1506 = vmatpush2.bf16.msra.mxu1 %v5022_v52 }
 0x26c   :  { %1507 = vmatprep.subr.bf16.mxu1 %v5030_v53 }
 0x26d   :  { %1469 = vmatpush2.bf16.msra.mxu0 %v5025_v54 }
 0x26e   :  { %1470 = vmatprep.subr.bf16.mxu0 %v5033_v57 }
 0x26f   :  { %1508 = vmatpush2.bf16.msra.mxu1 %v5028_v58 }
 0x270   :  { %1509 = vmatprep.subr.bf16.mxu1 %v5036_v59 }
 0x271   :  { %1471 = vmatpush2.bf16.msra.mxu0 %v5031_v60 }
 0x272   :  { %1472 = vmatprep.subr.bf16.mxu0 %v5039_v0 }
 0x273   :  { %1510 = vmatpush2.bf16.msra.mxu1 %v5034_v1 }
 0x274   :  { %1511 = vmatprep.subr.bf16.mxu1 %v5042_v2 }
 0x275   :  { %1473 = vmatpush2.bf16.msra.mxu0 %v5037_v5 }
 0x276   :  { %1474 = vmatprep.subr.bf16.mxu0 %v5045_v6 }
 0x277   :  { %1512 = vmatpush2.bf16.msra.mxu1 %v5040_v7 }
 0x278   :  { %1513 = vmatprep.subr.bf16.mxu1 %v5048_v8 }
 0x279   :  { %1475 = vmatpush2.bf16.msra.mxu0 %v5043_v9 }
 0x27a   :  { %4670 = vmatprep.subr.mxu0 %v1645_v13 }
 0x27b   :  { %1514 = vmatpush2.bf16.msra.mxu1 %v5046_v10 }
 0x27c   :  { %1477 = vmatmul.mubr.bf16.vlgmr.msra.gmra.mxu0 %v5598_v51  ;;  %1515 = vmatprep.subr.bf16.mxu1 %v5051_v11 }
 0x27d   :  { %4671 = vmatpush3.msra.mxu0 %v1645_v13 }
 0x27e   :  { %4672 = vmatprep.subr.mxu0 %v1644_v15 }
 0x27f   :  { %1516 = vmatpush2.bf16.msra.mxu1 %v5049_v12  ;;  %4673 = vmatpush3.msra.mxu0 %v1644_v15 }
 0x280   :  { %4674 = vmatprep.subr.mxu0 %v1643_v16  ;;  %4702 = vmatprep.subr.mxu1 %v1858_v42 }
 0x281   :  { %4675 = vmatpush3.msra.mxu0 %v1643_v16  ;;  %v1857_v16 = vld [vmem:[%s6153_s7 + $0x10] sm:$0xff] }
 0x282   :  { %1518 = vmatmul.mubr.bf16.vlgmr.msra.gmra.mxu1 %v5601_v63  ;;  %4676 = vmatprep.subr.mxu0 %v1642_v17 }
 0x283   :  { %4677 = vmatpush3.msra.mxu0 %v1642_v17  ;;  %4703 = vmatpush3.msra.mxu1 %v1858_v42 }
 0x284   :  { %4704 = vmatprep.subr.mxu1 %v1857_v16 }
 0x285   :  { %4705 = vmatpush3.msra.mxu1 %v1857_v16 }
 0x2fc   :  { %v1396_v14 = vpop.f32.mrf.mxu0 }
 0x2fe   :  { %v1398_v51 = vpop.f32.mrf.mxu0 }
 0x300   :  { %v1400_v63 = vpop.f32.mrf.mxu0 }
 0x302   :  { %v1401_v33 = vpop.f32.mrf.mxu0  ;;  %v1437_v18 = vpop.f32.mrf.mxu1 }
 0x303   :  { %v1438_v19 = vadd.f32 %v1437_v18, %v1396_v14  ;;  %v1855_v33 = vld [vmem:[%s6153_s7] sm:$0xff] }
 0x304   :  { %v1439_v20 = vpop.f32.mrf.mxu1 }
 0x305   :  { %1526 = vst [vmem:[#allocation3] sm:$0xff] %v1438_v19  ;;  %1531 = vst.msk [vmem:[#allocation2] sm:$0xff] %vm293_vm1, %v1438_v19  ;;  %v1440_v21 = vadd.f32 %v1439_v20, %v1398_v51  ;;  %1540 = vrot.lane.b32.xlu1 %v1438_v19, %s5270_s22  ;;  %1534 = vrot.lane.b32.xlu0 %v1438_v19, %s5271_s23 }
 0x306   :  { %v1441_v22 = vpop.f32.mrf.mxu1 }
 0x307   :  { %1527 = vst [vmem:[#allocation3 + $0x8] sm:$0xff] %v1440_v21  ;;  %1551 = vst.msk [vmem:[#allocation2 + $0x20] sm:$0xff] %vm293_vm1, %v1440_v21 }
 0x308   :  { %v1442_v23 = vpop.f32.mrf.mxu1 }
 0x309   :  { %1546 = vrot.lane.b32.xlu0 %v1438_v19, %s5269_s21  ;;  %1554 = vrot.lane.b32.xlu1 %v1440_v21, %s5271_s23 }
 0x30c   :  { %v1610_v24 = vld [vmem:[#allocation2] sm:$0xff] }
 0x30d   :  { %1560 = vrot.lane.b32.xlu0 %v1440_v21, %s5270_s22  ;;  %1566 = vrot.lane.b32.xlu1 %v1440_v21, %s5269_s21  ;;  %v5627_v27 = vadd.f32 %v1610_v24, %v5427_v25 }
 0x30e   :  { %v1614_v60 = vld [vmem:[#allocation2 + $0x20] sm:$0xff] }
 0x30f   :  { %4678 = vmatprep.mubr.msk.f32.mxu0 %vm293_vm1, %v5627_v27  ;;  %v5662_v2 = vadd.f32 %v1614_v60, %v5455_v37 }
 0x33c   :  { %v1478_v28 = vpop.f32.mrf.mxu0 }
 0x33e   :  { %v1480_v29 = vpop.f32.mrf.mxu0 }
 0x340   :  { %v1482_v30 = vpop.f32.mrf.mxu0 }
 0x342   :  { %v1483_v34 = vpop.f32.mrf.mxu0  ;;  %v1519_v35 = vpop.f32.mrf.mxu1 }
 0x343   :  { %v1520_v36 = vadd.f32 %v1519_v35, %v1478_v28 }
 0x344   :  { %v1521_v39 = vpop.f32.mrf.mxu1 }
 0x345   :  { %1528 = vst [vmem:[#allocation3 + $0x10] sm:$0xff] %v1520_v36  ;;  %1571 = vst.msk [vmem:[#allocation2 + $0x40] sm:$0xff] %vm293_vm1, %v1520_v36  ;;  %v1522_v40 = vadd.f32 %v1521_v39, %v1480_v29  ;;  %1580 = vrot.lane.b32.xlu1 %v1520_v36, %s5270_s22  ;;  %1574 = vrot.lane.b32.xlu0 %v1520_v36, %s5271_s23 }
 0x346   :  { %v1523_v25 = vpop.f32.mrf.mxu1 }
 0x347   :  { %1529 = vst [vmem:[#allocation3 + $0x18] sm:$0xff] %v1522_v40  ;;  %1591 = vst.msk [vmem:[#allocation2 + $0x60] sm:$0xff] %vm293_vm1, %v1522_v40 }
 0x348   :  { %v1524_v41 = vpop.f32.mrf.mxu1 }
 0x349   :  { %1586 = vrot.lane.b32.xlu0 %v1520_v36, %s5269_s21  ;;  %1594 = vrot.lane.b32.xlu1 %v1522_v40, %s5271_s23 }
 0x34d   :  { %1600 = vrot.lane.b32.xlu0 %v1522_v40, %s5270_s22  ;;  %1606 = vrot.lane.b32.xlu1 %v1522_v40, %s5269_s21 }
 0x34e   :  { %v1622_v15 = vld [vmem:[#allocation2 + $0x60] sm:$0xff] }
 0x377   :  { %v1541_v45 = vpop.permute.xlu1 %1540  ;;  %v1535_v46 = vpop.permute.xlu0 %1534 }
 0x378   :  { %1543 = vst.msk [vmem:[#allocation2 + $0x10] sm:$0xff] %vm293_vm1, %v1541_v45  ;;  %1537 = vst.msk [vmem:[#allocation2 + $0x8] sm:$0xff] %vm293_vm1, %v1535_v46 }
 0x37b   :  { %v1547_v47 = vpop.permute.xlu0 %1546  ;;  %v1555_v48 = vpop.permute.xlu1 %1554 }
 0x37c   :  { %1549 = vst.msk [vmem:[#allocation2 + $0x18] sm:$0xff] %vm293_vm1, %v1547_v47  ;;  %1557 = vst.msk [vmem:[#allocation2 + $0x28] sm:$0xff] %vm293_vm1, %v1555_v48 }
 0x37f   :  { %v1561_v52 = vpop.permute.xlu0 %1560  ;;  %v1567_v53 = vpop.permute.xlu1 %1566  ;;  %v1611_v54 = vld [vmem:[#allocation2 + $0x8] sm:$0xff]  ;;  %v1612_v57 = vld [vmem:[#allocation2 + $0x10] sm:$0xff] }
 0x380   :  { %1563 = vst.msk [vmem:[#allocation2 + $0x30] sm:$0xff] %vm293_vm1, %v1561_v52  ;;  %1569 = vst.msk [vmem:[#allocation2 + $0x38] sm:$0xff] %vm293_vm1, %v1567_v53  ;;  %v5649_v58 = vadd.f32 %v1611_v54, %v5429_v26  ;;  %v5652_v59 = vadd.f32 %v1612_v57, %v5441_v31  ;;  %v4273_v53 = vld [vmem:[%s6149_s3 + $0x30] sm:$0xff] }
 0x382   :  { %4679 = vmatmul.mubr.msk.f32.vlgmr.msra.gmra.mxu0 %vm293_vm1, %v5649_v58 }
 0x383   :  { %4681 = vmatprep.mubr.msk.f32.mxu0 %vm293_vm1, %v5652_v59  ;;  %v1613_v0 = vld [vmem:[#allocation2 + $0x18] sm:$0xff]  ;;  %v1615_v5 = vld [vmem:[#allocation2 + $0x28] sm:$0xff] }
 0x384   :  { %v5659_v1 = vadd.f32 %v1613_v0, %v5443_v32  ;;  %v5669_v31 = vadd.f32 %v1615_v5, %v5457_v38  ;;  %v1618_v32 = vld [vmem:[#allocation2 + $0x40] sm:$0xff]  ;;  %v4272_v0 = vld [vmem:[%s6149_s3 + $0x28] sm:$0xff] }
 0x385   :  { %v5682_v8 = vadd.f32 %v1618_v32, %v5483_v49 }
 0x386   :  { %4682 = vmatmul.mubr.msk.f32.gmra.mxu0 %vm293_vm1, %v5659_v1 }
 0x387   :  { %4684 = vmatprep.mubr.msk.f32.mxu0 %vm293_vm1, %v5662_v2  ;;  %v1616_v26 = vld [vmem:[#allocation2 + $0x30] sm:$0xff]  ;;  %v1617_v7 = vld [vmem:[#allocation2 + $0x38] sm:$0xff] }
 0x388   :  { %v5672_v6 = vadd.f32 %v1616_v26, %v5469_v43  ;;  %v5679_v37 = vadd.f32 %v1617_v7, %v5471_v44  ;;  %v4271_v26 = vld [vmem:[%s6149_s3 + $0x20] sm:$0xff] }
 0x38a   :  { %4685 = vmatmul.mubr.msk.f32.gmra.mxu0 %vm293_vm1, %v5669_v31 }
 0x38b   :  { %4687 = vmatprep.mubr.msk.f32.mxu0 %vm293_vm1, %v5672_v6 }
 0x38e   :  { %4688 = vmatmul.mubr.msk.f32.gmra.mxu0 %vm293_vm1, %v5679_v37 }
 0x38f   :  { %4690 = vmatprep.mubr.msk.f32.mxu0 %vm293_vm1, %v5682_v8 }
 0x3b7   :  { %v1581_v38 = vpop.permute.xlu1 %1580  ;;  %v1575_v43 = vpop.permute.xlu0 %1574 }
 0x3b8   :  { %1583 = vst.msk [vmem:[#allocation2 + $0x50] sm:$0xff] %vm293_vm1, %v1581_v38  ;;  %1577 = vst.msk [vmem:[#allocation2 + $0x48] sm:$0xff] %vm293_vm1, %v1575_v43 }
 0x3bb   :  { %v1587_v9 = vpop.permute.xlu0 %1586  ;;  %v1595_v10 = vpop.permute.xlu1 %1594 }
 0x3bc   :  { %1589 = vst.msk [vmem:[#allocation2 + $0x58] sm:$0xff] %vm293_vm1, %v1587_v9  ;;  %1597 = vst.msk [vmem:[#allocation2 + $0x68] sm:$0xff] %vm293_vm1, %v1595_v10 }
 0x3bf   :  { %v1601_v44 = vpop.permute.xlu0 %1600  ;;  %v1607_v49 = vpop.permute.xlu1 %1606  ;;  %v1619_v11 = vld [vmem:[#allocation2 + $0x48] sm:$0xff]  ;;  %v1620_v12 = vld [vmem:[#allocation2 + $0x50] sm:$0xff] }
 0x3c0   :  { %1603 = vst.msk [vmem:[#allocation2 + $0x70] sm:$0xff] %vm293_vm1, %v1601_v44  ;;  %1609 = vst.msk [vmem:[#allocation2 + $0x78] sm:$0xff] %vm293_vm1, %v1607_v49  ;;  %v5695_v13 = vadd.f32 %v1619_v11, %v5485_v50  ;;  %v5698_v14 = vadd.f32 %v1620_v12, %v5497_v55  ;;  %v1856_v50 = vld [vmem:[%s6153_s7 + $0x8] sm:$0xff]  ;;  %v5714_v55 = vadd.f32 %v1622_v15, %v5511_v61 }
 0x3c1   :  { %4706 = vmatprep.subr.mxu1 %v1856_v50 }
 0x3c2   :  { %4691 = vmatmul.mubr.msk.f32.gmra.mxu0 %vm293_vm1, %v5695_v13  ;;  %4707 = vmatpush3.msra.mxu1 %v1856_v50 }
 0x3c3   :  { %4693 = vmatprep.mubr.msk.f32.mxu0 %vm293_vm1, %v5698_v14  ;;  %v1621_v51 = vld [vmem:[#allocation2 + $0x58] sm:$0xff]  ;;  %v1623_v17 = vld [vmem:[#allocation2 + $0x68] sm:$0xff]  ;;  %4708 = vmatprep.subr.mxu1 %v1855_v33 }
 0x3c4   :  { %v5708_v63 = vadd.f32 %v1621_v51, %v5499_v56  ;;  %v5724_v18 = vadd.f32 %v1623_v17, %v5513_v62  ;;  %4709 = vmatpush3.msra.mxu1 %v1855_v33  ;;  %v4274_v62 = vld [vmem:[%s6149_s3 + $0x38] sm:$0xff] }
 0x3c5   :  { %4734 = vmatprep.subr.mxu0 %v4274_v62 }
 0x3c6   :  { %4694 = vmatmul.mubr.msk.f32.gmra.mxu0 %vm293_vm1, %v5708_v63 }
 0x3c7   :  { %4696 = vmatprep.mubr.msk.f32.mxu0 %vm293_vm1, %v5714_v55  ;;  %v1624_v56 = vld [vmem:[#allocation2 + $0x70] sm:$0xff]  ;;  %v1625_v19 = vld [vmem:[#allocation2 + $0x78] sm:$0xff]  ;;  %4735 = vmatpush3.msra.mxu0 %v4274_v62 }
 0x3c8   :  { %v5727_v61 = vadd.f32 %v1624_v56, %v5525_v3  ;;  %v5734_v20 = vadd.f32 %v1625_v19, %v5527_v4  ;;  %4736 = vmatprep.subr.mxu0 %v4273_v53 }
 0x3c9   :  { %4737 = vmatpush3.msra.mxu0 %v4273_v53  ;;  %v5052_v53 = vld [vmem:[#allocation4 + $0x4e0] ss:$16 sps:$4 sm:$0xff]  }
 0x3ca   :  { %4697 = vmatmul.mubr.msk.f32.gmra.mxu0 %vm293_vm1, %v5724_v18  ;;  %4738 = vmatprep.subr.mxu0 %v4272_v0 }
 0x3cb   :  { %4699 = vmatprep.mubr.msk.f32.mxu0 %vm293_vm1, %v5727_v61  ;;  %4739 = vmatpush3.msra.mxu0 %v4272_v0  ;;  %v5055_v0 = vld [vmem:[#allocation4 + $0x4c0] ss:$16 sps:$4 sm:$0xff]  }
 0x3cc   :  { %4740 = vmatprep.subr.mxu0 %v4271_v26 }
 0x3cd   :  { %4741 = vmatpush3.msra.mxu0 %v4271_v26 }
 0x3ce   :  { %4700 = vmatmul.mubr.msk.f32.gmra.mxu0 %vm293_vm1, %v5734_v20 }
 0x442   :  { %v4680_v3 = vpop.f32.mrf.mxu0 }
 0x443   :  { %v1840_v23 = vmax.f32 %v4680_v3, 0.0 }
 0x444   :  { %v1760_v21 = vpop.f32.mrf.mxu0 }
 0x445   :  { %v1839_v22 = vmax.f32 %v1760_v21, 0.0 }
 0x446   :  { %v4683_v24 = vpop.f32.mrf.mxu0 }
 0x447   :  { %4710 = vmatprep.mubr.msk.f32.mxu1 %vm293_vm1, %v1839_v22  ;;  %v1842_v29 = vmax.f32 %v4683_v24, 0.0 }
 0x448   :  { %v1770_v28 = vpop.f32.mrf.mxu0  ;;  %4711 = vmatmul.mubr.msk.f32.vlgmr.msra.gmra.mxu1 %vm293_vm1, %v1840_v23 }
 0x449   :  { %v1841_v4 = vmax.f32 %v1770_v28, 0.0 }
 0x44a   :  { %v4686_v30 = vpop.f32.mrf.mxu0 }
 0x44b   :  { %4713 = vmatprep.mubr.msk.f32.mxu1 %vm293_vm1, %v1841_v4  ;;  %v1844_v36 = vmax.f32 %v4686_v30, 0.0 }
 0x44c   :  { %v1780_v34 = vpop.f32.mrf.mxu0  ;;  %4714 = vmatmul.mubr.msk.f32.gmra.mxu1 %vm293_vm1, %v1842_v29 }
 0x44d   :  { %v1843_v35 = vmax.f32 %v1780_v34, 0.0 }
 0x44e   :  { %v4689_v39 = vpop.f32.mrf.mxu0 }
 0x44f   :  { %4716 = vmatprep.mubr.msk.f32.mxu1 %vm293_vm1, %v1843_v35  ;;  %v1846_v41 = vmax.f32 %v4689_v39, 0.0 }
 0x450   :  { %v1790_v40 = vpop.f32.mrf.mxu0  ;;  %4717 = vmatmul.mubr.msk.f32.gmra.mxu1 %vm293_vm1, %v1844_v36 }
 0x451   :  { %v1845_v25 = vmax.f32 %v1790_v40, 0.0 }
 0x453   :  { %4719 = vmatprep.mubr.msk.f32.mxu1 %vm293_vm1, %v1845_v25 }
 0x454   :  { %4720 = vmatmul.mubr.msk.f32.gmra.mxu1 %vm293_vm1, %v1846_v41 }
 0x482   :  { %v4692_v42 = vpop.f32.mrf.mxu0 }
 0x483   :  { %v1848_v47 = vmax.f32 %v4692_v42, 0.0 }
 0x484   :  { %v1800_v45 = vpop.f32.mrf.mxu0 }
 0x485   :  { %v1847_v46 = vmax.f32 %v1800_v45, 0.0 }
 0x486   :  { %v4695_v48 = vpop.f32.mrf.mxu0 }
 0x487   :  { %4722 = vmatprep.mubr.msk.f32.mxu1 %vm293_vm1, %v1847_v46  ;;  %v1850_v57 = vmax.f32 %v4695_v48, 0.0 }
 0x488   :  { %v1810_v52 = vpop.f32.mrf.mxu0  ;;  %4723 = vmatmul.mubr.msk.f32.gmra.mxu1 %vm293_vm1, %v1848_v47 }
 0x489   :  { %v1849_v54 = vmax.f32 %v1810_v52, 0.0 }
 0x48a   :  { %v4698_v60 = vpop.f32.mrf.mxu0 }
 0x48b   :  { %4725 = vmatprep.mubr.msk.f32.mxu1 %vm293_vm1, %v1849_v54  ;;  %v1852_v32 = vmax.f32 %v4698_v60, 0.0  ;;  %v5054_v54 = vld [vmem:[#allocation4 + $0x4e4] ss:$16 sps:$4 sm:$0xff]  }
 0x48c   :  { %v1820_v5 = vpop.f32.mrf.mxu0  ;;  %4726 = vmatmul.mubr.msk.f32.gmra.mxu1 %vm293_vm1, %v1850_v57  ;;  %v5057_v60 = vld [vmem:[#allocation4 + $0x4c4] ss:$16 sps:$4 sm:$0xff]   ;;  %3147 = vmatprep.subr.bf16.mxu1 %v5054_v54  ;;  %v5115_v54 = vld [vmem:[#allocation4 + $0x7c0] ss:$16 sps:$4 sm:$0xff]  }
 0x48d   :  { %v1851_v7 = vmax.f32 %v1820_v5, 0.0  ;;  %3148 = vmatpush1.bf16.msra.mxu1 %v5052_v53  ;;  %v5060_v5 = vld [vmem:[#allocation4 + $0x4a4] ss:$16 sps:$4 sm:$0xff]  }
 0x48e   :  { %v4701_v38 = vpop.f32.mrf.mxu0  ;;  %3149 = vmatprep.subr.bf16.mxu1 %v5057_v60  ;;  %v5117_v53 = vld [vmem:[#allocation4 + $0x7c4] ss:$16 sps:$4 sm:$0xff]  }
 0x48f   :  { %4728 = vmatprep.mubr.msk.f32.mxu1 %vm293_vm1, %v1851_v7  ;;  %v1854_v10 = vmax.f32 %v4701_v38, 0.0  ;;  %v5058_v38 = vld [vmem:[#allocation4 + $0x4a0] ss:$16 sps:$4 sm:$0xff]   ;;  %v5120_v60 = vld [vmem:[#allocation4 + $0x564] ss:$16 sps:$4 sm:$0xff]  }
 0x490   :  { %v1830_v43 = vpop.f32.mrf.mxu0  ;;  %4729 = vmatmul.mubr.msk.f32.gmra.mxu1 %vm293_vm1, %v1852_v32 }
 0x491   :  { %v1853_v9 = vmax.f32 %v1830_v43, 0.0  ;;  %3150 = vmatpush1.bf16.msra.mxu1 %v5055_v0  ;;  %v5123_v0 = vld [vmem:[#allocation4 + $0x7a4] ss:$16 sps:$4 sm:$0xff]  }
 0x492   :  { %3151 = vmatprep.subr.bf16.mxu1 %v5060_v5 }
 0x493   :  { %4731 = vmatprep.mubr.msk.f32.mxu1 %vm293_vm1, %v1853_v9  ;;  %v5061_v9 = vld [vmem:[#allocation4 + $0x6e0] ss:$16 sps:$4 sm:$0xff]  }
 0x494   :  { %4732 = vmatmul.mubr.msk.f32.gmra.mxu1 %vm293_vm1, %v1854_v10  ;;  %v5063_v10 = vld [vmem:[#allocation4 + $0x6e4] ss:$16 sps:$4 sm:$0xff]  }
 0x495   :  { %3152 = vmatpush1.bf16.msra.mxu1 %v5058_v38  ;;  %3188 = vmatprep.subr.bf16.mxu0 %v5063_v10  ;;  %v5124_v10 = vld [vmem:[#allocation4 + $0x540] ss:$16 sps:$4 sm:$0xff]  }
 0x508   :  { %v4712_v44 = vpop.f32.mrf.mxu1 }
 0x509   :  { %v5770_v12 = vadd.f32 %v4712_v44, %v5649_v58  ;;  %v5064_v44 = vld [vmem:[#allocation4 + $0x480] ss:$16 sps:$4 sm:$0xff]  }
 0x50a   :  { %v1973_v49 = vpop.f32.mrf.mxu1 }
 0x50b   :  { %v5767_v11 = vadd.f32 %v1973_v49, %v5627_v27  ;;  %v5066_v49 = vld [vmem:[#allocation4 + $0x484] ss:$16 sps:$4 sm:$0xff]  }
 0x50c   :  { %v4715_v15 = vpop.f32.mrf.mxu1  ;;  %3153 = vmatprep.subr.bf16.mxu1 %v5066_v49  ;;  %v5129_v49 = vld [vmem:[#allocation4 + $0x784] ss:$16 sps:$4 sm:$0xff]  }
 0x50d   :  { %4742 = vmatprep.mubr.msk.f32.mxu0 %vm293_vm1, %v5767_v11  ;;  %v5780_v50 = vadd.f32 %v4715_v15, %v5659_v1  ;;  %v5069_v15 = vld [vmem:[#allocation4 + $0x6c4] ss:$16 sps:$4 sm:$0xff]   ;;  %3154 = vmatpush1.bf16.msra.mxu1 %v5064_v44 }
 0x50e   :  { %v1983_v16 = vpop.f32.mrf.mxu1  ;;  %4743 = vmatmul.mubr.msk.f32.vlgmr.msra.gmra.mxu0 %vm293_vm1, %v5770_v12 }
 0x50f   :  { %v5777_v51 = vadd.f32 %v1983_v16, %v5652_v59  ;;  %v5072_v16 = vld [vmem:[#allocation4 + $0x464] ss:$16 sps:$4 sm:$0xff]   ;;  %3189 = vmatpush1.bf16.msra.mxu0 %v5061_v9 }
 0x510   :  { %v4718_v17 = vpop.f32.mrf.mxu1  ;;  %3190 = vmatprep.subr.bf16.mxu0 %v5069_v15  ;;  %3155 = vmatprep.subr.bf16.mxu1 %v5072_v16  ;;  %v5127_v16 = vld [vmem:[#allocation4 + $0x780] ss:$16 sps:$4 sm:$0xff]  }
 0x511   :  { %4745 = vmatprep.mubr.msk.f32.mxu0 %vm293_vm1, %v5777_v51  ;;  %v5790_v33 = vadd.f32 %v4718_v17, %v5669_v31  ;;  %v5067_v17 = vld [vmem:[#allocation4 + $0x6c0] ss:$16 sps:$4 sm:$0xff]  }
 0x512   :  { %v1993_v27 = vpop.f32.mrf.mxu1  ;;  %4746 = vmatmul.mubr.msk.f32.gmra.mxu0 %vm293_vm1, %v5780_v50 }
 0x513   :  { %v5787_v58 = vadd.f32 %v1993_v27, %v5662_v2  ;;  %v5075_v27 = vld [vmem:[#allocation4 + $0x6a4] ss:$16 sps:$4 sm:$0xff]   ;;  %3191 = vmatpush1.bf16.msra.mxu0 %v5067_v17 }
 0x514   :  { %v4721_v56 = vpop.f32.mrf.mxu1  ;;  %3192 = vmatprep.subr.bf16.mxu0 %v5075_v27  ;;  %v5132_v27 = vld [vmem:[#allocation4 + $0x524] ss:$16 sps:$4 sm:$0xff]  }
 0x515   :  { %4748 = vmatprep.mubr.msk.f32.mxu0 %vm293_vm1, %v5787_v58  ;;  %v5800_v19 = vadd.f32 %v4721_v56, %v5679_v37  ;;  %v5070_v56 = vld [vmem:[#allocation4 + $0x460] ss:$16 sps:$4 sm:$0xff]  }
 0x516   :  { %v2003_v59 = vpop.f32.mrf.mxu1  ;;  %4749 = vmatmul.mubr.msk.f32.gmra.mxu0 %vm293_vm1, %v5790_v33  ;;  %3156 = vmatpush1.bf16.msra.mxu1 %v5070_v56 }
 0x517   :  { %v5797_v1 = vadd.f32 %v2003_v59, %v5672_v6  ;;  %v5078_v59 = vld [vmem:[#allocation4 + $0x444] ss:$16 sps:$4 sm:$0xff]  }
 0x518   :  { %3157 = vmatprep.subr.bf16.mxu1 %v5078_v59  ;;  %v5130_v59 = vld [vmem:[#allocation4 + $0x520] ss:$16 sps:$4 sm:$0xff]  }
 0x519   :  { %4751 = vmatprep.mubr.msk.f32.mxu0 %vm293_vm1, %v5797_v1 }
 0x51a   :  { %4752 = vmatmul.mubr.msk.f32.gmra.mxu0 %vm293_vm1, %v5800_v19 }
 0x548   :  { %v4724_v2 = vpop.f32.mrf.mxu1 }
 0x549   :  { %v5810_v3 = vadd.f32 %v4724_v2, %v5695_v13  ;;  %v5073_v2 = vld [vmem:[#allocation4 + $0x6a0] ss:$16 sps:$4 sm:$0xff]  }
 0x54a   :  { %v2013_v31 = vpop.f32.mrf.mxu1  ;;  %3193 = vmatpush1.bf16.msra.mxu0 %v5073_v2 }
 0x54b   :  { %v5807_v62 = vadd.f32 %v2013_v31, %v5682_v8  ;;  %v5081_v31 = vld [vmem:[#allocation4 + $0x684] ss:$16 sps:$4 sm:$0xff]  }
 0x54c   :  { %v4727_v21 = vpop.f32.mrf.mxu1  ;;  %3194 = vmatprep.subr.bf16.mxu0 %v5081_v31  ;;  %v5133_v31 = vld [vmem:[#allocation4 + $0x760] ss:$16 sps:$4 sm:$0xff]  }
 0x54d   :  { %4754 = vmatprep.mubr.msk.f32.mxu0 %vm293_vm1, %v5807_v62  ;;  %v5820_v22 = vadd.f32 %v4727_v21, %v5708_v63  ;;  %v5076_v21 = vld [vmem:[#allocation4 + $0x440] ss:$16 sps:$4 sm:$0xff]  }
 0x54e   :  { %v2023_v6 = vpop.f32.mrf.mxu1  ;;  %4755 = vmatmul.mubr.msk.f32.gmra.mxu0 %vm293_vm1, %v5810_v3  ;;  %3158 = vmatpush1.bf16.msra.mxu1 %v5076_v21  ;;  %v5135_v21 = vld [vmem:[#allocation4 + $0x764] ss:$16 sps:$4 sm:$0xff]  }
 0x54f   :  { %v5817_v37 = vadd.f32 %v2023_v6, %v5698_v14  ;;  %v5084_v6 = vld [vmem:[#allocation4 + $0x424] ss:$16 sps:$4 sm:$0xff]  }
 0x550   :  { %v4730_v23 = vpop.f32.mrf.mxu1  ;;  %3159 = vmatprep.subr.bf16.mxu1 %v5084_v6 }
 0x551   :  { %4757 = vmatprep.mubr.msk.f32.mxu0 %vm293_vm1, %v5817_v37  ;;  %v5830_v24 = vadd.f32 %v4730_v23, %v5724_v18  ;;  %v5079_v23 = vld [vmem:[#allocation4 + $0x680] ss:$16 sps:$4 sm:$0xff]  }
 0x552   :  { %v2033_v8 = vpop.f32.mrf.mxu1  ;;  %4758 = vmatmul.mubr.msk.f32.gmra.mxu0 %vm293_vm1, %v5820_v22 }
 0x553   :  { %v5827_v13 = vadd.f32 %v2033_v8, %v5714_v55  ;;  %v5849_v55 = vld [vmem:[%s6150_s4 + $0x1] ss:$0 sm:$0xff]  ;;  %v5087_v8 = vld [vmem:[#allocation4 + $0x664] ss:$16 sps:$4 sm:$0xff]   ;;  %3195 = vmatpush1.bf16.msra.mxu0 %v5079_v23 }
 0x554   :  { %v4733_v28 = vpop.f32.mrf.mxu1  ;;  %3196 = vmatprep.subr.bf16.mxu0 %v5087_v8  ;;  %v5136_v8 = vld [vmem:[#allocation4 + $0x500] ss:$16 sps:$4 sm:$0xff]  }
 0x555   :  { %4760 = vmatprep.mubr.msk.f32.mxu0 %vm293_vm1, %v5827_v13  ;;  %v5840_v4 = vadd.f32 %v4733_v28, %v5734_v20  ;;  %v5082_v28 = vld [vmem:[#allocation4 + $0x420] ss:$16 sps:$4 sm:$0xff]  }
 0x556   :  { %v2043_v14 = vpop.f32.mrf.mxu1  ;;  %4761 = vmatmul.mubr.msk.f32.gmra.mxu0 %vm293_vm1, %v5830_v24  ;;  %3160 = vmatpush1.bf16.msra.mxu1 %v5082_v28  ;;  %v5138_v28 = vld [vmem:[#allocation4 + $0x504] ss:$16 sps:$4 sm:$0xff]  }
 0x557   :  { %v5837_v63 = vadd.f32 %v2043_v14, %v5727_v61  ;;  %v5090_v14 = vld [vmem:[#allocation4 + $0x404] ss:$16 sps:$4 sm:$0xff]  }
 0x558   :  { %3161 = vmatprep.subr.bf16.mxu1 %v5090_v14 }
 0x559   :  { %4763 = vmatprep.mubr.msk.f32.mxu0 %vm293_vm1, %v5837_v63 }
 0x55a   :  { %4764 = vmatmul.mubr.msk.f32.gmra.mxu0 %vm293_vm1, %v5840_v4 }
 0x5ce   :  { %v4744_v18 = vpop.f32.mrf.mxu0 }
 0x5cf   :  { %v2201_v29 = vadd.f32 %v4744_v18, %v5849_v55  ;;  %v5085_v18 = vld [vmem:[#allocation4 + $0x660] ss:$16 sps:$4 sm:$0xff]  }
 0x5d0   :  { %v2195_v30 = vpop.f32.mrf.mxu0  ;;  %3197 = vmatpush1.bf16.msra.mxu0 %v5085_v18 }
 0x5d1   :  { %2275 = vst.msk [vmem:[#allocation2 + $0x8] sm:$0xff] %vm293_vm1, %v2201_v29  ;;  %v2196_v61 = vadd.f32 %v5849_v55, %v2195_v30  ;;  %v5093_v29 = vld [vmem:[#allocation4 + $0x644] ss:$16 sps:$4 sm:$0xff]   ;;  %v5088_v30 = vld [vmem:[#allocation4 + $0x400] ss:$16 sps:$4 sm:$0xff]  }
 0x5d2   :  { %v4747_v20 = vpop.f32.mrf.mxu0  ;;  %3198 = vmatprep.subr.bf16.mxu0 %v5093_v29  ;;  %3162 = vmatpush1.bf16.msra.mxu1 %v5088_v30 }
 0x5d3   :  { %2274 = vst.msk [vmem:[#allocation2] sm:$0xff] %vm293_vm1, %v2196_v61  ;;  %v2211_v34 = vadd.f32 %v4747_v20, %v5849_v55  ;;  %v5096_v61 = vld [vmem:[#allocation4 + $0x5e4] ss:$16 sps:$4 sm:$0xff]   ;;  %v5091_v20 = vld [vmem:[#allocation4 + $0x640] ss:$16 sps:$4 sm:$0xff]  }
 0x5d4   :  { %v2205_v35 = vpop.f32.mrf.mxu0  ;;  %3163 = vmatprep.subr.bf16.mxu1 %v5096_v61  ;;  %3199 = vmatpush1.bf16.msra.mxu0 %v5091_v20  ;;  %v5141_v61 = vld [vmem:[#allocation4 + $0x744] ss:$16 sps:$4 sm:$0xff]  }
 0x5d5   :  { %2277 = vst.msk [vmem:[#allocation2 + $0x18] sm:$0xff] %vm293_vm1, %v2211_v34  ;;  %v2206_v36 = vadd.f32 %v5849_v55, %v2205_v35  ;;  %v5099_v34 = vld [vmem:[#allocation4 + $0x624] ss:$16 sps:$4 sm:$0xff]   ;;  %v5094_v35 = vld [vmem:[#allocation4 + $0x5e0] ss:$16 sps:$4 sm:$0xff]  }
 0x5d6   :  { %v4750_v39 = vpop.f32.mrf.mxu0  ;;  %3200 = vmatprep.subr.bf16.mxu0 %v5099_v34  ;;  %3164 = vmatpush2.bf16.msra.mxu1 %v5094_v35  ;;  %v5139_v34 = vld [vmem:[#allocation4 + $0x740] ss:$16 sps:$4 sm:$0xff]  }
 0x5d7   :  { %2276 = vst.msk [vmem:[#allocation2 + $0x10] sm:$0xff] %vm293_vm1, %v2206_v36  ;;  %v2221_v40 = vadd.f32 %v4750_v39, %v5849_v55  ;;  %v5102_v36 = vld [vmem:[#allocation4 + $0x5c4] ss:$16 sps:$4 sm:$0xff]   ;;  %v5097_v39 = vld [vmem:[#allocation4 + $0x620] ss:$16 sps:$4 sm:$0xff]  }
 0x5d8   :  { %v2215_v25 = vpop.f32.mrf.mxu0  ;;  %v2292_v41 = vld [vmem:[#allocation2 + $0x8] sm:$0xff]  ;;  %3165 = vmatprep.subr.bf16.mxu1 %v5102_v36  ;;  %3201 = vmatpush1.bf16.msra.mxu0 %v5097_v39 }
 0x5d9   :  { %2279 = vst.msk [vmem:[#allocation2 + $0x28] sm:$0xff] %vm293_vm1, %v2221_v40  ;;  %v2216_v42 = vadd.f32 %v5849_v55, %v2215_v25  ;;  %2294 = vrot.lane.b32.xlu0 %v2292_v41, %s5269_s21  ;;  %v5105_v40 = vld [vmem:[#allocation4 + $0x604] ss:$16 sps:$4 sm:$0xff]   ;;  %v5100_v25 = vld [vmem:[#allocation4 + $0x5c0] ss:$16 sps:$4 sm:$0xff]  }
 0x5da   :  { %v4753_v45 = vpop.f32.mrf.mxu0  ;;  %v2290_v46 = vld [vmem:[#allocation2] sm:$0xff]  ;;  %3202 = vmatprep.subr.bf16.mxu0 %v5105_v40  ;;  %3166 = vmatpush2.bf16.msra.mxu1 %v5100_v25  ;;  %v5144_v36 = vld [vmem:[#allocation4 + $0x4ec] ss:$16 sps:$4 sm:$0xff]  }
 0x5db   :  { %2278 = vst.msk [vmem:[#allocation2 + $0x20] sm:$0xff] %vm293_vm1, %v2216_v42  ;;  %v2231_v47 = vadd.f32 %v4753_v45, %v5849_v55  ;;  %2291 = vst.msk [vmem:[#allocation3] sm:$0xff] %vm293_vm1, %v2290_v46  ;;  %v5108_v41 = vld [vmem:[#allocation4 + $0x5a4] ss:$16 sps:$4 sm:$0xff]   ;;  %v5103_v42 = vld [vmem:[#allocation4 + $0x600] ss:$16 sps:$4 sm:$0xff]  }
 0x5dc   :  { %v2225_v48 = vpop.f32.mrf.mxu0  ;;  %v5111_v45 = vld [vmem:[#allocation4 + $0x7e4] ss:$16 sps:$4 sm:$0xff]   ;;  %v5106_v46 = vld [vmem:[#allocation4 + $0x5a0] ss:$16 sps:$4 sm:$0xff]   ;;  %3167 = vmatprep.subr.bf16.mxu1 %v5108_v41  ;;  %3203 = vmatpush1.bf16.msra.mxu0 %v5103_v42  ;;  %v2304_v42 = vld [vmem:[#allocation2 + $0x18] sm:$0xff] }
 0x5dd   :  { %2281 = vst.msk [vmem:[#allocation2 + $0x38] sm:$0xff] %vm293_vm1, %v2231_v47  ;;  %v2226_v52 = vadd.f32 %v5849_v55, %v2225_v48  ;;  %v5114_v47 = vld [vmem:[#allocation4 + $0x584] ss:$16 sps:$4 sm:$0xff]   ;;  %v5109_v48 = vld [vmem:[#allocation4 + $0x7e0] ss:$16 sps:$4 sm:$0xff]   ;;  %3204 = vmatprep.subr.bf16.mxu0 %v5111_v45 }
 0x5de   :  { %v2298_v57 = vld [vmem:[#allocation2 + $0x10] sm:$0xff]  ;;  %3168 = vmatpush2.bf16.msra.mxu1 %v5106_v46 }
 0x5df   :  { %2280 = vst.msk [vmem:[#allocation2 + $0x30] sm:$0xff] %vm293_vm1, %v2226_v52  ;;  %2300 = vrot.lane.b32.xlu0 %v2298_v57, %s5270_s22  ;;  %v5112_v52 = vld [vmem:[#allocation4 + $0x580] ss:$16 sps:$4 sm:$0xff]   ;;  %3169 = vmatprep.subr.bf16.mxu1 %v5114_v47  ;;  %v5147_v25 = vld [vmem:[#allocation4 + $0x724] ss:$16 sps:$4 sm:$0xff]  }
 0x5e0   :  { %v2312_v26 = vld [vmem:[#allocation2 + $0x28] sm:$0xff]  ;;  %3205 = vmatpush2.bf16.msra.mxu0 %v5109_v48  ;;  %v5118_v57 = vld [vmem:[#allocation4 + $0x560] ss:$16 sps:$4 sm:$0xff]   ;;  %v5153_v46 = vld [vmem:[#allocation4 + $0x704] ss:$16 sps:$4 sm:$0xff]  }
 0x5e1   :  { %3206 = vmatprep.subr.bf16.mxu0 %v5117_v53  ;;  %v5145_v41 = vld [vmem:[#allocation4 + $0x720] ss:$16 sps:$4 sm:$0xff]  }
 0x5e2   :  { %v2310_v7 = vld [vmem:[#allocation2 + $0x20] sm:$0xff]  ;;  %3170 = vmatpush2.bf16.msra.mxu1 %v5112_v52  ;;  %v5159_v52 = vld [vmem:[#allocation4 + $0x6ec] ss:$16 sps:$4 sm:$0xff]  }
 0x5e3   :  { %2314 = vrot.lane.b32.xlu0 %v2312_v26, %s5269_s21  ;;  %2311 = vst.msk [vmem:[#allocation3 + $0x8] sm:$0xff] %vm293_vm1, %v2310_v7  ;;  %3171 = vmatprep.subr.bf16.mxu1 %v5120_v60  ;;  %v5121_v26 = vld [vmem:[#allocation4 + $0x7a0] ss:$16 sps:$4 sm:$0xff]  }
 0x5e4   :  { %v2324_v32 = vld [vmem:[#allocation2 + $0x38] sm:$0xff]  ;;  %3207 = vmatpush2.bf16.msra.mxu0 %v5115_v54  ;;  %v5151_v47 = vld [vmem:[#allocation4 + $0x700] ss:$16 sps:$4 sm:$0xff]  }
 0x5e5   :  { %2326 = vrot.lane.b32.xlu1 %v2324_v32, %s5271_s23  ;;  %3208 = vmatprep.subr.bf16.mxu0 %v5123_v0 }
 0x5e6   :  { %v2318_v43 = vld [vmem:[#allocation2 + $0x30] sm:$0xff]  ;;  %3172 = vmatpush2.bf16.msra.mxu1 %v5118_v57 }
 0x5e8   :  { %3209 = vmatpush2.bf16.msra.mxu0 %v5121_v26 }
 0x5e9   :  { %2320 = vrot.lane.b32.xlu1 %v2318_v43, %s5270_s22  ;;  %v5126_v43 = vld [vmem:[#allocation4 + $0x544] ss:$16 sps:$4 sm:$0xff]   ;;  %3210 = vmatprep.subr.bf16.mxu0 %v5129_v49  ;;  %v5142_v49 = vld [vmem:[#allocation4 + $0x4e8] ss:$16 sps:$4 sm:$0xff]  }
 0x5ea   :  { %3173 = vmatprep.subr.bf16.mxu1 %v5126_v43 }
 0x5eb   :  { %3174 = vmatpush2.bf16.msra.mxu1 %v5124_v10 }
 0x5ec   :  { %3211 = vmatpush2.bf16.msra.mxu0 %v5127_v16  ;;  %3175 = vmatprep.subr.bf16.mxu1 %v5132_v27 }
 0x5ed   :  { %3212 = vmatprep.subr.bf16.mxu0 %v5135_v21  ;;  %v5154_v21 = vld [vmem:[#allocation4 + $0x4a8] ss:$16 sps:$4 sm:$0xff]  }
 0x5ef   :  { %3176 = vmatpush2.bf16.msra.mxu1 %v5130_v59  ;;  %v5156_v59 = vld [vmem:[#allocation4 + $0x4ac] ss:$16 sps:$4 sm:$0xff]  }
 0x5f0   :  { %3213 = vmatpush2.bf16.msra.mxu0 %v5133_v31  ;;  %3177 = vmatprep.subr.bf16.mxu1 %v5138_v28 }
 0x5f1   :  { %3214 = vmatprep.subr.bf16.mxu0 %v5141_v61  ;;  %v5171_v61 = vld [vmem:[#allocation4 + $0x6ac] ss:$16 sps:$4 sm:$0xff]  }
 0x5f3   :  { %3178 = vmatpush2.bf16.msra.mxu1 %v5136_v8 }
 0x5f4   :  { %3215 = vmatpush2.bf16.msra.mxu0 %v5139_v34  ;;  %3229 = vmatprep.subr.bf16.mxu1 %v5144_v36  ;;  %v5174_v34 = vld [vmem:[#allocation4 + $0x44c] ss:$16 sps:$4 sm:$0xff]  }
 0x5f5   :  { %3216 = vmatprep.subr.bf16.mxu0 %v5147_v25  ;;  %v5177_v36 = vld [vmem:[#allocation4 + $0x68c] ss:$16 sps:$4 sm:$0xff]   ;;  %v5175_v25 = vld [vmem:[#allocation4 + $0x688] ss:$16 sps:$4 sm:$0xff]  }
 0x5f8   :  { %3217 = vmatpush2.bf16.msra.mxu0 %v5145_v41  ;;  %v5183_v41 = vld [vmem:[#allocation4 + $0x66c] ss:$16 sps:$4 sm:$0xff]  }
 0x5f9   :  { %3218 = vmatprep.subr.bf16.mxu0 %v5153_v46  ;;  %v5189_v46 = vld [vmem:[#allocation4 + $0x64c] ss:$16 sps:$4 sm:$0xff]  }
 0x5fc   :  { %3219 = vmatpush2.bf16.msra.mxu0 %v5151_v47  ;;  %v5184_v47 = vld [vmem:[#allocation4 + $0x408] ss:$16 sps:$4 sm:$0xff]  }
 0x5fd   :  { %3270 = vmatprep.subr.bf16.mxu0 %v5159_v52  ;;  %v5187_v52 = vld [vmem:[#allocation4 + $0x648] ss:$16 sps:$4 sm:$0xff]  }
 0x60e   :  { %v4756_v5 = vpop.f32.mrf.mxu0 }
 0x60f   :  { %v2241_v7 = vadd.f32 %v4756_v5, %v5849_v55 }
 0x610   :  { %v2235_v32 = vpop.f32.mrf.mxu0 }
 0x611   :  { %2283 = vst.msk [vmem:[#allocation2 + $0x48] sm:$0xff] %vm293_vm1, %v2241_v7  ;;  %v2236_v38 = vadd.f32 %v5849_v55, %v2235_v32 }
 0x612   :  { %v4759_v9 = vpop.f32.mrf.mxu0 }
 0x613   :  { %2282 = vst.msk [vmem:[#allocation2 + $0x40] sm:$0xff] %vm293_vm1, %v2236_v38  ;;  %v2251_v44 = vadd.f32 %v4759_v9, %v5849_v55 }
 0x614   :  { %v2245_v15 = vpop.f32.mrf.mxu0 }
 0x615   :  { %2285 = vst.msk [vmem:[#allocation2 + $0x58] sm:$0xff] %vm293_vm1, %v2251_v44  ;;  %v2246_v17 = vadd.f32 %v5849_v55, %v2245_v15 }
 0x616   :  { %v4762_v56 = vpop.f32.mrf.mxu0 }
 0x617   :  { %2284 = vst.msk [vmem:[#allocation2 + $0x50] sm:$0xff] %vm293_vm1, %v2246_v17  ;;  %v2261_v2 = vadd.f32 %v4762_v56, %v5849_v55  ;;  %v5150_v17 = vld [vmem:[#allocation4 + $0x4cc] ss:$16 sps:$4 sm:$0xff]   ;;  %v5148_v56 = vld [vmem:[#allocation4 + $0x4c8] ss:$16 sps:$4 sm:$0xff]  }
 0x618   :  { %v2255_v6 = vpop.f32.mrf.mxu0  ;;  %v2332_v23 = vld [vmem:[#allocation2 + $0x48] sm:$0xff] }
 0x619   :  { %2287 = vst.msk [vmem:[#allocation2 + $0x68] sm:$0xff] %vm293_vm1, %v2261_v2  ;;  %v2256_v14 = vadd.f32 %v5849_v55, %v2255_v6  ;;  %2334 = vrot.lane.b32.xlu0 %v2332_v23, %s5269_s21  ;;  %v5162_v6 = vld [vmem:[#allocation4 + $0x48c] ss:$16 sps:$4 sm:$0xff]   ;;  %v5157_v23 = vld [vmem:[#allocation4 + $0x6e8] ss:$16 sps:$4 sm:$0xff]  }
 0x61a   :  { %v4765_v18 = vpop.f32.mrf.mxu0  ;;  %v2330_v29 = vld [vmem:[#allocation2 + $0x40] sm:$0xff] }
 0x61b   :  { %2286 = vst.msk [vmem:[#allocation2 + $0x60] sm:$0xff] %vm293_vm1, %v2256_v14  ;;  %v2271_v30 = vadd.f32 %v4765_v18, %v5849_v55  ;;  %2331 = vst.msk [vmem:[#allocation3 + $0x10] sm:$0xff] %vm293_vm1, %v2330_v29  ;;  %v5165_v14 = vld [vmem:[#allocation4 + $0x6cc] ss:$16 sps:$4 sm:$0xff]   ;;  %v5160_v18 = vld [vmem:[#allocation4 + $0x488] ss:$16 sps:$4 sm:$0xff]  }
 0x61c   :  { %v2265_v20 = vpop.f32.mrf.mxu0  ;;  %v2344_v53 = vld [vmem:[#allocation2 + $0x58] sm:$0xff] }
 0x61d   :  { %2289 = vst.msk [vmem:[#allocation2 + $0x78] sm:$0xff] %vm293_vm1, %v2271_v30  ;;  %v2266_v35 = vadd.f32 %v5849_v55, %v2265_v20  ;;  %v5168_v29 = vld [vmem:[#allocation4 + $0x46c] ss:$16 sps:$4 sm:$0xff]   ;;  %v5163_v30 = vld [vmem:[#allocation4 + $0x6c8] ss:$16 sps:$4 sm:$0xff]  }
 0x61e   :  { %v2338_v39 = vld [vmem:[#allocation2 + $0x50] sm:$0xff]  ;;  %v5166_v20 = vld [vmem:[#allocation4 + $0x468] ss:$16 sps:$4 sm:$0xff]  }
 0x61f   :  { %2288 = vst.msk [vmem:[#allocation2 + $0x70] sm:$0xff] %vm293_vm1, %v2266_v35  ;;  %2340 = vrot.lane.b32.xlu0 %v2338_v39, %s5270_s22  ;;  %v5169_v35 = vld [vmem:[#allocation4 + $0x6a8] ss:$16 sps:$4 sm:$0xff]  }
 0x620   :  { %v2352_v40 = vld [vmem:[#allocation2 + $0x68] sm:$0xff] }
 0x621   :  { %2354 = vrot.lane.b32.xlu1 %v2352_v40, %s5269_s21  ;;  %v5172_v39 = vld [vmem:[#allocation4 + $0x448] ss:$16 sps:$4 sm:$0xff]   ;;  %v5180_v40 = vld [vmem:[#allocation4 + $0x42c] ss:$16 sps:$4 sm:$0xff]  }
 0x622   :  { %v2350_v45 = vld [vmem:[#allocation2 + $0x60] sm:$0xff] }
 0x623   :  { %2306 = vrot.lane.b32.xlu0 %v2304_v42, %s5271_s23  ;;  %2351 = vst.msk [vmem:[#allocation3 + $0x18] sm:$0xff] %vm293_vm1, %v2350_v45  ;;  %v5178_v42 = vld [vmem:[#allocation4 + $0x428] ss:$16 sps:$4 sm:$0xff]   ;;  %v5186_v45 = vld [vmem:[#allocation4 + $0x40c] ss:$16 sps:$4 sm:$0xff]  }
 0x624   :  { %v2364_v55 = vld [vmem:[#allocation2 + $0x78] sm:$0xff] }
 0x625   :  { %2366 = vrot.lane.b32.xlu1 %v2364_v55, %s5271_s23  ;;  %v5181_v55 = vld [vmem:[#allocation4 + $0x668] ss:$16 sps:$4 sm:$0xff]  }
 0x626   :  { %v2358_v48 = vld [vmem:[#allocation2 + $0x70] sm:$0xff] }
 0x629   :  { %2360 = vrot.lane.b32.xlu1 %v2358_v48, %s5270_s22  ;;  %v5192_v48 = vld [vmem:[#allocation4 + $0x5ec] ss:$16 sps:$4 sm:$0xff]  }
 0x62d   :  { %2346 = vrot.lane.b32.xlu1 %v2344_v53, %s5271_s23  ;;  %v5195_v53 = vld [vmem:[#allocation4 + $0x62c] ss:$16 sps:$4 sm:$0xff]  }
 0x64b   :  { %v2295_v54 = vpop.permute.xlu0 %2294 }
 0x64c   :  { %2297 = vst.msk [vmem:[#allocation3] sm:$0xff] %vm510_vm2, %v2295_v54  ;;  %v5190_v54 = vld [vmem:[#allocation4 + $0x5e8] ss:$16 sps:$4 sm:$0xff]  }
 0x651   :  { %v2301_v57 = vpop.permute.xlu0 %2300 }
 0x652   :  { %2303 = vst.msk [vmem:[#allocation3] sm:$0xff] %vm517_vm3, %v2301_v57  ;;  %v5198_v57 = vld [vmem:[#allocation4 + $0x5cc] ss:$16 sps:$4 sm:$0xff]  }
 0x655   :  { %v2315_v60 = vpop.permute.xlu0 %2314 }
 0x656   :  { %2317 = vst.msk [vmem:[#allocation3 + $0x8] sm:$0xff] %vm510_vm2, %v2315_v60  ;;  %v5193_v60 = vld [vmem:[#allocation4 + $0x628] ss:$16 sps:$4 sm:$0xff]  }
 0x657   :  { %v2327_v0 = vpop.permute.xlu1 %2326 }
 0x65b   :  { %v2321_v5 = vpop.permute.xlu1 %2320 }
 0x65c   :  { %2323 = vst.msk [vmem:[#allocation3 + $0x8] sm:$0xff] %vm517_vm3, %v2321_v5  ;;  %v5196_v5 = vld [vmem:[#allocation4 + $0x5c8] ss:$16 sps:$4 sm:$0xff]  }
 0x65d   :  { %2329 = vst.msk [vmem:[#allocation3 + $0x8] sm:$0xff] %vm524_vm4, %v2327_v0  ;;  %v5201_v0 = vld [vmem:[#allocation4 + $0x60c] ss:$16 sps:$4 sm:$0xff]  }
 0x664   :  { %v2371_v26 = vld [vmem:[#allocation3 + $0x8] sm:$0xff] }
 0x665   :  { %v2375_v7 = vpack.c.bf16 %v2371_v26, %v2371_v26  ;;  %v5204_v26 = vld [vmem:[#allocation4 + $0x5ac] ss:$16 sps:$4 sm:$0xff]  }
 0x667   :  { %3179 = vmatprep.mubr.bf16.mxu1 %v2375_v7 }
 0x68b   :  { %v2335_v32 = vpop.permute.xlu0 %2334 }
 0x68c   :  { %2337 = vst.msk [vmem:[#allocation3 + $0x10] sm:$0xff] %vm510_vm2, %v2335_v32  ;;  %v5207_v32 = vld [vmem:[#allocation4 + $0x7ec] ss:$16 sps:$4 sm:$0xff]  }
 0x691   :  { %v2341_v38 = vpop.permute.xlu0 %2340 }
 0x692   :  { %2343 = vst.msk [vmem:[#allocation3 + $0x10] sm:$0xff] %vm517_vm3, %v2341_v38  ;;  %v5202_v38 = vld [vmem:[#allocation4 + $0x5a8] ss:$16 sps:$4 sm:$0xff]  }
 0x693   :  { %v2355_v43 = vpop.permute.xlu1 %2354 }
 0x694   :  { %2357 = vst.msk [vmem:[#allocation3 + $0x18] sm:$0xff] %vm510_vm2, %v2355_v43  ;;  %v5210_v43 = vld [vmem:[#allocation4 + $0x58c] ss:$16 sps:$4 sm:$0xff]  }
 0x695   :  { %v2307_v9 = vpop.permute.xlu0 %2306 }
 0x696   :  { %2309 = vst.msk [vmem:[#allocation3] sm:$0xff] %vm524_vm4, %v2307_v9  ;;  %v5205_v9 = vld [vmem:[#allocation4 + $0x7e8] ss:$16 sps:$4 sm:$0xff]  }
 0x697   :  { %v2367_v10 = vpop.permute.xlu1 %2366 }
 0x69b   :  { %v2361_v44 = vpop.permute.xlu1 %2360 }
 0x69c   :  { %2363 = vst.msk [vmem:[#allocation3 + $0x18] sm:$0xff] %vm517_vm3, %v2361_v44  ;;  %v5208_v44 = vld [vmem:[#allocation4 + $0x588] ss:$16 sps:$4 sm:$0xff]  }
 0x69d   :  { %2369 = vst.msk [vmem:[#allocation3 + $0x18] sm:$0xff] %vm524_vm4, %v2367_v10  ;;  %v2370_v15 = vld [vmem:[#allocation3] sm:$0xff]  ;;  %v5213_v10 = vld [vmem:[#allocation4 + $0x7cc] ss:$16 sps:$4 sm:$0xff]  }
 0x69e   :  { %v5910_v16 = vpack.c.bf16 %v2370_v15, %v2370_v15  ;;  %v5211_v15 = vld [vmem:[#allocation4 + $0x7c8] ss:$16 sps:$4 sm:$0xff]  }
 0x69f   :  { %v2347_v27 = vpop.permute.xlu1 %2346 }
 0x6a0   :  { %2349 = vst.msk [vmem:[#allocation3 + $0x10] sm:$0xff] %vm524_vm4, %v2347_v27  ;;  %3180 = vmatmul.mubr.bf16.vlgmr.msra.gmra.mxu1 %v5910_v16  ;;  %v5214_v27 = vld [vmem:[#allocation4 + $0x568] ss:$16 sps:$4 sm:$0xff]  }
 0x6a1   :  { %3230 = vmatpush1.bf16.msra.mxu1 %v5142_v49  ;;  %3261 = vmatprep.mubr.bf16.mxu1 %v2375_v7  ;;  %v5199_v7 = vld [vmem:[#allocation4 + $0x608] ss:$16 sps:$4 sm:$0xff]   ;;  %v5216_v49 = vld [vmem:[#allocation4 + $0x56c] ss:$16 sps:$4 sm:$0xff]  }
 0x6a2   :  { %3231 = vmatprep.subr.bf16.mxu1 %v5150_v17  ;;  %v5219_v17 = vld [vmem:[#allocation4 + $0x7ac] ss:$16 sps:$4 sm:$0xff]  }
 0x6a4   :  { %v2373_v2 = vld [vmem:[#allocation3 + $0x18] sm:$0xff] }
 0x6a5   :  { %3232 = vmatpush1.bf16.msra.mxu1 %v5148_v56  ;;  %v2377_v31 = vpack.c.bf16 %v2373_v2, %v2373_v2  ;;  %v5222_v56 = vld [vmem:[#allocation4 + $0x54c] ss:$16 sps:$4 sm:$0xff]  }
 0x6a6   :  { %3233 = vmatprep.subr.bf16.mxu1 %v5156_v59  ;;  %v5217_v59 = vld [vmem:[#allocation4 + $0x7a8] ss:$16 sps:$4 sm:$0xff]   ;;  %v5225_v2 = vld [vmem:[#allocation4 + $0x78c] ss:$16 sps:$4 sm:$0xff]  }
 0x6a7   :  { %3220 = vmatprep.mubr.bf16.mxu0 %v2377_v31  ;;  %v2372_v8 = vld [vmem:[#allocation3 + $0x10] sm:$0xff] }
 0x6a8   :  { %v5914_v28 = vpack.c.bf16 %v2372_v8, %v2372_v8  ;;  %v5226_v8 = vld [vmem:[#allocation4 + $0x528] ss:$16 sps:$4 sm:$0xff]  }
 0x6a9   :  { %3234 = vmatpush1.bf16.msra.mxu1 %v5154_v21  ;;  %v5228_v21 = vld [vmem:[#allocation4 + $0x52c] ss:$16 sps:$4 sm:$0xff]  }
 0x6aa   :  { %3221 = vmatmul.mubr.bf16.vlgmr.msra.gmra.mxu0 %v5914_v28  ;;  %3235 = vmatprep.subr.bf16.mxu1 %v5162_v6  ;;  %v5223_v6 = vld [vmem:[#allocation4 + $0x788] ss:$16 sps:$4 sm:$0xff]  }
 0x6ab   :  { %3271 = vmatpush1.bf16.msra.mxu0 %v5157_v23  ;;  %3302 = vmatprep.mubr.bf16.mxu0 %v2377_v31  ;;  %v5220_v31 = vld [vmem:[#allocation4 + $0x548] ss:$16 sps:$4 sm:$0xff]   ;;  %v5231_v23 = vld [vmem:[#allocation4 + $0x76c] ss:$16 sps:$4 sm:$0xff]  }
 0x6ac   :  { %3272 = vmatprep.subr.bf16.mxu0 %v5165_v14  ;;  %v5234_v14 = vld [vmem:[#allocation4 + $0x50c] ss:$16 sps:$4 sm:$0xff]  }
 0x6ad   :  { %3236 = vmatpush1.bf16.msra.mxu1 %v5160_v18  ;;  %v5229_v18 = vld [vmem:[#allocation4 + $0x768] ss:$16 sps:$4 sm:$0xff]  }
 0x6ae   :  { %3237 = vmatprep.subr.bf16.mxu1 %v5168_v29  ;;  %v5237_v29 = vld [vmem:[#allocation4 + $0x74c] ss:$16 sps:$4 sm:$0xff]  }
 0x6af   :  { %3273 = vmatpush1.bf16.msra.mxu0 %v5163_v30  ;;  %v5232_v30 = vld [vmem:[#allocation4 + $0x508] ss:$16 sps:$4 sm:$0xff]  }
 0x6b0   :  { %3274 = vmatprep.subr.bf16.mxu0 %v5171_v61  ;;  %v5235_v61 = vld [vmem:[#allocation4 + $0x748] ss:$16 sps:$4 sm:$0xff]  }
 0x6b1   :  { %3238 = vmatpush1.bf16.msra.mxu1 %v5166_v20  ;;  %v5240_v20 = vld [vmem:[#allocation4 + $0x72c] ss:$16 sps:$4 sm:$0xff]  }
 0x6b2   :  { %3239 = vmatprep.subr.bf16.mxu1 %v5174_v34  ;;  %v5238_v34 = vld [vmem:[#allocation4 + $0x728] ss:$16 sps:$4 sm:$0xff]  }
 0x6b3   :  { %3275 = vmatpush1.bf16.msra.mxu0 %v5169_v35  ;;  %v5243_v35 = vld [vmem:[#allocation4 + $0x70c] ss:$16 sps:$4 sm:$0xff]  }
 0x6b4   :  { %3276 = vmatprep.subr.bf16.mxu0 %v5177_v36  ;;  %v5241_v36 = vld [vmem:[#allocation4 + $0x708] ss:$16 sps:$4 sm:$0xff]  }
 0x6b5   :  { %3240 = vmatpush1.bf16.msra.mxu1 %v5172_v39 }
 0x6b6   :  { %3241 = vmatprep.subr.bf16.mxu1 %v5180_v40  ;;  %v4424_v40 = vld [vmem:[%s6152_s6 + $0x38] sm:$0xff] }
 0x6b7   :  { %3277 = vmatpush1.bf16.msra.mxu0 %v5175_v25 }
 0x6b8   :  { %3278 = vmatprep.subr.bf16.mxu0 %v5183_v41 }
 0x6b9   :  { %3242 = vmatpush1.bf16.msra.mxu1 %v5178_v42  ;;  %v4422_v42 = vld [vmem:[%s6152_s6 + $0x28] sm:$0xff] }
 0x6ba   :  { %3243 = vmatprep.subr.bf16.mxu1 %v5186_v45 }
 0x6bb   :  { %3279 = vmatpush1.bf16.msra.mxu0 %v5181_v55 }
 0x6bc   :  { %3280 = vmatprep.subr.bf16.mxu0 %v5189_v46 }
 0x6bd   :  { %3244 = vmatpush1.bf16.msra.mxu1 %v5184_v47 }
 0x6be   :  { %3245 = vmatprep.subr.bf16.mxu1 %v5192_v48 }
 0x6bf   :  { %3281 = vmatpush1.bf16.msra.mxu0 %v5187_v52 }
 0x6c0   :  { %3282 = vmatprep.subr.bf16.mxu0 %v5195_v53 }
 0x6c1   :  { %3246 = vmatpush2.bf16.msra.mxu1 %v5190_v54 }
 0x6c2   :  { %3247 = vmatprep.subr.bf16.mxu1 %v5198_v57 }
 0x6c3   :  { %3283 = vmatpush1.bf16.msra.mxu0 %v5193_v60 }
 0x6c4   :  { %3284 = vmatprep.subr.bf16.mxu0 %v5201_v0 }
 0x6c5   :  { %3248 = vmatpush2.bf16.msra.mxu1 %v5196_v5 }
 0x6c6   :  { %3249 = vmatprep.subr.bf16.mxu1 %v5204_v26 }
 0x6c7   :  { %3285 = vmatpush1.bf16.msra.mxu0 %v5199_v7 }
 0x6c8   :  { %3286 = vmatprep.subr.bf16.mxu0 %v5207_v32 }
 0x6c9   :  { %3250 = vmatpush2.bf16.msra.mxu1 %v5202_v38 }
 0x6ca   :  { %3251 = vmatprep.subr.bf16.mxu1 %v5210_v43 }
 0x6cb   :  { %3287 = vmatpush2.bf16.msra.mxu0 %v5205_v9 }
 0x6cc   :  { %3288 = vmatprep.subr.bf16.mxu0 %v5213_v10  ;;  %v4444_v10 = vld [vmem:[%s6153_s7 + $0x38] sm:$0xff] }
 0x6cd   :  { %3252 = vmatpush2.bf16.msra.mxu1 %v5208_v44 }
 0x6ce   :  { %3253 = vmatprep.subr.bf16.mxu1 %v5216_v49 }
 0x6cf   :  { %3289 = vmatpush2.bf16.msra.mxu0 %v5211_v15 }
 0x6d0   :  { %3290 = vmatprep.subr.bf16.mxu0 %v5219_v17 }
 0x6d1   :  { %3254 = vmatpush2.bf16.msra.mxu1 %v5214_v27 }
 0x6d2   :  { %3255 = vmatprep.subr.bf16.mxu1 %v5222_v56 }
 0x6d3   :  { %3291 = vmatpush2.bf16.msra.mxu0 %v5217_v59 }
 0x6d4   :  { %3292 = vmatprep.subr.bf16.mxu0 %v5225_v2 }
 0x6d5   :  { %3256 = vmatpush2.bf16.msra.mxu1 %v5220_v31 }
 0x6d6   :  { %3257 = vmatprep.subr.bf16.mxu1 %v5228_v21 }
 0x6d7   :  { %3293 = vmatpush2.bf16.msra.mxu0 %v5223_v6 }
 0x6d8   :  { %3294 = vmatprep.subr.bf16.mxu0 %v5231_v23 }
 0x6d9   :  { %3258 = vmatpush2.bf16.msra.mxu1 %v5226_v8 }
 0x6da   :  { %3259 = vmatprep.subr.bf16.mxu1 %v5234_v14 }
 0x6db   :  { %3295 = vmatpush2.bf16.msra.mxu0 %v5229_v18 }
 0x6dc   :  { %3296 = vmatprep.subr.bf16.mxu0 %v5237_v29 }
 0x6dd   :  { %3260 = vmatpush2.bf16.msra.mxu1 %v5232_v30 }
 0x6de   :  { %4766 = vmatprep.subr.mxu1 %v4424_v40 }
 0x6df   :  { %3297 = vmatpush2.bf16.msra.mxu0 %v5235_v61 }
 0x6e0   :  { %3262 = vmatmul.mubr.bf16.vlgmr.msra.gmra.mxu1 %v5910_v16  ;;  %3298 = vmatprep.subr.bf16.mxu0 %v5240_v20  ;;  %v4423_v16 = vld [vmem:[%s6152_s6 + $0x30] sm:$0xff] }
 0x6e1   :  { %4767 = vmatpush3.msra.mxu1 %v4424_v40 }
 0x6e2   :  { %4768 = vmatprep.subr.mxu1 %v4423_v16 }
 0x6e3   :  { %3299 = vmatpush2.bf16.msra.mxu0 %v5238_v34  ;;  %4769 = vmatpush3.msra.mxu1 %v4423_v16 }
 0x6e4   :  { %3300 = vmatprep.subr.bf16.mxu0 %v5243_v35  ;;  %4770 = vmatprep.subr.mxu1 %v4422_v42 }
 0x6e5   :  { %4771 = vmatpush3.msra.mxu1 %v4422_v42 }
 0x6e7   :  { %3301 = vmatpush2.bf16.msra.mxu0 %v5241_v36 }
 0x6e8   :  { %4798 = vmatprep.subr.mxu0 %v4444_v10 }
 0x6ea   :  { %3303 = vmatmul.mubr.bf16.vlgmr.msra.gmra.mxu0 %v5914_v28  ;;  %v4421_v28 = vld [vmem:[%s6152_s6 + $0x20] sm:$0xff] }
 0x6eb   :  { %4772 = vmatprep.subr.mxu1 %v4421_v28  ;;  %4799 = vmatpush3.msra.mxu0 %v4444_v10 }
 0x6ec   :  { %4773 = vmatpush3.msra.mxu1 %v4421_v28  ;;  %v4441_v28 = vld [vmem:[%s6153_s7 + $0x20] sm:$0xff] }
 0x760   :  { %v3181_v39 = vpop.f32.mrf.mxu1 }
 0x762   :  { %v3183_v25 = vpop.f32.mrf.mxu1 }
 0x764   :  { %v3185_v41 = vpop.f32.mrf.mxu1 }
 0x765   :  { %v4443_v41 = vld [vmem:[%s6153_s7 + $0x30] sm:$0xff] }
 0x766   :  { %v3186_v45 = vpop.f32.mrf.mxu1  ;;  %4800 = vmatprep.subr.mxu0 %v4443_v41 }
 0x767   :  { %4801 = vmatpush3.msra.mxu0 %v4443_v41 }
 0x76a   :  { %v3222_v55 = vpop.f32.mrf.mxu0 }
 0x76b   :  { %v3223_v46 = vadd.f32 %v3222_v55, %v3181_v39 }
 0x76c   :  { %v3224_v47 = vpop.f32.mrf.mxu0 }
 0x76d   :  { %3311 = vst [vmem:[#allocation3] sm:$0xff] %v3223_v46  ;;  %3316 = vst.msk [vmem:[#allocation2] sm:$0xff] %vm293_vm1, %v3223_v46  ;;  %v3225_v48 = vadd.f32 %v3224_v47, %v3183_v25  ;;  %3325 = vrot.lane.b32.xlu1 %v3223_v46, %s5270_s22  ;;  %3319 = vrot.lane.b32.xlu0 %v3223_v46, %s5271_s23 }
 0x76e   :  { %v3226_v52 = vpop.f32.mrf.mxu0 }
 0x76f   :  { %3312 = vst [vmem:[#allocation3 + $0x8] sm:$0xff] %v3225_v48  ;;  %3336 = vst.msk [vmem:[#allocation2 + $0x20] sm:$0xff] %vm293_vm1, %v3225_v48 }
 0x770   :  { %v3227_v53 = vpop.f32.mrf.mxu0 }
 0x771   :  { %3339 = vrot.lane.b32.xlu1 %v3225_v48, %s5271_s23  ;;  %3331 = vrot.lane.b32.xlu0 %v3223_v46, %s5269_s21 }
 0x774   :  { %v3395_v54 = vld [vmem:[#allocation2] sm:$0xff] }
 0x775   :  { %3351 = vrot.lane.b32.xlu1 %v3225_v48, %s5269_s21  ;;  %3345 = vrot.lane.b32.xlu0 %v3225_v48, %s5270_s22  ;;  %v5940_v57 = vadd.f32 %v3395_v54, %v5767_v11 }
 0x776   :  { %v3399_v6 = vld [vmem:[#allocation2 + $0x20] sm:$0xff] }
 0x777   :  { %4774 = vmatprep.mubr.msk.f32.mxu1 %vm293_vm1, %v5940_v57  ;;  %v5975_v14 = vadd.f32 %v3399_v6, %v5787_v58 }
 0x7a0   :  { %v3263_v60 = vpop.f32.mrf.mxu1 }
 0x7a2   :  { %v3265_v0 = vpop.f32.mrf.mxu1 }
 0x7a4   :  { %v3267_v5 = vpop.f32.mrf.mxu1 }
 0x7a6   :  { %v3268_v26 = vpop.f32.mrf.mxu1 }
 0x7aa   :  { %v3304_v7 = vpop.f32.mrf.mxu0 }
 0x7ab   :  { %v3305_v32 = vadd.f32 %v3304_v7, %v3263_v60 }
 0x7ac   :  { %v3306_v38 = vpop.f32.mrf.mxu0 }
 0x7ad   :  { %3313 = vst [vmem:[#allocation3 + $0x10] sm:$0xff] %v3305_v32  ;;  %3356 = vst.msk [vmem:[#allocation2 + $0x40] sm:$0xff] %vm293_vm1, %v3305_v32  ;;  %v3307_v43 = vadd.f32 %v3306_v38, %v3265_v0  ;;  %3365 = vrot.lane.b32.xlu1 %v3305_v32, %s5270_s22  ;;  %3359 = vrot.lane.b32.xlu0 %v3305_v32, %s5271_s23 }
 0x7ae   :  { %v3308_v11 = vpop.f32.mrf.mxu0 }
 0x7af   :  { %3314 = vst [vmem:[#allocation3 + $0x18] sm:$0xff] %v3307_v43  ;;  %3376 = vst.msk [vmem:[#allocation2 + $0x60] sm:$0xff] %vm293_vm1, %v3307_v43 }
 0x7b0   :  { %v3309_v9 = vpop.f32.mrf.mxu0 }
 0x7b1   :  { %3379 = vrot.lane.b32.xlu1 %v3307_v43, %s5271_s23  ;;  %3371 = vrot.lane.b32.xlu0 %v3305_v32, %s5269_s21 }
 0x7b5   :  { %3391 = vrot.lane.b32.xlu1 %v3307_v43, %s5269_s21  ;;  %3385 = vrot.lane.b32.xlu0 %v3307_v43, %s5270_s22 }
 0x7b6   :  { %v3407_v25 = vld [vmem:[#allocation2 + $0x60] sm:$0xff] }
 0x7df   :  { %v3326_v44 = vpop.permute.xlu1 %3325  ;;  %v3320_v49 = vpop.permute.xlu0 %3319 }
 0x7e0   :  { %3328 = vst.msk [vmem:[#allocation2 + $0x10] sm:$0xff] %vm293_vm1, %v3326_v44  ;;  %3322 = vst.msk [vmem:[#allocation2 + $0x8] sm:$0xff] %vm293_vm1, %v3320_v49 }
 0x7e3   :  { %v3340_v15 = vpop.permute.xlu1 %3339  ;;  %v3332_v17 = vpop.permute.xlu0 %3331 }
 0x7e4   :  { %3342 = vst.msk [vmem:[#allocation2 + $0x28] sm:$0xff] %vm293_vm1, %v3340_v15  ;;  %3334 = vst.msk [vmem:[#allocation2 + $0x18] sm:$0xff] %vm293_vm1, %v3332_v17 }
 0x7e7   :  { %v3352_v27 = vpop.permute.xlu1 %3351  ;;  %v3346_v56 = vpop.permute.xlu0 %3345  ;;  %v3396_v59 = vld [vmem:[#allocation2 + $0x8] sm:$0xff]  ;;  %v3397_v2 = vld [vmem:[#allocation2 + $0x10] sm:$0xff] }
 0x7e8   :  { %3354 = vst.msk [vmem:[#allocation2 + $0x38] sm:$0xff] %vm293_vm1, %v3352_v27  ;;  %3348 = vst.msk [vmem:[#allocation2 + $0x30] sm:$0xff] %vm293_vm1, %v3346_v56  ;;  %v5962_v31 = vadd.f32 %v3396_v59, %v5770_v12  ;;  %v5965_v21 = vadd.f32 %v3397_v2, %v5777_v51 }
 0x7ea   :  { %4775 = vmatmul.mubr.msk.f32.vlgmr.msra.gmra.mxu1 %vm293_vm1, %v5962_v31 }
 0x7eb   :  { %4777 = vmatprep.mubr.msk.f32.mxu1 %vm293_vm1, %v5965_v21  ;;  %v3398_v23 = vld [vmem:[#allocation2 + $0x18] sm:$0xff]  ;;  %v3400_v18 = vld [vmem:[#allocation2 + $0x28] sm:$0xff] }
 0x7ec   :  { %v5972_v8 = vadd.f32 %v3398_v23, %v5780_v50  ;;  %v5982_v51 = vadd.f32 %v3400_v18, %v5790_v33  ;;  %v3403_v50 = vld [vmem:[#allocation2 + $0x40] sm:$0xff] }
 0x7ed   :  { %v5995_v61 = vadd.f32 %v3403_v50, %v5807_v62 }
 0x7ee   :  { %4778 = vmatmul.mubr.msk.f32.gmra.mxu1 %vm293_vm1, %v5972_v8 }
 0x7ef   :  { %4780 = vmatprep.mubr.msk.f32.mxu1 %vm293_vm1, %v5975_v14  ;;  %v3401_v12 = vld [vmem:[#allocation2 + $0x30] sm:$0xff]  ;;  %v3402_v30 = vld [vmem:[#allocation2 + $0x38] sm:$0xff] }
 0x7f0   :  { %v5985_v29 = vadd.f32 %v3401_v12, %v5797_v1  ;;  %v5992_v58 = vadd.f32 %v3402_v30, %v5800_v19 }
 0x7f2   :  { %4781 = vmatmul.mubr.msk.f32.gmra.mxu1 %vm293_vm1, %v5982_v51 }
 0x7f3   :  { %4783 = vmatprep.mubr.msk.f32.mxu1 %vm293_vm1, %v5985_v29 }
 0x7f6   :  { %4784 = vmatmul.mubr.msk.f32.gmra.mxu1 %vm293_vm1, %v5992_v58 }
 0x7f7   :  { %4786 = vmatprep.mubr.msk.f32.mxu1 %vm293_vm1, %v5995_v61 }
 0x81f   :  { %v3366_v33 = vpop.permute.xlu1 %3365  ;;  %v3360_v1 = vpop.permute.xlu0 %3359 }
 0x820   :  { %3368 = vst.msk [vmem:[#allocation2 + $0x50] sm:$0xff] %vm293_vm1, %v3366_v33  ;;  %3362 = vst.msk [vmem:[#allocation2 + $0x48] sm:$0xff] %vm293_vm1, %v3360_v1  ;;  %v3906_v33 = vld [vmem:[%s6154_s8 + $0x18] sm:$0xff]  ;;  %v5272_v1 = vmov 0.0  }
 0x821   :  { %4830 = vmatprep.subr.mxu1 %v5272_v1 }
 0x822   :  { %4831 = vmatpush3.msra.mxu1 %v3906_v33 }
 0x823   :  { %v3380_v20 = vpop.permute.xlu1 %3379  ;;  %v3372_v34 = vpop.permute.xlu0 %3371  ;;  %4832 = vmatprep.subr.mxu1 %v5272_v1 }
 0x824   :  { %3382 = vst.msk [vmem:[#allocation2 + $0x68] sm:$0xff] %vm293_vm1, %v3380_v20  ;;  %3374 = vst.msk [vmem:[#allocation2 + $0x58] sm:$0xff] %vm293_vm1, %v3372_v34  ;;  %v3905_v20 = vld [vmem:[%s6154_s8 + $0x10] sm:$0xff]  ;;  %v3904_v34 = vld [vmem:[%s6154_s8 + $0x8] sm:$0xff] }
 0x825   :  { %4833 = vmatpush3.msra.mxu1 %v3905_v20 }
 0x826   :  { %4834 = vmatprep.subr.mxu1 %v5272_v1 }
 0x827   :  { %v3392_v19 = vpop.permute.xlu1 %3391  ;;  %v3386_v62 = vpop.permute.xlu0 %3385  ;;  %v3404_v35 = vld [vmem:[#allocation2 + $0x48] sm:$0xff]  ;;  %v3405_v36 = vld [vmem:[#allocation2 + $0x50] sm:$0xff]  ;;  %4835 = vmatpush3.msra.mxu1 %v3904_v34 }
 0x828   :  { %3394 = vst.msk [vmem:[#allocation2 + $0x78] sm:$0xff] %vm293_vm1, %v3392_v19  ;;  %3388 = vst.msk [vmem:[#allocation2 + $0x70] sm:$0xff] %vm293_vm1, %v3386_v62  ;;  %v6008_v39 = vadd.f32 %v3404_v35, %v5810_v3  ;;  %v6011_v40 = vadd.f32 %v3405_v36, %v5817_v37  ;;  %v4442_v3 = vld [vmem:[%s6153_s7 + $0x28] sm:$0xff]  ;;  %v6027_v37 = vadd.f32 %v3407_v25, %v5827_v13  ;;  %v3903_v19 = vld [vmem:[%s6154_s8] sm:$0xff]  ;;  %4836 = vmatprep.subr.mxu1 %v5272_v1 }
 0x829   :  { %4802 = vmatprep.subr.mxu0 %v4442_v3  ;;  %4837 = vmatpush3.msra.mxu1 %v3903_v19 }
 0x82a   :  { %4787 = vmatmul.mubr.msk.f32.gmra.mxu1 %vm293_vm1, %v6008_v39  ;;  %4803 = vmatpush3.msra.mxu0 %v4442_v3 }
 0x82b   :  { %4789 = vmatprep.mubr.msk.f32.mxu1 %vm293_vm1, %v6011_v40  ;;  %v3406_v16 = vld [vmem:[#allocation2 + $0x58] sm:$0xff]  ;;  %v3408_v45 = vld [vmem:[#allocation2 + $0x68] sm:$0xff]  ;;  %4804 = vmatprep.subr.mxu0 %v4441_v28 }
 0x82c   :  { %v6021_v42 = vadd.f32 %v3406_v16, %v5820_v22  ;;  %v6037_v55 = vadd.f32 %v3408_v45, %v5830_v24  ;;  %4805 = vmatpush3.msra.mxu0 %v4441_v28  ;;  %4841 = vmatprep.subr.mxu1 %v5272_v1 }
 0x82e   :  { %4790 = vmatmul.mubr.msk.f32.gmra.mxu1 %vm293_vm1, %v6021_v42 }
 0x82f   :  { %4792 = vmatprep.mubr.msk.f32.mxu1 %vm293_vm1, %v6027_v37  ;;  %v3409_v22 = vld [vmem:[#allocation2 + $0x70] sm:$0xff]  ;;  %v3410_v46 = vld [vmem:[#allocation2 + $0x78] sm:$0xff] }
 0x830   :  { %v6040_v13 = vadd.f32 %v3409_v22, %v5837_v63  ;;  %v6047_v47 = vadd.f32 %v3410_v46, %v5840_v4 }
 0x832   :  { %4793 = vmatmul.mubr.msk.f32.gmra.mxu1 %vm293_vm1, %v6037_v55 }
 0x833   :  { %4795 = vmatprep.mubr.msk.f32.mxu1 %vm293_vm1, %v6040_v13 }
 0x836   :  { %4796 = vmatmul.mubr.msk.f32.gmra.mxu1 %vm293_vm1, %v6047_v47 }
 0x837   :  { %4838 = vmatprep.mubr.msk.f32.mxu1 %vm5273_vm5, %v5272_v1 }
 0x8aa   :  { %v4776_v48 = vpop.f32.mrf.mxu1 }
 0x8ab   :  { %v3626_v53 = vmax.f32 %v4776_v48, 0.0 }
 0x8ac   :  { %v3546_v24 = vpop.f32.mrf.mxu1 }
 0x8ad   :  { %v3625_v52 = vmax.f32 %v3546_v24, 0.0 }
 0x8ae   :  { %v4779_v63 = vpop.f32.mrf.mxu1 }
 0x8af   :  { %4806 = vmatprep.mubr.msk.f32.mxu0 %vm293_vm1, %v3625_v52  ;;  %v3628_v0 = vmax.f32 %v4779_v63, 0.0 }
 0x8b0   :  { %v3556_v54 = vpop.f32.mrf.mxu1  ;;  %4807 = vmatmul.mubr.msk.f32.vlgmr.msra.gmra.mxu0 %vm293_vm1, %v3626_v53 }
 0x8b1   :  { %v3627_v60 = vmax.f32 %v3556_v54, 0.0 }
 0x8b2   :  { %v4782_v5 = vpop.f32.mrf.mxu1 }
 0x8b3   :  { %4809 = vmatprep.mubr.msk.f32.mxu0 %vm293_vm1, %v3627_v60  ;;  %v3630_v7 = vmax.f32 %v4782_v5, 0.0 }
 0x8b4   :  { %v3566_v4 = vpop.f32.mrf.mxu1  ;;  %4810 = vmatmul.mubr.msk.f32.gmra.mxu0 %vm293_vm1, %v3628_v0 }
 0x8b5   :  { %v3629_v26 = vmax.f32 %v3566_v4, 0.0 }
 0x8b6   :  { %v4785_v32 = vpop.f32.mrf.mxu1 }
 0x8b7   :  { %4812 = vmatprep.mubr.msk.f32.mxu0 %vm293_vm1, %v3629_v26  ;;  %v3632_v11 = vmax.f32 %v4785_v32, 0.0 }
 0x8b8   :  { %v3576_v38 = vpop.f32.mrf.mxu1  ;;  %4813 = vmatmul.mubr.msk.f32.gmra.mxu0 %vm293_vm1, %v3630_v7 }
 0x8b9   :  { %v3631_v43 = vmax.f32 %v3576_v38, 0.0 }
 0x8bb   :  { %4815 = vmatprep.mubr.msk.f32.mxu0 %vm293_vm1, %v3631_v43 }
 0x8bc   :  { %4816 = vmatmul.mubr.msk.f32.gmra.mxu0 %vm293_vm1, %v3632_v11 }
 0x8ea   :  { %v4788_v9 = vpop.f32.mrf.mxu1 }
 0x8eb   :  { %v3634_v49 = vmax.f32 %v4788_v9, 0.0 }
 0x8ec   :  { %v3586_v10 = vpop.f32.mrf.mxu1 }
 0x8ed   :  { %v3633_v44 = vmax.f32 %v3586_v10, 0.0 }
 0x8ee   :  { %v4791_v15 = vpop.f32.mrf.mxu1 }
 0x8ef   :  { %4818 = vmatprep.mubr.msk.f32.mxu0 %vm293_vm1, %v3633_v44  ;;  %v3636_v56 = vmax.f32 %v4791_v15, 0.0 }
 0x8f0   :  { %v3596_v17 = vpop.f32.mrf.mxu1  ;;  %4819 = vmatmul.mubr.msk.f32.gmra.mxu0 %vm293_vm1, %v3634_v49 }
 0x8f1   :  { %v3635_v27 = vmax.f32 %v3596_v17, 0.0 }
 0x8f2   :  { %v4794_v59 = vpop.f32.mrf.mxu1 }
 0x8f3   :  { %4821 = vmatprep.mubr.msk.f32.mxu0 %vm293_vm1, %v3635_v27  ;;  %v3638_v23 = vmax.f32 %v4794_v59, 0.0 }
 0x8f4   :  { %v3606_v2 = vpop.f32.mrf.mxu1  ;;  %4822 = vmatmul.mubr.msk.f32.gmra.mxu0 %vm293_vm1, %v3636_v56 }
 0x8f5   :  { %v3637_v6 = vmax.f32 %v3606_v2, 0.0 }
 0x8f6   :  { %v4797_v18 = vpop.f32.mrf.mxu1 }
 0x8f7   :  { %4824 = vmatprep.mubr.msk.f32.mxu0 %vm293_vm1, %v3637_v6  ;;  %v3640_v50 = vmax.f32 %v4797_v18, 0.0 }
 0x8f8   :  { %v3616_v12 = vpop.f32.mrf.mxu1  ;;  %4825 = vmatmul.mubr.msk.f32.gmra.mxu0 %vm293_vm1, %v3638_v23 }
 0x8f9   :  { %v3639_v30 = vmax.f32 %v3616_v12, 0.0 }
 0x8fb   :  { %4827 = vmatprep.mubr.msk.f32.mxu0 %vm293_vm1, %v3639_v30 }
 0x8fc   :  { %4828 = vmatmul.mubr.msk.f32.gmra.mxu0 %vm293_vm1, %v3640_v50 }
 0x970   :  { %v4808_v62 = vpop.f32.mrf.mxu0 }
 0x971   :  { %v3840_v35 = vadd.f32 %v4808_v62, %v5962_v31 }
 0x972   :  { %v3760_v36 = vpop.f32.mrf.mxu0 }
 0x973   :  { %3856 = vst.msk [vmem:[#allocation2 + $0x8] sm:$0xff] %vm293_vm1, %v3840_v35  ;;  %v3839_v25 = vadd.f32 %v3760_v36, %v5940_v57  ;;  %v3990_v36 = vld [vmem:[%s6156_s10 + $0x10] sm:$0xff] }
 0x974   :  { %v4811_v41 = vpop.f32.mrf.mxu0 }
 0x975   :  { %3855 = vst.msk [vmem:[#allocation2] sm:$0xff] %vm293_vm1, %v3839_v25  ;;  %v3842_v16 = vadd.f32 %v4811_v41, %v5972_v8  ;;  %v3989_v25 = vld [vmem:[%s6156_s10 + $0x8] sm:$0xff]  ;;  %v3988_v41 = vld [vmem:[%s6156_s10] sm:$0xff] }
 0x976   :  { %v3770_v3 = vpop.f32.mrf.mxu0 }
 0x977   :  { %3858 = vst.msk [vmem:[#allocation2 + $0x18] sm:$0xff] %vm293_vm1, %v3842_v16  ;;  %v3841_v45 = vadd.f32 %v3770_v3, %v5965_v21  ;;  %v4461_v16 = vld [vmem:[%s6155_s9] ss:$0 sm:$0xff] }
 0x978   :  { %v4814_v28 = vpop.f32.mrf.mxu0 }
 0x979   :  { %3857 = vst.msk [vmem:[#allocation2 + $0x10] sm:$0xff] %vm293_vm1, %v3841_v45  ;;  %v3844_v31 = vadd.f32 %v4814_v28, %v5982_v51 }
 0x97a   :  { %v3780_v22 = vpop.f32.mrf.mxu0  ;;  %v3872_v52 = vld [vmem:[#allocation2 + $0x8] sm:$0xff] }
 0x97b   :  { %3860 = vst.msk [vmem:[#allocation2 + $0x28] sm:$0xff] %vm293_vm1, %v3844_v31  ;;  %v3843_v57 = vadd.f32 %v3780_v22, %v5975_v14  ;;  %v4463_v22 = vld [vmem:[%s6157_s11] ss:$0 sm:$0xff] }
 0x97c   :  { %v4817_v46 = vpop.f32.mrf.mxu0  ;;  %v3871_v24 = vld [vmem:[#allocation2] sm:$0xff] }
 0x97d   :  { %3859 = vst.msk [vmem:[#allocation2 + $0x20] sm:$0xff] %vm293_vm1, %v3843_v57  ;;  %v3846_v8 = vadd.f32 %v4817_v46, %v5992_v58  ;;  %v3873_v53 = vadd.f32 %v3872_v52, %v3871_v24 }
 0x97e   :  { %v3790_v48 = vpop.f32.mrf.mxu0  ;;  %v3876_v54 = vld [vmem:[#allocation2 + $0x18] sm:$0xff] }
 0x97f   :  { %3862 = vst.msk [vmem:[#allocation2 + $0x38] sm:$0xff] %vm293_vm1, %v3846_v8  ;;  %v3845_v21 = vadd.f32 %v3790_v48, %v5985_v29 }
 0x980   :  { %v3874_v51 = vld [vmem:[#allocation2 + $0x10] sm:$0xff] }
 0x981   :  { %3861 = vst.msk [vmem:[#allocation2 + $0x30] sm:$0xff] %vm293_vm1, %v3845_v21  ;;  %v3875_v63 = vadd.f32 %v3874_v51, %v3873_v53 }
 0x982   :  { %v3880_v26 = vld [vmem:[#allocation2 + $0x28] sm:$0xff] }
 0x983   :  { %v3877_v60 = vadd.f32 %v3876_v54, %v3875_v63 }
 0x984   :  { %v3878_v14 = vld [vmem:[#allocation2 + $0x20] sm:$0xff] }
 0x985   :  { %v3879_v0 = vadd.f32 %v3878_v14, %v3877_v60 }
 0x987   :  { %v3881_v7 = vadd.f32 %v3880_v26, %v3879_v0 }
 0x988   :  { %v3882_v38 = vld [vmem:[#allocation2 + $0x30] sm:$0xff] }
 0x989   :  { %v3883_v10 = vadd.f32 %v3882_v38, %v3881_v7 }
 0x9b0   :  { %v4820_v5 = vpop.f32.mrf.mxu0 }
 0x9b1   :  { %v3848_v4 = vadd.f32 %v4820_v5, %v6008_v39 }
 0x9b2   :  { %v3800_v58 = vpop.f32.mrf.mxu0 }
 0x9b3   :  { %3864 = vst.msk [vmem:[#allocation2 + $0x48] sm:$0xff] %vm293_vm1, %v3848_v4  ;;  %v3847_v29 = vadd.f32 %v3800_v58, %v5995_v61  ;;  %v3884_v61 = vld [vmem:[#allocation2 + $0x38] sm:$0xff] }
 0x9b4   :  { %v4823_v32 = vpop.f32.mrf.mxu0  ;;  %v3885_v17 = vadd.f32 %v3884_v61, %v3883_v10 }
 0x9b5   :  { %3863 = vst.msk [vmem:[#allocation2 + $0x40] sm:$0xff] %vm293_vm1, %v3847_v29  ;;  %v3850_v43 = vadd.f32 %v4823_v32, %v6021_v42 }
 0x9b6   :  { %v3810_v11 = vpop.f32.mrf.mxu0 }
 0x9b7   :  { %3866 = vst.msk [vmem:[#allocation2 + $0x58] sm:$0xff] %vm293_vm1, %v3850_v43  ;;  %v3849_v9 = vadd.f32 %v3810_v11, %v6011_v40 }
 0x9b8   :  { %v4826_v39 = vpop.f32.mrf.mxu0 }
 0x9b9   :  { %3865 = vst.msk [vmem:[#allocation2 + $0x50] sm:$0xff] %vm293_vm1, %v3849_v9  ;;  %v3852_v44 = vadd.f32 %v4826_v39, %v6037_v55 }
 0x9ba   :  { %v3820_v49 = vpop.f32.mrf.mxu0  ;;  %v3888_v2 = vld [vmem:[#allocation2 + $0x48] sm:$0xff] }
 0x9bb   :  { %3868 = vst.msk [vmem:[#allocation2 + $0x68] sm:$0xff] %vm293_vm1, %v3852_v44  ;;  %v3851_v15 = vadd.f32 %v3820_v49, %v6027_v37 }
 0x9bc   :  { %v4829_v27 = vpop.f32.mrf.mxu0  ;;  %v3886_v42 = vld [vmem:[#allocation2 + $0x40] sm:$0xff] }
 0x9bd   :  { %3867 = vst.msk [vmem:[#allocation2 + $0x60] sm:$0xff] %vm293_vm1, %v3851_v15  ;;  %v3854_v56 = vadd.f32 %v4829_v27, %v6047_v47  ;;  %v3887_v40 = vadd.f32 %v3886_v42, %v3885_v17 }
 0x9be   :  { %v3830_v59 = vpop.f32.mrf.mxu0  ;;  %v3892_v37 = vld [vmem:[#allocation2 + $0x58] sm:$0xff] }
 0x9bf   :  { %3870 = vst.msk [vmem:[#allocation2 + $0x78] sm:$0xff] %vm293_vm1, %v3854_v56  ;;  %v3853_v55 = vadd.f32 %v3830_v59, %v6040_v13  ;;  %v3889_v6 = vadd.f32 %v3888_v2, %v3887_v40  ;;  %v3991_v13 = vld [vmem:[%s6156_s10 + $0x18] sm:$0xff] }
 0x9c0   :  { %v3890_v23 = vld [vmem:[#allocation2 + $0x50] sm:$0xff] }
 0x9c1   :  { %3869 = vst.msk [vmem:[#allocation2 + $0x70] sm:$0xff] %vm293_vm1, %v3853_v55  ;;  %v3891_v18 = vadd.f32 %v3890_v23, %v3889_v6 }
 0x9c2   :  { %v3896_v33 = vld [vmem:[#allocation2 + $0x68] sm:$0xff] }
 0x9c3   :  { %v3893_v12 = vadd.f32 %v3892_v37, %v3891_v18 }
 0x9c4   :  { %v3894_v30 = vld [vmem:[#allocation2 + $0x60] sm:$0xff] }
 0x9c5   :  { %v3895_v50 = vadd.f32 %v3894_v30, %v3893_v12 }
 0x9c6   :  { %v3900_v19 = vld [vmem:[#allocation2 + $0x78] sm:$0xff] }
 0x9c7   :  { %v3897_v20 = vadd.f32 %v3896_v33, %v3895_v50 }
 0x9c8   :  { %v3898_v34 = vld [vmem:[#allocation2 + $0x70] sm:$0xff] }
 0x9c9   :  { %v3899_v47 = vadd.f32 %v3898_v34, %v3897_v20 }
 0x9cb   :  { %v3901_v62 = vadd.f32 %v3900_v19, %v3899_v47 }
 0x9cd   :  { %v3902_v35 = vmul.f32 0.0625, %v3901_v62 }
 0x9cf   :  { %4839 = vmatmul.mubr.msk.f32.vlgmr.msra.gmra.mxu1 %vm293_vm1, %v3902_v35 }
 0x9d0   :  { %4842 = vmatpush3.msra.mxu1 %v3991_v13  ;;  %4849 = vmatprep.mubr.msk.f32.mxu1 %vm5273_vm5, %v5272_v1 }
 0x9d1   :  { %4843 = vmatprep.subr.mxu1 %v5272_v1 }
 0x9d2   :  { %4844 = vmatpush3.msra.mxu1 %v3990_v36 }
 0x9d3   :  { %4845 = vmatprep.subr.mxu1 %v5272_v1 }
 0x9d4   :  { %4846 = vmatpush3.msra.mxu1 %v3989_v25 }
 0x9d5   :  { %4847 = vmatprep.subr.mxu1 %v5272_v1 }
 0x9d6   :  { %4848 = vmatpush3.msra.mxu1 %v3988_v41 }
 0xa8f   :  { %v3983_v3 = vpop.f32.mrf.mxu1 }
 0xa90   :  { %v3984_v45 = vadd.f32 %v4461_v16, %v3983_v3 }
 0xa91   :  { %v4840_v28 = vpop.f32.mrf.mxu1 }
 0xa92   :  { %v3987_v31 = vmax.f32 %v3984_v45, 0.0 }
 0xa94   :  { %4850 = vmatmul.mubr.msk.f32.vlgmr.msra.gmra.mxu1 %vm293_vm1, %v3987_v31 }
 0xb54   :  { %v4068_v1 = vpop.f32.mrf.mxu1 }
 0xb55   :  { %v4069_v57 = vadd.f32 %v4463_v22, %v4068_v1 }
 0xb56   :  { %v4851_v46 = vpop.f32.mrf.mxu1 }
 0xb57   :  { %4072 = vst [vmem:[%s6158_s12] sm:$0xff] %v4069_v57 }
 0xb58   :  { %4077 = vsyncpa [#allocation5], 1 }

</bundles_post_ra>
